<compile_context>
chip_gen: v7x
topology: tpu7x:2x2x1
jax: 0.10.0
libtpu: 0.0.40
codegen_flags: <defaults>
</compile_context>

<pallas_src>
import functools
import math

import jax
import jax.numpy as jnp
from jax.experimental import pallas as pl
from jax.experimental.pallas import tpu as pltpu


# ----------------------------- helpers --------------------------------------

def _layernorm(x, gamma, beta, eps=1e-5):
    mu = jnp.mean(x, axis=-1, keepdims=True)
    var = jnp.mean((x - mu) ** 2, axis=-1, keepdims=True)
    return (x - mu) * jax.lax.rsqrt(var + eps) * gamma + beta


def _choose_q_tile(S, max_tile=256):
    """Query-row tile. Full S for small sequences; otherwise a multiple of 8."""
    if S <= max_tile:
        return S
    for cand in (max_tile, 128, 64, 32, 16, 8):
        if S % cand == 0:
            return cand
    return S  # ragged S: fall back to one full-row tile


def _default_vmem_limit_bytes():
    try:
        cap = pltpu.get_tpu_info().vmem_capacity_bytes
    except Exception:
        cap = 64 * 1024 * 1024
    return int(cap * 3 // 4)  # leave headroom below the physical limit


# ----------------------------- Pallas kernel --------------------------------

def interstage_block_kernel(
    x_prev_ref, x_curr_ref,
    wq_ref, bq_ref, wkv_ref, bkv_ref, wo_ref, bo_ref,
    w1_ref, b1_ref, w2_ref, b2_ref, wg_ref, bg_ref,
    gp_ref, bp_ref, gc_ref, bc_ref,
    out_prev_ref, out_curr_ref,
    *, num_heads, q_tile, matmul_dtype):
    """One InterstageBlock for one (batch, query-row-tile) grid point."""
    mm = matmul_dtype
    row0 = pl.multiple_of(pl.program_id(1) * q_tile, q_tile)

    xp = x_prev_ref[0].astype(jnp.float32)                               # (TQ, D)
    xc_tile = x_curr_ref[0, pl.ds(row0, q_tile), :].astype(jnp.float32)  # (TQ, D)

    D = xp.shape[-1]
    dh = D // num_heads
    scale = 1.0 / math.sqrt(dh)

    # --- projections: bf16 operands on the MXU, f32 accumulation ---
    q = jnp.dot(xp.astype(mm), wq_ref[...],
                preferred_element_type=jnp.float32) + bq_ref[...]        # (TQ, D)
    q = q * scale                                                        # fold scale once
    # K and V share x_curr -> single fused matmul over the full sequence.
    kv = jnp.dot(x_curr_ref[0].astype(mm), wkv_ref[...],
                 preferred_element_type=jnp.float32) + bkv_ref[...]      # (S, 2D)

    q_mm = q.astype(mm)
    k_mm = kv[:, :D].astype(mm)
    v_mm = kv[:, D:].astype(mm)

    # --- attention: per-head, lane-dense (TQ, D) accumulation; output
    #     projection folded into the head loop (no scratch, no narrow stores).
    att = jnp.zeros((q_tile, D), jnp.float32)
    for h in range(num_heads):                       # static unrolled loop
        qh = q_mm[:, h * dh:(h + 1) * dh]            # (TQ, dh)
        kh = k_mm[:, h * dh:(h + 1) * dh]            # (S,  dh)
        vh = v_mm[:, h * dh:(h + 1) * dh]            # (S,  dh)
        # contract last dim of both -> no XLU transpose of K
        s = jax.lax.dot_general(qh, kh, (((1,), (1,)), ((), ())),
                                preferred_element_type=jnp.float32)      # (TQ, S)
        s = s - jnp.max(s, axis=-1, keepdims=True)
        p = jnp.exp(s)
        p = p * pl.reciprocal(jnp.sum(p, axis=-1, keepdims=True), approx=True)
        ctx = jnp.dot(p.astype(mm), vh, preferred_element_type=jnp.float32)  # (TQ, dh)
        att += jnp.dot(ctx.astype(mm), wo_ref[h * dh:(h + 1) * dh, :],
                       preferred_element_type=jnp.float32)               # (TQ, D)
    att = att + bo_ref[...]

    # --- residual + LayerNorm on x_prev ---
    xp_new = _layernorm(xp + att, gp_ref[...], bp_ref[...])

    # --- GatedMechanism (stagemix): gate from post-LN x_prev, FFN on x_curr ---
    gate = jax.nn.sigmoid(jnp.dot(xp_new.astype(mm), wg_ref[...],
                                  preferred_element_type=jnp.float32) + bg_ref[...])
    hid = jnp.maximum(jnp.dot(xc_tile.astype(mm), w1_ref[...],
                              preferred_element_type=jnp.float32) + b1_ref[...], 0.0)
    mix = (jnp.dot(hid.astype(mm), w2_ref[...],
                   preferred_element_type=jnp.float32) + b2_ref[...]) * gate

    # --- residual + LayerNorm on x_curr ---
    xc_new = _layernorm(xc_tile + mix, gc_ref[...], bc_ref[...])

    out_prev_ref[0] = xp_new.astype(out_prev_ref.dtype)
    out_curr_ref[0] = xc_new.astype(out_curr_ref.dtype)


# weight order fed to the kernel
_P_ORDER = ['wq', 'bq', 'wkv', 'bkv', 'wo', 'bo', 'w1', 'b1', 'w2', 'b2',
            'wg', 'bg', 'gp', 'bp', 'gc', 'bc']
# matmul (MXU) weights -> cast to matmul_dtype; everything else stays f32
_MXU_WEIGHTS = frozenset(['wq', 'wkv', 'wo', 'w1', 'w2', 'wg'])


def _weight_spec(shape, single_buffer):
    nd = len(shape)
    index_map = lambda b, qi, _nd=nd: (0,) * _nd
    if single_buffer and hasattr(pl, "Buffered"):
        # constant index_map -> double-buffering buys nothing; halve weight VMEM
        return pl.BlockSpec(shape, index_map, pipeline_mode=pl.Buffered(1))
    return pl.BlockSpec(shape, index_map)


def interstage_block(x_prev, x_curr, params, *, num_heads,
                     matmul_dtype=jnp.bfloat16, q_tile=None):
    B, S, D = x_prev.shape
    assert x_curr.shape == (B, S, D)
    assert D % num_heads == 0, "num_heads must divide d_model"

    if q_tile is None:
        q_tile = _choose_q_tile(S)
    assert S % q_tile == 0, "query tile must divide seq_len"
    n_q = S // q_tile

    # Fuse K and V projections (both consume x_curr).
    p = dict(params)
    p['wkv'] = jnp.concatenate([params['wk'], params['wv']], axis=1)
    p['bkv'] = jnp.concatenate([params['bk'], params['bv']], axis=1)

    def cast_w(name, arr):
        return arr.astype(matmul_dtype) if name in _MXU_WEIGHTS \
            else arr.astype(jnp.float32)

    weights = [cast_w(k, p[k]) for k in _P_ORDER]

    prev_spec = pl.BlockSpec((1, q_tile, D), lambda b, qi: (b, qi, 0))
    curr_spec = pl.BlockSpec((1, S, D), lambda b, qi: (b, 0, 0))
    out_spec = pl.BlockSpec((1, q_tile, D), lambda b, qi: (b, qi, 0))

    kernel = functools.partial(interstage_block_kernel, num_heads=num_heads,
                               q_tile=q_tile, matmul_dtype=matmul_dtype)
    out_shape = (jax.ShapeDtypeStruct((B, S, D), x_prev.dtype),
                 jax.ShapeDtypeStruct((B, S, D), x_curr.dtype))

    def build(single_buffer_weights):
        in_specs = ([prev_spec, curr_spec]
                    + [_weight_spec(w.shape, single_buffer_weights)
                       for w in weights])
        return pl.pallas_call(
            kernel,
            out_shape=out_shape,
            grid_spec=pltpu.PrefetchScalarGridSpec(
                num_scalar_prefetch=0,
                grid=(B, n_q),
                in_specs=in_specs,
                out_specs=[out_spec, out_spec]),
            compiler_params=pltpu.CompilerParams(
                dimension_semantics=("parallel", "parallel"),
                vmem_limit_bytes=_default_vmem_limit_bytes()),
        )

    try:
        return build(True)(x_prev, x_curr, *weights)
    except Exception:
        # TODO(synk): pl.Buffered(1) not supported on this jax version; fall
        # back to default double-buffered weight specs.
        return build(False)(x_prev, x_curr, *weights)


# ----------------------------- parameter init -------------------------------

def init_block_params(key, d_model, d_ff):
    ks = jax.random.split(key, 6)

    def lin(k, din, dout):
        w = jax.random.normal(k, (din, dout), jnp.float32) / math.sqrt(din)
        b = jnp.zeros((1, dout), jnp.float32)
        return w, b

    p = {}
    p['wq'], p['bq'] = lin(ks[0], d_model, d_model)
    p['wk'], p['bk'] = lin(ks[1], d_model, d_model)
    p['wv'], p['bv'] = lin(ks[2], d_model, d_model)
    p['wo'], p['bo'] = lin(ks[3], d_model, d_model)
    p['w1'], p['b1'] = lin(ks[4], d_model, d_ff)
    p['w2'], p['b2'] = lin(ks[5], d_ff, d_model)
    p['wg'], p['bg'] = lin(jax.random.fold_in(key, 99), d_model, d_model)
    p['gp'] = jnp.ones((1, d_model), jnp.float32)
    p['bp'] = jnp.zeros((1, d_model), jnp.float32)
    p['gc'] = jnp.ones((1, d_model), jnp.float32)
    p['bc'] = jnp.zeros((1, d_model), jnp.float32)
    return p


# ----------------------- MultistageLayer forward ----------------------------

def multistage_layer(x_list, block_params, *, num_heads,
                     matmul_dtype=jnp.bfloat16):
    """Exactly mirrors MultistageLayer.forward."""
    n_stage = len(x_list)
    out_list, out = [], None
    for i in range(n_stage - 1):
        prev = x_list[i] if i == 0 else out[1]
        out = interstage_block(prev, x_list[i + 1], block_params[i],
                               num_heads=num_heads, matmul_dtype=matmul_dtype)
        out_list.append(out[0])
    out_list.append(out[1])
    return out_list


# ------------------------------ reference -----------------------------------

def _block_ref(xp, xc, p, num_heads):
    S, D = xp.shape[1], xp.shape[2]
    dh = D // num_heads
    q = xp @ p['wq'] + p['bq'][0]
    k = xc @ p['wk'] + p['bk'][0]
    v = xc @ p['wv'] + p['bv'][0]
    qh = q.reshape(-1, S, num_heads, dh).transpose(0, 2, 1, 3)
    kh = k.reshape(-1, S, num_heads, dh).transpose(0, 2, 1, 3)
    vh = v.reshape(-1, S, num_heads, dh).transpose(0, 2, 1, 3)
    s = jnp.einsum('bhqd,bhkd->bhqk', qh, kh) / math.sqrt(dh)
    a = jax.nn.softmax(s, axis=-1)
    o = jnp.einsum('bhqk,bhkd->bhqd', a, vh).transpose(0, 2, 1, 3).reshape(-1, S, D)
    att = o @ p['wo'] + p['bo'][0]

    def ln(x, g, b):
        mu = jnp.mean(x, -1, keepdims=True)
        var = jnp.mean((x - mu) ** 2, -1, keepdims=True)
        return (x - mu) * jax.lax.rsqrt(var + 1e-5) * g[0] + b[0]

    xp_new = ln(xp + att, p['gp'], p['bp'])
    gate = jax.nn.sigmoid(xp_new @ p['wg'] + p['bg'][0])
    mix = (jnp.maximum(xc @ p['w1'] + p['b1'][0], 0.0) @ p['w2'] + p['b2'][0]) * gate
    xc_new = ln(xc + mix, p['gc'], p['bc'])
    return xp_new, xc_new


def multistage_layer_ref(x_list, block_params, *, num_heads):
    n_stage = len(x_list)
    out_list, out = [], None
    for i in range(n_stage - 1):
        prev = x_list[i] if i == 0 else out[1]
        out = _block_ref(prev, x_list[i + 1], block_params[i], num_heads)
        out_list.append(out[0])
    out_list.append(out[1])
    return out_list


# --------------------------------- main --------------------------------------

if __name__ == "__main__":
    B, S, D, H, F = 2, 8, 32, 4, 64
    N_STAGE = 3

    key = jax.random.PRNGKey(0)
    kx, kp = jax.random.split(key)
    x_list = [jax.random.normal(jax.random.fold_in(kx, i), (B, S, D), jnp.float32)
              for i in range(N_STAGE)]
    block_params = [init_block_params(jax.random.fold_in(kp, i), D, F)
                    for i in range(N_STAGE - 1)]

    ref = multistage_layer_ref(x_list, block_params, num_heads=H)

    # 1) semantics check: f32 MXU operands -> tight tolerance vs f32 reference
    out_f32 = multistage_layer(x_list, block_params, num_heads=H,
                               matmul_dtype=jnp.float32)
    out_f32 = [jax.block_until_ready(o) for o in out_f32]
    for o, r in zip(out_f32, ref):
        assert o.shape == (B, S, D)
        assert jnp.max(jnp.abs(o - r)) < 1e-2, "f32 path mismatch vs reference"

    # 2) performance config: bf16 MXU operands, f32 accumulation
    out_bf16 = multistage_layer(x_list, block_params, num_heads=H,
                                matmul_dtype=jnp.bfloat16)
    out_bf16 = [jax.block_until_ready(o) for o in out_bf16]
    for o, r in zip(out_bf16, ref):
        assert o.shape == (B, S, D)
        assert jnp.max(jnp.abs(o - r)) < 1e-1, "bf16 path mismatch vs reference"

    print("KERNEL_OK")
</pallas_src>

<mosaic_0001>
module attributes {stable_mosaic.version = 11 : i64} {
  func.func @interstage_block_kernel(%arg0: i32, %arg1: i32, %arg2: memref<1x8x32xf32, #tpu.memory_space<vmem>>, %arg3: memref<1x8x32xf32, #tpu.memory_space<vmem>>, %arg4: memref<32x32xf32, #tpu.memory_space<vmem>>, %arg5: memref<1x32xf32, #tpu.memory_space<vmem>>, %arg6: memref<32x64xf32, #tpu.memory_space<vmem>>, %arg7: memref<1x64xf32, #tpu.memory_space<vmem>>, %arg8: memref<32x32xf32, #tpu.memory_space<vmem>>, %arg9: memref<1x32xf32, #tpu.memory_space<vmem>>, %arg10: memref<32x64xf32, #tpu.memory_space<vmem>>, %arg11: memref<1x64xf32, #tpu.memory_space<vmem>>, %arg12: memref<64x32xf32, #tpu.memory_space<vmem>>, %arg13: memref<1x32xf32, #tpu.memory_space<vmem>>, %arg14: memref<32x32xf32, #tpu.memory_space<vmem>>, %arg15: memref<1x32xf32, #tpu.memory_space<vmem>>, %arg16: memref<1x32xf32, #tpu.memory_space<vmem>>, %arg17: memref<1x32xf32, #tpu.memory_space<vmem>>, %arg18: memref<1x32xf32, #tpu.memory_space<vmem>>, %arg19: memref<1x32xf32, #tpu.memory_space<vmem>>, %arg20: memref<1x8x32xf32, #tpu.memory_space<vmem>>, %arg21: memref<1x8x32xf32, #tpu.memory_space<vmem>>) attributes {dimension_semantics = [#tpu.dimension_semantics<parallel>, #tpu.dimension_semantics<parallel>], iteration_bounds = array<i64: 2, 1>, scalar_prefetch = 0 : i64, scratch_operands = 0 : i64, tpu.core_type = #tpu.core_type<tc>, window_params = [{transform_indices = @transform_0, window_bounds = array<i64: 1, 8, 32>}, {transform_indices = @transform_1, window_bounds = array<i64: 1, 8, 32>}, {pipeline_mode = #tpu.pipeline_mode<synchronous>, transform_indices = @transform_2, window_bounds = array<i64: 32, 32>}, {pipeline_mode = #tpu.pipeline_mode<synchronous>, transform_indices = @transform_3, window_bounds = array<i64: 1, 32>}, {pipeline_mode = #tpu.pipeline_mode<synchronous>, transform_indices = @transform_4, window_bounds = array<i64: 32, 64>}, {pipeline_mode = #tpu.pipeline_mode<synchronous>, transform_indices = @transform_5, window_bounds = array<i64: 1, 64>}, {pipeline_mode = #tpu.pipeline_mode<synchronous>, transform_indices = @transform_6, window_bounds = array<i64: 32, 32>}, {pipeline_mode = #tpu.pipeline_mode<synchronous>, transform_indices = @transform_7, window_bounds = array<i64: 1, 32>}, {pipeline_mode = #tpu.pipeline_mode<synchronous>, transform_indices = @transform_8, window_bounds = array<i64: 32, 64>}, {pipeline_mode = #tpu.pipeline_mode<synchronous>, transform_indices = @transform_9, window_bounds = array<i64: 1, 64>}, {pipeline_mode = #tpu.pipeline_mode<synchronous>, transform_indices = @transform_10, window_bounds = array<i64: 64, 32>}, {pipeline_mode = #tpu.pipeline_mode<synchronous>, transform_indices = @transform_11, window_bounds = array<i64: 1, 32>}, {pipeline_mode = #tpu.pipeline_mode<synchronous>, transform_indices = @transform_12, window_bounds = array<i64: 32, 32>}, {pipeline_mode = #tpu.pipeline_mode<synchronous>, transform_indices = @transform_13, window_bounds = array<i64: 1, 32>}, {pipeline_mode = #tpu.pipeline_mode<synchronous>, transform_indices = @transform_14, window_bounds = array<i64: 1, 32>}, {pipeline_mode = #tpu.pipeline_mode<synchronous>, transform_indices = @transform_15, window_bounds = array<i64: 1, 32>}, {pipeline_mode = #tpu.pipeline_mode<synchronous>, transform_indices = @transform_16, window_bounds = array<i64: 1, 32>}, {pipeline_mode = #tpu.pipeline_mode<synchronous>, transform_indices = @transform_17, window_bounds = array<i64: 1, 32>}, {transform_indices = @transform_18, window_bounds = array<i64: 1, 8, 32>}, {transform_indices = @transform_19, window_bounds = array<i64: 1, 8, 32>}]} {
    %c8_i32 = arith.constant 8 : i32
    %0 = arith.muli %arg1, %c8_i32 : i32
    %1 = tpu.assume_multiple %0, 8 : i32
    %c0 = arith.constant 0 : index
    %c0_0 = arith.constant 0 : index
    %c0_1 = arith.constant 0 : index
    %2 = vector.load %arg2[%c0, %c0_0, %c0_1] : memref<1x8x32xf32, #tpu.memory_space<vmem>>, vector<1x8x32xf32>
    %3 = vector.shape_cast %2 : vector<1x8x32xf32> to vector<8x32xf32>
    %c0_2 = arith.constant 0 : index
    %4 = arith.index_cast %1 : i32 to index
    %c0_3 = arith.constant 0 : index
    %5 = vector.load %arg3[%c0_2, %4, %c0_3] : memref<1x8x32xf32, #tpu.memory_space<vmem>>, vector<1x8x32xf32>
    %6 = vector.shape_cast %5 : vector<1x8x32xf32> to vector<8x32xf32>
    %c0_4 = arith.constant 0 : index
    %c0_5 = arith.constant 0 : index
    %7 = vector.load %arg4[%c0_4, %c0_5] : memref<32x32xf32, #tpu.memory_space<vmem>>, vector<32x32xf32>
    %cst = arith.constant dense<0.000000e+00> : vector<8x32xf32>
    %8 = tpu.matmul %3, %7, %cst {dimension_numbers = #tpu.dot_dimension_numbers<[1], [0], [0], [1], [0, 0, 1, 1], [], []>} : vector<8x32xf32>, vector<32x32xf32>, vector<8x32xf32> -> vector<8x32xf32>
    %c0_6 = arith.constant 0 : index
    %c0_7 = arith.constant 0 : index
    %9 = vector.load %arg5[%c0_6, %c0_7] : memref<1x32xf32, #tpu.memory_space<vmem>>, vector<1x32xf32>
    %10 = vector.broadcast %9 : vector<1x32xf32> to vector<8x32xf32>
    %11 = arith.addf %8, %10 : vector<8x32xf32>
    %cst_8 = arith.constant 0.353553385 : f32
    %12 = vector.broadcast %cst_8 : f32 to vector<8x32xf32>
    %13 = arith.mulf %11, %12 : vector<8x32xf32>
    %c0_9 = arith.constant 0 : index
    %c0_10 = arith.constant 0 : index
    %c0_11 = arith.constant 0 : index
    %14 = vector.load %arg3[%c0_9, %c0_10, %c0_11] : memref<1x8x32xf32, #tpu.memory_space<vmem>>, vector<1x8x32xf32>
    %15 = vector.shape_cast %14 : vector<1x8x32xf32> to vector<8x32xf32>
    %c0_12 = arith.constant 0 : index
    %c0_13 = arith.constant 0 : index
    %16 = vector.load %arg6[%c0_12, %c0_13] : memref<32x64xf32, #tpu.memory_space<vmem>>, vector<32x64xf32>
    %cst_14 = arith.constant dense<0.000000e+00> : vector<8x64xf32>
    %17 = tpu.matmul %15, %16, %cst_14 {dimension_numbers = #tpu.dot_dimension_numbers<[1], [0], [0], [1], [0, 0, 1, 1], [], []>} : vector<8x32xf32>, vector<32x64xf32>, vector<8x64xf32> -> vector<8x64xf32>
    %c0_15 = arith.constant 0 : index
    %c0_16 = arith.constant 0 : index
    %18 = vector.load %arg7[%c0_15, %c0_16] : memref<1x64xf32, #tpu.memory_space<vmem>>, vector<1x64xf32>
    %19 = vector.broadcast %18 : vector<1x64xf32> to vector<8x64xf32>
    %20 = arith.addf %17, %19 : vector<8x64xf32>
    %21 = vector.extract_strided_slice %20 {offsets = [0, 0], sizes = [8, 32], strides = [1, 1]} : vector<8x64xf32> to vector<8x32xf32>
    %22 = vector.extract_strided_slice %20 {offsets = [0, 32], sizes = [8, 32], strides = [1, 1]} : vector<8x64xf32> to vector<8x32xf32>
    %cst_17 = arith.constant 0.000000e+00 : f32
    %23 = vector.broadcast %cst_17 : f32 to vector<8x32xf32>
    %24 = vector.extract_strided_slice %13 {offsets = [0, 0], sizes = [8, 8], strides = [1, 1]} : vector<8x32xf32> to vector<8x8xf32>
    %25 = vector.extract_strided_slice %21 {offsets = [0, 0], sizes = [8, 8], strides = [1, 1]} : vector<8x32xf32> to vector<8x8xf32>
    %26 = vector.extract_strided_slice %22 {offsets = [0, 0], sizes = [8, 8], strides = [1, 1]} : vector<8x32xf32> to vector<8x8xf32>
    %cst_18 = arith.constant dense<0.000000e+00> : vector<8x8xf32>
    %27 = tpu.matmul %24, %25, %cst_18 {dimension_numbers = #tpu.dot_dimension_numbers<[1], [1], [0], [0], [0, 0, 1, 0], [], []>} : vector<8x8xf32>, vector<8x8xf32>, vector<8x8xf32> -> vector<8x8xf32>
    %cst_19 = arith.constant dense<0xFF800000> : vector<8xf32>
    %28 = vector.multi_reduction <maximumf>, %27, %cst_19 [1] : vector<8x8xf32> to vector<8xf32>
    %29 = vector.shape_cast %28 : vector<8xf32> to vector<8x1xf32>
    %30 = vector.broadcast %29 : vector<8x1xf32> to vector<8x8xf32>
    %31 = arith.subf %27, %30 : vector<8x8xf32>
    %32 = math.exp %31 : vector<8x8xf32>
    %cst_20 = arith.constant dense<0.000000e+00> : vector<8xf32>
    %33 = vector.multi_reduction <add>, %32, %cst_20 [1] : vector<8x8xf32> to vector<8xf32>
    %34 = vector.shape_cast %33 : vector<8xf32> to vector<8x1xf32>
    %35 = tpu.reciprocal %34 {approx = true} : vector<8x1xf32> -> vector<8x1xf32>
    %36 = vector.broadcast %35 : vector<8x1xf32> to vector<8x8xf32>
    %37 = arith.mulf %32, %36 : vector<8x8xf32>
    %cst_21 = arith.constant dense<0.000000e+00> : vector<8x8xf32>
    %38 = tpu.matmul %37, %26, %cst_21 {dimension_numbers = #tpu.dot_dimension_numbers<[1], [0], [0], [1], [0, 0, 1, 1], [], []>} : vector<8x8xf32>, vector<8x8xf32>, vector<8x8xf32> -> vector<8x8xf32>
    %c0_22 = arith.constant 0 : index
    %c0_23 = arith.constant 0 : index
    %39 = vector.load %arg8[%c0_22, %c0_23] : memref<32x32xf32, #tpu.memory_space<vmem>>, vector<8x32xf32>
    %cst_24 = arith.constant dense<0.000000e+00> : vector<8x32xf32>
    %40 = tpu.matmul %38, %39, %cst_24 {dimension_numbers = #tpu.dot_dimension_numbers<[1], [0], [0], [1], [0, 0, 1, 1], [], []>} : vector<8x8xf32>, vector<8x32xf32>, vector<8x32xf32> -> vector<8x32xf32>
    %41 = arith.addf %23, %40 : vector<8x32xf32>
    %42 = vector.extract_strided_slice %13 {offsets = [0, 8], sizes = [8, 8], strides = [1, 1]} : vector<8x32xf32> to vector<8x8xf32>
    %43 = vector.extract_strided_slice %21 {offsets = [0, 8], sizes = [8, 8], strides = [1, 1]} : vector<8x32xf32> to vector<8x8xf32>
    %44 = vector.extract_strided_slice %22 {offsets = [0, 8], sizes = [8, 8], strides = [1, 1]} : vector<8x32xf32> to vector<8x8xf32>
    %cst_25 = arith.constant dense<0.000000e+00> : vector<8x8xf32>
    %45 = tpu.matmul %42, %43, %cst_25 {dimension_numbers = #tpu.dot_dimension_numbers<[1], [1], [0], [0], [0, 0, 1, 0], [], []>} : vector<8x8xf32>, vector<8x8xf32>, vector<8x8xf32> -> vector<8x8xf32>
    %cst_26 = arith.constant dense<0xFF800000> : vector<8xf32>
    %46 = vector.multi_reduction <maximumf>, %45, %cst_26 [1] : vector<8x8xf32> to vector<8xf32>
    %47 = vector.shape_cast %46 : vector<8xf32> to vector<8x1xf32>
    %48 = vector.broadcast %47 : vector<8x1xf32> to vector<8x8xf32>
    %49 = arith.subf %45, %48 : vector<8x8xf32>
    %50 = math.exp %49 : vector<8x8xf32>
    %cst_27 = arith.constant dense<0.000000e+00> : vector<8xf32>
    %51 = vector.multi_reduction <add>, %50, %cst_27 [1] : vector<8x8xf32> to vector<8xf32>
    %52 = vector.shape_cast %51 : vector<8xf32> to vector<8x1xf32>
    %53 = tpu.reciprocal %52 {approx = true} : vector<8x1xf32> -> vector<8x1xf32>
    %54 = vector.broadcast %53 : vector<8x1xf32> to vector<8x8xf32>
    %55 = arith.mulf %50, %54 : vector<8x8xf32>
    %cst_28 = arith.constant dense<0.000000e+00> : vector<8x8xf32>
    %56 = tpu.matmul %55, %44, %cst_28 {dimension_numbers = #tpu.dot_dimension_numbers<[1], [0], [0], [1], [0, 0, 1, 1], [], []>} : vector<8x8xf32>, vector<8x8xf32>, vector<8x8xf32> -> vector<8x8xf32>
    %c8 = arith.constant 8 : index
    %c0_29 = arith.constant 0 : index
    %57 = vector.load %arg8[%c8, %c0_29] : memref<32x32xf32, #tpu.memory_space<vmem>>, vector<8x32xf32>
    %cst_30 = arith.constant dense<0.000000e+00> : vector<8x32xf32>
    %58 = tpu.matmul %56, %57, %cst_30 {dimension_numbers = #tpu.dot_dimension_numbers<[1], [0], [0], [1], [0, 0, 1, 1], [], []>} : vector<8x8xf32>, vector<8x32xf32>, vector<8x32xf32> -> vector<8x32xf32>
    %59 = arith.addf %41, %58 : vector<8x32xf32>
    %60 = vector.extract_strided_slice %13 {offsets = [0, 16], sizes = [8, 8], strides = [1, 1]} : vector<8x32xf32> to vector<8x8xf32>
    %61 = vector.extract_strided_slice %21 {offsets = [0, 16], sizes = [8, 8], strides = [1, 1]} : vector<8x32xf32> to vector<8x8xf32>
    %62 = vector.extract_strided_slice %22 {offsets = [0, 16], sizes = [8, 8], strides = [1, 1]} : vector<8x32xf32> to vector<8x8xf32>
    %cst_31 = arith.constant dense<0.000000e+00> : vector<8x8xf32>
    %63 = tpu.matmul %60, %61, %cst_31 {dimension_numbers = #tpu.dot_dimension_numbers<[1], [1], [0], [0], [0, 0, 1, 0], [], []>} : vector<8x8xf32>, vector<8x8xf32>, vector<8x8xf32> -> vector<8x8xf32>
    %cst_32 = arith.constant dense<0xFF800000> : vector<8xf32>
    %64 = vector.multi_reduction <maximumf>, %63, %cst_32 [1] : vector<8x8xf32> to vector<8xf32>
    %65 = vector.shape_cast %64 : vector<8xf32> to vector<8x1xf32>
    %66 = vector.broadcast %65 : vector<8x1xf32> to vector<8x8xf32>
    %67 = arith.subf %63, %66 : vector<8x8xf32>
    %68 = math.exp %67 : vector<8x8xf32>
    %cst_33 = arith.constant dense<0.000000e+00> : vector<8xf32>
    %69 = vector.multi_reduction <add>, %68, %cst_33 [1] : vector<8x8xf32> to vector<8xf32>
    %70 = vector.shape_cast %69 : vector<8xf32> to vector<8x1xf32>
    %71 = tpu.reciprocal %70 {approx = true} : vector<8x1xf32> -> vector<8x1xf32>
    %72 = vector.broadcast %71 : vector<8x1xf32> to vector<8x8xf32>
    %73 = arith.mulf %68, %72 : vector<8x8xf32>
    %cst_34 = arith.constant dense<0.000000e+00> : vector<8x8xf32>
    %74 = tpu.matmul %73, %62, %cst_34 {dimension_numbers = #tpu.dot_dimension_numbers<[1], [0], [0], [1], [0, 0, 1, 1], [], []>} : vector<8x8xf32>, vector<8x8xf32>, vector<8x8xf32> -> vector<8x8xf32>
    %c16 = arith.constant 16 : index
    %c0_35 = arith.constant 0 : index
    %75 = vector.load %arg8[%c16, %c0_35] : memref<32x32xf32, #tpu.memory_space<vmem>>, vector<8x32xf32>
    %cst_36 = arith.constant dense<0.000000e+00> : vector<8x32xf32>
    %76 = tpu.matmul %74, %75, %cst_36 {dimension_numbers = #tpu.dot_dimension_numbers<[1], [0], [0], [1], [0, 0, 1, 1], [], []>} : vector<8x8xf32>, vector<8x32xf32>, vector<8x32xf32> -> vector<8x32xf32>
    %77 = arith.addf %59, %76 : vector<8x32xf32>
    %78 = vector.extract_strided_slice %13 {offsets = [0, 24], sizes = [8, 8], strides = [1, 1]} : vector<8x32xf32> to vector<8x8xf32>
    %79 = vector.extract_strided_slice %21 {offsets = [0, 24], sizes = [8, 8], strides = [1, 1]} : vector<8x32xf32> to vector<8x8xf32>
    %80 = vector.extract_strided_slice %22 {offsets = [0, 24], sizes = [8, 8], strides = [1, 1]} : vector<8x32xf32> to vector<8x8xf32>
    %cst_37 = arith.constant dense<0.000000e+00> : vector<8x8xf32>
    %81 = tpu.matmul %78, %79, %cst_37 {dimension_numbers = #tpu.dot_dimension_numbers<[1], [1], [0], [0], [0, 0, 1, 0], [], []>} : vector<8x8xf32>, vector<8x8xf32>, vector<8x8xf32> -> vector<8x8xf32>
    %cst_38 = arith.constant dense<0xFF800000> : vector<8xf32>
    %82 = vector.multi_reduction <maximumf>, %81, %cst_38 [1] : vector<8x8xf32> to vector<8xf32>
    %83 = vector.shape_cast %82 : vector<8xf32> to vector<8x1xf32>
    %84 = vector.broadcast %83 : vector<8x1xf32> to vector<8x8xf32>
    %85 = arith.subf %81, %84 : vector<8x8xf32>
    %86 = math.exp %85 : vector<8x8xf32>
    %cst_39 = arith.constant dense<0.000000e+00> : vector<8xf32>
    %87 = vector.multi_reduction <add>, %86, %cst_39 [1] : vector<8x8xf32> to vector<8xf32>
    %88 = vector.shape_cast %87 : vector<8xf32> to vector<8x1xf32>
    %89 = tpu.reciprocal %88 {approx = true} : vector<8x1xf32> -> vector<8x1xf32>
    %90 = vector.broadcast %89 : vector<8x1xf32> to vector<8x8xf32>
    %91 = arith.mulf %86, %90 : vector<8x8xf32>
    %cst_40 = arith.constant dense<0.000000e+00> : vector<8x8xf32>
    %92 = tpu.matmul %91, %80, %cst_40 {dimension_numbers = #tpu.dot_dimension_numbers<[1], [0], [0], [1], [0, 0, 1, 1], [], []>} : vector<8x8xf32>, vector<8x8xf32>, vector<8x8xf32> -> vector<8x8xf32>
    %c24 = arith.constant 24 : index
    %c0_41 = arith.constant 0 : index
    %93 = vector.load %arg8[%c24, %c0_41] : memref<32x32xf32, #tpu.memory_space<vmem>>, vector<8x32xf32>
    %cst_42 = arith.constant dense<0.000000e+00> : vector<8x32xf32>
    %94 = tpu.matmul %92, %93, %cst_42 {dimension_numbers = #tpu.dot_dimension_numbers<[1], [0], [0], [1], [0, 0, 1, 1], [], []>} : vector<8x8xf32>, vector<8x32xf32>, vector<8x32xf32> -> vector<8x32xf32>
    %95 = arith.addf %77, %94 : vector<8x32xf32>
    %c0_43 = arith.constant 0 : index
    %c0_44 = arith.constant 0 : index
    %96 = vector.load %arg9[%c0_43, %c0_44] : memref<1x32xf32, #tpu.memory_space<vmem>>, vector<1x32xf32>
    %97 = vector.broadcast %96 : vector<1x32xf32> to vector<8x32xf32>
    %98 = arith.addf %95, %97 : vector<8x32xf32>
    %99 = arith.addf %3, %98 : vector<8x32xf32>
    %c0_45 = arith.constant 0 : index
    %c0_46 = arith.constant 0 : index
    %100 = vector.load %arg16[%c0_45, %c0_46] : memref<1x32xf32, #tpu.memory_space<vmem>>, vector<1x32xf32>
    %c0_47 = arith.constant 0 : index
    %c0_48 = arith.constant 0 : index
    %101 = vector.load %arg17[%c0_47, %c0_48] : memref<1x32xf32, #tpu.memory_space<vmem>>, vector<1x32xf32>
    %cst_49 = arith.constant dense<0.000000e+00> : vector<8xf32>
    %102 = vector.multi_reduction <add>, %99, %cst_49 [1] : vector<8x32xf32> to vector<8xf32>
    %103 = vector.shape_cast %102 : vector<8xf32> to vector<8x1xf32>
    %cst_50 = arith.constant 3.200000e+01 : f32
    %104 = vector.broadcast %cst_50 : f32 to vector<8x1xf32>
    %105 = arith.divf %103, %104 : vector<8x1xf32>
    %106 = vector.broadcast %105 : vector<8x1xf32> to vector<8x32xf32>
    %107 = arith.subf %99, %106 : vector<8x32xf32>
    %108 = arith.mulf %107, %107 : vector<8x32xf32>
    %cst_51 = arith.constant dense<0.000000e+00> : vector<8xf32>
    %109 = vector.multi_reduction <add>, %108, %cst_51 [1] : vector<8x32xf32> to vector<8xf32>
    %110 = vector.shape_cast %109 : vector<8xf32> to vector<8x1xf32>
    %cst_52 = arith.constant 3.200000e+01 : f32
    %111 = vector.broadcast %cst_52 : f32 to vector<8x1xf32>
    %112 = arith.divf %110, %111 : vector<8x1xf32>
    %113 = vector.broadcast %105 : vector<8x1xf32> to vector<8x32xf32>
    %114 = arith.subf %99, %113 : vector<8x32xf32>
    %cst_53 = arith.constant 9.99999974E-6 : f32
    %115 = vector.broadcast %cst_53 : f32 to vector<8x1xf32>
    %116 = arith.addf %112, %115 : vector<8x1xf32>
    %117 = math.rsqrt %116 : vector<8x1xf32>
    %118 = vector.broadcast %117 : vector<8x1xf32> to vector<8x32xf32>
    %119 = arith.mulf %114, %118 : vector<8x32xf32>
    %120 = vector.broadcast %100 : vector<1x32xf32> to vector<8x32xf32>
    %121 = arith.mulf %119, %120 : vector<8x32xf32>
    %122 = vector.broadcast %101 : vector<1x32xf32> to vector<8x32xf32>
    %123 = arith.addf %121, %122 : vector<8x32xf32>
    %c0_54 = arith.constant 0 : index
    %c0_55 = arith.constant 0 : index
    %124 = vector.load %arg14[%c0_54, %c0_55] : memref<32x32xf32, #tpu.memory_space<vmem>>, vector<32x32xf32>
    %cst_56 = arith.constant dense<0.000000e+00> : vector<8x32xf32>
    %125 = tpu.matmul %123, %124, %cst_56 {dimension_numbers = #tpu.dot_dimension_numbers<[1], [0], [0], [1], [0, 0, 1, 1], [], []>} : vector<8x32xf32>, vector<32x32xf32>, vector<8x32xf32> -> vector<8x32xf32>
    %c0_57 = arith.constant 0 : index
    %c0_58 = arith.constant 0 : index
    %126 = vector.load %arg15[%c0_57, %c0_58] : memref<1x32xf32, #tpu.memory_space<vmem>>, vector<1x32xf32>
    %127 = vector.broadcast %126 : vector<1x32xf32> to vector<8x32xf32>
    %128 = arith.addf %125, %127 : vector<8x32xf32>
    %129 = arith.negf %128 : vector<8x32xf32>
    %130 = math.exp %129 : vector<8x32xf32>
    %cst_59 = arith.constant 1.000000e+00 : f32
    %131 = vector.broadcast %cst_59 : f32 to vector<8x32xf32>
    %132 = arith.addf %131, %130 : vector<8x32xf32>
    %133 = arith.divf %131, %132 : vector<8x32xf32>
    %c0_60 = arith.constant 0 : index
    %c0_61 = arith.constant 0 : index
    %134 = vector.load %arg10[%c0_60, %c0_61] : memref<32x64xf32, #tpu.memory_space<vmem>>, vector<32x64xf32>
    %cst_62 = arith.constant dense<0.000000e+00> : vector<8x64xf32>
    %135 = tpu.matmul %6, %134, %cst_62 {dimension_numbers = #tpu.dot_dimension_numbers<[1], [0], [0], [1], [0, 0, 1, 1], [], []>} : vector<8x32xf32>, vector<32x64xf32>, vector<8x64xf32> -> vector<8x64xf32>
    %c0_63 = arith.constant 0 : index
    %c0_64 = arith.constant 0 : index
    %136 = vector.load %arg11[%c0_63, %c0_64] : memref<1x64xf32, #tpu.memory_space<vmem>>, vector<1x64xf32>
    %137 = vector.broadcast %136 : vector<1x64xf32> to vector<8x64xf32>
    %138 = arith.addf %135, %137 : vector<8x64xf32>
    %cst_65 = arith.constant 0.000000e+00 : f32
    %139 = vector.broadcast %cst_65 : f32 to vector<8x64xf32>
    %140 = arith.maximumf %138, %139 : vector<8x64xf32>
    %c0_66 = arith.constant 0 : index
    %c0_67 = arith.constant 0 : index
    %141 = vector.load %arg12[%c0_66, %c0_67] : memref<64x32xf32, #tpu.memory_space<vmem>>, vector<64x32xf32>
    %cst_68 = arith.constant dense<0.000000e+00> : vector<8x32xf32>
    %142 = tpu.matmul %140, %141, %cst_68 {dimension_numbers = #tpu.dot_dimension_numbers<[1], [0], [0], [1], [0, 0, 1, 1], [], []>} : vector<8x64xf32>, vector<64x32xf32>, vector<8x32xf32> -> vector<8x32xf32>
    %c0_69 = arith.constant 0 : index
    %c0_70 = arith.constant 0 : index
    %143 = vector.load %arg13[%c0_69, %c0_70] : memref<1x32xf32, #tpu.memory_space<vmem>>, vector<1x32xf32>
    %144 = vector.broadcast %143 : vector<1x32xf32> to vector<8x32xf32>
    %145 = arith.addf %142, %144 : vector<8x32xf32>
    %146 = arith.mulf %145, %133 : vector<8x32xf32>
    %147 = arith.addf %6, %146 : vector<8x32xf32>
    %c0_71 = arith.constant 0 : index
    %c0_72 = arith.constant 0 : index
    %148 = vector.load %arg18[%c0_71, %c0_72] : memref<1x32xf32, #tpu.memory_space<vmem>>, vector<1x32xf32>
    %c0_73 = arith.constant 0 : index
    %c0_74 = arith.constant 0 : index
    %149 = vector.load %arg19[%c0_73, %c0_74] : memref<1x32xf32, #tpu.memory_space<vmem>>, vector<1x32xf32>
    %cst_75 = arith.constant dense<0.000000e+00> : vector<8xf32>
    %150 = vector.multi_reduction <add>, %147, %cst_75 [1] : vector<8x32xf32> to vector<8xf32>
    %151 = vector.shape_cast %150 : vector<8xf32> to vector<8x1xf32>
    %cst_76 = arith.constant 3.200000e+01 : f32
    %152 = vector.broadcast %cst_76 : f32 to vector<8x1xf32>
    %153 = arith.divf %151, %152 : vector<8x1xf32>
    %154 = vector.broadcast %153 : vector<8x1xf32> to vector<8x32xf32>
    %155 = arith.subf %147, %154 : vector<8x32xf32>
    %156 = arith.mulf %155, %155 : vector<8x32xf32>
    %cst_77 = arith.constant dense<0.000000e+00> : vector<8xf32>
    %157 = vector.multi_reduction <add>, %156, %cst_77 [1] : vector<8x32xf32> to vector<8xf32>
    %158 = vector.shape_cast %157 : vector<8xf32> to vector<8x1xf32>
    %cst_78 = arith.constant 3.200000e+01 : f32
    %159 = vector.broadcast %cst_78 : f32 to vector<8x1xf32>
    %160 = arith.divf %158, %159 : vector<8x1xf32>
    %161 = vector.broadcast %153 : vector<8x1xf32> to vector<8x32xf32>
    %162 = arith.subf %147, %161 : vector<8x32xf32>
    %cst_79 = arith.constant 9.99999974E-6 : f32
    %163 = vector.broadcast %cst_79 : f32 to vector<8x1xf32>
    %164 = arith.addf %160, %163 : vector<8x1xf32>
    %165 = math.rsqrt %164 : vector<8x1xf32>
    %166 = vector.broadcast %165 : vector<8x1xf32> to vector<8x32xf32>
    %167 = arith.mulf %162, %166 : vector<8x32xf32>
    %168 = vector.broadcast %148 : vector<1x32xf32> to vector<8x32xf32>
    %169 = arith.mulf %167, %168 : vector<8x32xf32>
    %170 = vector.broadcast %149 : vector<1x32xf32> to vector<8x32xf32>
    %171 = arith.addf %169, %170 : vector<8x32xf32>
    %c0_80 = arith.constant 0 : index
    %c0_81 = arith.constant 0 : index
    %c0_82 = arith.constant 0 : index
    %172 = vector.load %arg20[%c0_80, %c0_81, %c0_82] : memref<1x8x32xf32, #tpu.memory_space<vmem>>, vector<1x8x32xf32>
    %173 = vector.shape_cast %172 : vector<1x8x32xf32> to vector<8x32xf32>
    %174 = vector.shape_cast %123 : vector<8x32xf32> to vector<1x8x32xf32>
    tpu.vector_store %arg20[%c0_80, %c0_81, %c0_82], %174 {strides = array<i32>} : memref<1x8x32xf32, #tpu.memory_space<vmem>>, vector<1x8x32xf32>,
    %c0_83 = arith.constant 0 : index
    %c0_84 = arith.constant 0 : index
    %c0_85 = arith.constant 0 : index
    %175 = vector.load %arg21[%c0_83, %c0_84, %c0_85] : memref<1x8x32xf32, #tpu.memory_space<vmem>>, vector<1x8x32xf32>
    %176 = vector.shape_cast %175 : vector<1x8x32xf32> to vector<8x32xf32>
    %177 = vector.shape_cast %171 : vector<8x32xf32> to vector<1x8x32xf32>
    tpu.vector_store %arg21[%c0_83, %c0_84, %c0_85], %177 {strides = array<i32>} : memref<1x8x32xf32, #tpu.memory_space<vmem>>, vector<1x8x32xf32>,
    return
  }
  func.func @transform_0(%arg0: i32, %arg1: i32) -> (i32, i32, i32) {
    %c0_i32 = arith.constant 0 : i32
    %c0_i32_0 = arith.constant 0 : i32
    return %arg0, %arg1, %c0_i32 : i32, i32, i32
  }
  func.func @transform_1(%arg0: i32, %arg1: i32) -> (i32, i32, i32) {
    %c0_i32 = arith.constant 0 : i32
    %c0_i32_0 = arith.constant 0 : i32
    %c0_i32_1 = arith.constant 0 : i32
    return %arg0, %c0_i32, %c0_i32_0 : i32, i32, i32
  }
  func.func @transform_2(%arg0: i32, %arg1: i32) -> (i32, i32) {
    %c0_i32 = arith.constant 0 : i32
    %c0_i32_0 = arith.constant 0 : i32
    %c0_i32_1 = arith.constant 0 : i32
    return %c0_i32, %c0_i32_0 : i32, i32
  }
  func.func @transform_3(%arg0: i32, %arg1: i32) -> (i32, i32) {
    %c0_i32 = arith.constant 0 : i32
    %c0_i32_0 = arith.constant 0 : i32
    %c0_i32_1 = arith.constant 0 : i32
    return %c0_i32, %c0_i32_0 : i32, i32
  }
  func.func @transform_4(%arg0: i32, %arg1: i32) -> (i32, i32) {
    %c0_i32 = arith.constant 0 : i32
    %c0_i32_0 = arith.constant 0 : i32
    %c0_i32_1 = arith.constant 0 : i32
    return %c0_i32, %c0_i32_0 : i32, i32
  }
  func.func @transform_5(%arg0: i32, %arg1: i32) -> (i32, i32) {
    %c0_i32 = arith.constant 0 : i32
    %c0_i32_0 = arith.constant 0 : i32
    %c0_i32_1 = arith.constant 0 : i32
    return %c0_i32, %c0_i32_0 : i32, i32
  }
  func.func @transform_6(%arg0: i32, %arg1: i32) -> (i32, i32) {
    %c0_i32 = arith.constant 0 : i32
    %c0_i32_0 = arith.constant 0 : i32
    %c0_i32_1 = arith.constant 0 : i32
    return %c0_i32, %c0_i32_0 : i32, i32
  }
  func.func @transform_7(%arg0: i32, %arg1: i32) -> (i32, i32) {
    %c0_i32 = arith.constant 0 : i32
    %c0_i32_0 = arith.constant 0 : i32
    %c0_i32_1 = arith.constant 0 : i32
    return %c0_i32, %c0_i32_0 : i32, i32
  }
  func.func @transform_8(%arg0: i32, %arg1: i32) -> (i32, i32) {
    %c0_i32 = arith.constant 0 : i32
    %c0_i32_0 = arith.constant 0 : i32
    %c0_i32_1 = arith.constant 0 : i32
    return %c0_i32, %c0_i32_0 : i32, i32
  }
  func.func @transform_9(%arg0: i32, %arg1: i32) -> (i32, i32) {
    %c0_i32 = arith.constant 0 : i32
    %c0_i32_0 = arith.constant 0 : i32
    %c0_i32_1 = arith.constant 0 : i32
    return %c0_i32, %c0_i32_0 : i32, i32
  }
  func.func @transform_10(%arg0: i32, %arg1: i32) -> (i32, i32) {
    %c0_i32 = arith.constant 0 : i32
    %c0_i32_0 = arith.constant 0 : i32
    %c0_i32_1 = arith.constant 0 : i32
    return %c0_i32, %c0_i32_0 : i32, i32
  }
  func.func @transform_11(%arg0: i32, %arg1: i32) -> (i32, i32) {
    %c0_i32 = arith.constant 0 : i32
    %c0_i32_0 = arith.constant 0 : i32
    %c0_i32_1 = arith.constant 0 : i32
    return %c0_i32, %c0_i32_0 : i32, i32
  }
  func.func @transform_12(%arg0: i32, %arg1: i32) -> (i32, i32) {
    %c0_i32 = arith.constant 0 : i32
    %c0_i32_0 = arith.constant 0 : i32
    %c0_i32_1 = arith.constant 0 : i32
    return %c0_i32, %c0_i32_0 : i32, i32
  }
  func.func @transform_13(%arg0: i32, %arg1: i32) -> (i32, i32) {
    %c0_i32 = arith.constant 0 : i32
    %c0_i32_0 = arith.constant 0 : i32
    %c0_i32_1 = arith.constant 0 : i32
    return %c0_i32, %c0_i32_0 : i32, i32
  }
  func.func @transform_14(%arg0: i32, %arg1: i32) -> (i32, i32) {
    %c0_i32 = arith.constant 0 : i32
    %c0_i32_0 = arith.constant 0 : i32
    %c0_i32_1 = arith.constant 0 : i32
    return %c0_i32, %c0_i32_0 : i32, i32
  }
  func.func @transform_15(%arg0: i32, %arg1: i32) -> (i32, i32) {
    %c0_i32 = arith.constant 0 : i32
    %c0_i32_0 = arith.constant 0 : i32
    %c0_i32_1 = arith.constant 0 : i32
    return %c0_i32, %c0_i32_0 : i32, i32
  }
  func.func @transform_16(%arg0: i32, %arg1: i32) -> (i32, i32) {
    %c0_i32 = arith.constant 0 : i32
    %c0_i32_0 = arith.constant 0 : i32
    %c0_i32_1 = arith.constant 0 : i32
    return %c0_i32, %c0_i32_0 : i32, i32
  }
  func.func @transform_17(%arg0: i32, %arg1: i32) -> (i32, i32) {
    %c0_i32 = arith.constant 0 : i32
    %c0_i32_0 = arith.constant 0 : i32
    %c0_i32_1 = arith.constant 0 : i32
    return %c0_i32, %c0_i32_0 : i32, i32
  }
  func.func @transform_18(%arg0: i32, %arg1: i32) -> (i32, i32, i32) {
    %c0_i32 = arith.constant 0 : i32
    %c0_i32_0 = arith.constant 0 : i32
    return %arg0, %arg1, %c0_i32 : i32, i32, i32
  }
  func.func @transform_19(%arg0: i32, %arg1: i32) -> (i32, i32, i32) {
    %c0_i32 = arith.constant 0 : i32
    %c0_i32_0 = arith.constant 0 : i32
    return %arg0, %arg1, %c0_i32 : i32, i32, i32
  }
}

module attributes {stable_mosaic.version = 11 : i64} {
  func.func @interstage_block_kernel(%arg0: i32, %arg1: i32, %arg2: memref<1x8x32xf32, #tpu.memory_space<vmem>>, %arg3: memref<1x8x32xf32, #tpu.memory_space<vmem>>, %arg4: memref<32x32xf32, #tpu.memory_space<vmem>>, %arg5: memref<1x32xf32, #tpu.memory_space<vmem>>, %arg6: memref<32x64xf32, #tpu.memory_space<vmem>>, %arg7: memref<1x64xf32, #tpu.memory_space<vmem>>, %arg8: memref<32x32xf32, #tpu.memory_space<vmem>>, %arg9: memref<1x32xf32, #tpu.memory_space<vmem>>, %arg10: memref<32x64xf32, #tpu.memory_space<vmem>>, %arg11: memref<1x64xf32, #tpu.memory_space<vmem>>, %arg12: memref<64x32xf32, #tpu.memory_space<vmem>>, %arg13: memref<1x32xf32, #tpu.memory_space<vmem>>, %arg14: memref<32x32xf32, #tpu.memory_space<vmem>>, %arg15: memref<1x32xf32, #tpu.memory_space<vmem>>, %arg16: memref<1x32xf32, #tpu.memory_space<vmem>>, %arg17: memref<1x32xf32, #tpu.memory_space<vmem>>, %arg18: memref<1x32xf32, #tpu.memory_space<vmem>>, %arg19: memref<1x32xf32, #tpu.memory_space<vmem>>, %arg20: memref<1x8x32xf32, #tpu.memory_space<vmem>>, %arg21: memref<1x8x32xf32, #tpu.memory_space<vmem>>) attributes {dimension_semantics = [#tpu.dimension_semantics<parallel>, #tpu.dimension_semantics<parallel>], iteration_bounds = array<i64: 2, 1>, scalar_prefetch = 0 : i64, scratch_operands = 0 : i64, tpu.core_type = #tpu.core_type<tc>, window_params = [{transform_indices = @transform_0, window_bounds = array<i64: 1, 8, 32>}, {transform_indices = @transform_1, window_bounds = array<i64: 1, 8, 32>}, {pipeline_mode = #tpu.pipeline_mode<synchronous>, transform_indices = @transform_2, window_bounds = array<i64: 32, 32>}, {pipeline_mode = #tpu.pipeline_mode<synchronous>, transform_indices = @transform_3, window_bounds = array<i64: 1, 32>}, {pipeline_mode = #tpu.pipeline_mode<synchronous>, transform_indices = @transform_4, window_bounds = array<i64: 32, 64>}, {pipeline_mode = #tpu.pipeline_mode<synchronous>, transform_indices = @transform_5, window_bounds = array<i64: 1, 64>}, {pipeline_mode = #tpu.pipeline_mode<synchronous>, transform_indices = @transform_6, window_bounds = array<i64: 32, 32>}, {pipeline_mode = #tpu.pipeline_mode<synchronous>, transform_indices = @transform_7, window_bounds = array<i64: 1, 32>}, {pipeline_mode = #tpu.pipeline_mode<synchronous>, transform_indices = @transform_8, window_bounds = array<i64: 32, 64>}, {pipeline_mode = #tpu.pipeline_mode<synchronous>, transform_indices = @transform_9, window_bounds = array<i64: 1, 64>}, {pipeline_mode = #tpu.pipeline_mode<synchronous>, transform_indices = @transform_10, window_bounds = array<i64: 64, 32>}, {pipeline_mode = #tpu.pipeline_mode<synchronous>, transform_indices = @transform_11, window_bounds = array<i64: 1, 32>}, {pipeline_mode = #tpu.pipeline_mode<synchronous>, transform_indices = @transform_12, window_bounds = array<i64: 32, 32>}, {pipeline_mode = #tpu.pipeline_mode<synchronous>, transform_indices = @transform_13, window_bounds = array<i64: 1, 32>}, {pipeline_mode = #tpu.pipeline_mode<synchronous>, transform_indices = @transform_14, window_bounds = array<i64: 1, 32>}, {pipeline_mode = #tpu.pipeline_mode<synchronous>, transform_indices = @transform_15, window_bounds = array<i64: 1, 32>}, {pipeline_mode = #tpu.pipeline_mode<synchronous>, transform_indices = @transform_16, window_bounds = array<i64: 1, 32>}, {pipeline_mode = #tpu.pipeline_mode<synchronous>, transform_indices = @transform_17, window_bounds = array<i64: 1, 32>}, {transform_indices = @transform_18, window_bounds = array<i64: 1, 8, 32>}, {transform_indices = @transform_19, window_bounds = array<i64: 1, 8, 32>}]} {
    %c8_i32 = arith.constant 8 : i32
    %0 = arith.muli %arg1, %c8_i32 : i32
    %1 = tpu.assume_multiple %0, 8 : i32
    %c0 = arith.constant 0 : index
    %c0_0 = arith.constant 0 : index
    %c0_1 = arith.constant 0 : index
    %2 = vector.load %arg2[%c0, %c0_0, %c0_1] : memref<1x8x32xf32, #tpu.memory_space<vmem>>, vector<1x8x32xf32>
    %3 = vector.shape_cast %2 : vector<1x8x32xf32> to vector<8x32xf32>
    %c0_2 = arith.constant 0 : index
    %4 = arith.index_cast %1 : i32 to index
    %c0_3 = arith.constant 0 : index
    %5 = vector.load %arg3[%c0_2, %4, %c0_3] : memref<1x8x32xf32, #tpu.memory_space<vmem>>, vector<1x8x32xf32>
    %6 = vector.shape_cast %5 : vector<1x8x32xf32> to vector<8x32xf32>
    %c0_4 = arith.constant 0 : index
    %c0_5 = arith.constant 0 : index
    %7 = vector.load %arg4[%c0_4, %c0_5] : memref<32x32xf32, #tpu.memory_space<vmem>>, vector<32x32xf32>
    %cst = arith.constant dense<0.000000e+00> : vector<8x32xf32>
    %8 = tpu.matmul %3, %7, %cst {dimension_numbers = #tpu.dot_dimension_numbers<[1], [0], [0], [1], [0, 0, 1, 1], [], []>} : vector<8x32xf32>, vector<32x32xf32>, vector<8x32xf32> -> vector<8x32xf32>
    %c0_6 = arith.constant 0 : index
    %c0_7 = arith.constant 0 : index
    %9 = vector.load %arg5[%c0_6, %c0_7] : memref<1x32xf32, #tpu.memory_space<vmem>>, vector<1x32xf32>
    %10 = vector.broadcast %9 : vector<1x32xf32> to vector<8x32xf32>
    %11 = arith.addf %8, %10 : vector<8x32xf32>
    %cst_8 = arith.constant 0.353553385 : f32
    %12 = vector.broadcast %cst_8 : f32 to vector<8x32xf32>
    %13 = arith.mulf %11, %12 : vector<8x32xf32>
    %c0_9 = arith.constant 0 : index
    %c0_10 = arith.constant 0 : index
    %c0_11 = arith.constant 0 : index
    %14 = vector.load %arg3[%c0_9, %c0_10, %c0_11] : memref<1x8x32xf32, #tpu.memory_space<vmem>>, vector<1x8x32xf32>
    %15 = vector.shape_cast %14 : vector<1x8x32xf32> to vector<8x32xf32>
    %c0_12 = arith.constant 0 : index
    %c0_13 = arith.constant 0 : index
    %16 = vector.load %arg6[%c0_12, %c0_13] : memref<32x64xf32, #tpu.memory_space<vmem>>, vector<32x64xf32>
    %cst_14 = arith.constant dense<0.000000e+00> : vector<8x64xf32>
    %17 = tpu.matmul %15, %16, %cst_14 {dimension_numbers = #tpu.dot_dimension_numbers<[1], [0], [0], [1], [0, 0, 1, 1], [], []>} : vector<8x32xf32>, vector<32x64xf32>, vector<8x64xf32> -> vector<8x64xf32>
    %c0_15 = arith.constant 0 : index
    %c0_16 = arith.constant 0 : index
    %18 = vector.load %arg7[%c0_15, %c0_16] : memref<1x64xf32, #tpu.memory_space<vmem>>, vector<1x64xf32>
    %19 = vector.broadcast %18 : vector<1x64xf32> to vector<8x64xf32>
    %20 = arith.addf %17, %19 : vector<8x64xf32>
    %21 = vector.extract_strided_slice %20 {offsets = [0, 0], sizes = [8, 32], strides = [1, 1]} : vector<8x64xf32> to vector<8x32xf32>
    %22 = vector.extract_strided_slice %20 {offsets = [0, 32], sizes = [8, 32], strides = [1, 1]} : vector<8x64xf32> to vector<8x32xf32>
    %cst_17 = arith.constant 0.000000e+00 : f32
    %23 = vector.broadcast %cst_17 : f32 to vector<8x32xf32>
    %24 = vector.extract_strided_slice %13 {offsets = [0, 0], sizes = [8, 8], strides = [1, 1]} : vector<8x32xf32> to vector<8x8xf32>
    %25 = vector.extract_strided_slice %21 {offsets = [0, 0], sizes = [8, 8], strides = [1, 1]} : vector<8x32xf32> to vector<8x8xf32>
    %26 = vector.extract_strided_slice %22 {offsets = [0, 0], sizes = [8, 8], strides = [1, 1]} : vector<8x32xf32> to vector<8x8xf32>
    %cst_18 = arith.constant dense<0.000000e+00> : vector<8x8xf32>
    %27 = tpu.matmul %24, %25, %cst_18 {dimension_numbers = #tpu.dot_dimension_numbers<[1], [1], [0], [0], [0, 0, 1, 0], [], []>} : vector<8x8xf32>, vector<8x8xf32>, vector<8x8xf32> -> vector<8x8xf32>
    %cst_19 = arith.constant dense<0xFF800000> : vector<8xf32>
    %28 = vector.multi_reduction <maximumf>, %27, %cst_19 [1] : vector<8x8xf32> to vector<8xf32>
    %29 = vector.shape_cast %28 : vector<8xf32> to vector<8x1xf32>
    %30 = vector.broadcast %29 : vector<8x1xf32> to vector<8x8xf32>
    %31 = arith.subf %27, %30 : vector<8x8xf32>
    %32 = math.exp %31 : vector<8x8xf32>
    %cst_20 = arith.constant dense<0.000000e+00> : vector<8xf32>
    %33 = vector.multi_reduction <add>, %32, %cst_20 [1] : vector<8x8xf32> to vector<8xf32>
    %34 = vector.shape_cast %33 : vector<8xf32> to vector<8x1xf32>
    %35 = tpu.reciprocal %34 {approx = true} : vector<8x1xf32> -> vector<8x1xf32>
    %36 = vector.broadcast %35 : vector<8x1xf32> to vector<8x8xf32>
    %37 = arith.mulf %32, %36 : vector<8x8xf32>
    %cst_21 = arith.constant dense<0.000000e+00> : vector<8x8xf32>
    %38 = tpu.matmul %37, %26, %cst_21 {dimension_numbers = #tpu.dot_dimension_numbers<[1], [0], [0], [1], [0, 0, 1, 1], [], []>} : vector<8x8xf32>, vector<8x8xf32>, vector<8x8xf32> -> vector<8x8xf32>
    %c0_22 = arith.constant 0 : index
    %c0_23 = arith.constant 0 : index
    %39 = vector.load %arg8[%c0_22, %c0_23] : memref<32x32xf32, #tpu.memory_space<vmem>>, vector<8x32xf32>
    %cst_24 = arith.constant dense<0.000000e+00> : vector<8x32xf32>
    %40 = tpu.matmul %38, %39, %cst_24 {dimension_numbers = #tpu.dot_dimension_numbers<[1], [0], [0], [1], [0, 0, 1, 1], [], []>} : vector<8x8xf32>, vector<8x32xf32>, vector<8x32xf32> -> vector<8x32xf32>
    %41 = arith.addf %23, %40 : vector<8x32xf32>
    %42 = vector.extract_strided_slice %13 {offsets = [0, 8], sizes = [8, 8], strides = [1, 1]} : vector<8x32xf32> to vector<8x8xf32>
    %43 = vector.extract_strided_slice %21 {offsets = [0, 8], sizes = [8, 8], strides = [1, 1]} : vector<8x32xf32> to vector<8x8xf32>
    %44 = vector.extract_strided_slice %22 {offsets = [0, 8], sizes = [8, 8], strides = [1, 1]} : vector<8x32xf32> to vector<8x8xf32>
    %cst_25 = arith.constant dense<0.000000e+00> : vector<8x8xf32>
    %45 = tpu.matmul %42, %43, %cst_25 {dimension_numbers = #tpu.dot_dimension_numbers<[1], [1], [0], [0], [0, 0, 1, 0], [], []>} : vector<8x8xf32>, vector<8x8xf32>, vector<8x8xf32> -> vector<8x8xf32>
    %cst_26 = arith.constant dense<0xFF800000> : vector<8xf32>
    %46 = vector.multi_reduction <maximumf>, %45, %cst_26 [1] : vector<8x8xf32> to vector<8xf32>
    %47 = vector.shape_cast %46 : vector<8xf32> to vector<8x1xf32>
    %48 = vector.broadcast %47 : vector<8x1xf32> to vector<8x8xf32>
    %49 = arith.subf %45, %48 : vector<8x8xf32>
    %50 = math.exp %49 : vector<8x8xf32>
    %cst_27 = arith.constant dense<0.000000e+00> : vector<8xf32>
    %51 = vector.multi_reduction <add>, %50, %cst_27 [1] : vector<8x8xf32> to vector<8xf32>
    %52 = vector.shape_cast %51 : vector<8xf32> to vector<8x1xf32>
    %53 = tpu.reciprocal %52 {approx = true} : vector<8x1xf32> -> vector<8x1xf32>
    %54 = vector.broadcast %53 : vector<8x1xf32> to vector<8x8xf32>
    %55 = arith.mulf %50, %54 : vector<8x8xf32>
    %cst_28 = arith.constant dense<0.000000e+00> : vector<8x8xf32>
    %56 = tpu.matmul %55, %44, %cst_28 {dimension_numbers = #tpu.dot_dimension_numbers<[1], [0], [0], [1], [0, 0, 1, 1], [], []>} : vector<8x8xf32>, vector<8x8xf32>, vector<8x8xf32> -> vector<8x8xf32>
    %c8 = arith.constant 8 : index
    %c0_29 = arith.constant 0 : index
    %57 = vector.load %arg8[%c8, %c0_29] : memref<32x32xf32, #tpu.memory_space<vmem>>, vector<8x32xf32>
    %cst_30 = arith.constant dense<0.000000e+00> : vector<8x32xf32>
    %58 = tpu.matmul %56, %57, %cst_30 {dimension_numbers = #tpu.dot_dimension_numbers<[1], [0], [0], [1], [0, 0, 1, 1], [], []>} : vector<8x8xf32>, vector<8x32xf32>, vector<8x32xf32> -> vector<8x32xf32>
    %59 = arith.addf %41, %58 : vector<8x32xf32>
    %60 = vector.extract_strided_slice %13 {offsets = [0, 16], sizes = [8, 8], strides = [1, 1]} : vector<8x32xf32> to vector<8x8xf32>
    %61 = vector.extract_strided_slice %21 {offsets = [0, 16], sizes = [8, 8], strides = [1, 1]} : vector<8x32xf32> to vector<8x8xf32>
    %62 = vector.extract_strided_slice %22 {offsets = [0, 16], sizes = [8, 8], strides = [1, 1]} : vector<8x32xf32> to vector<8x8xf32>
    %cst_31 = arith.constant dense<0.000000e+00> : vector<8x8xf32>
    %63 = tpu.matmul %60, %61, %cst_31 {dimension_numbers = #tpu.dot_dimension_numbers<[1], [1], [0], [0], [0, 0, 1, 0], [], []>} : vector<8x8xf32>, vector<8x8xf32>, vector<8x8xf32> -> vector<8x8xf32>
    %cst_32 = arith.constant dense<0xFF800000> : vector<8xf32>
    %64 = vector.multi_reduction <maximumf>, %63, %cst_32 [1] : vector<8x8xf32> to vector<8xf32>
    %65 = vector.shape_cast %64 : vector<8xf32> to vector<8x1xf32>
    %66 = vector.broadcast %65 : vector<8x1xf32> to vector<8x8xf32>
    %67 = arith.subf %63, %66 : vector<8x8xf32>
    %68 = math.exp %67 : vector<8x8xf32>
    %cst_33 = arith.constant dense<0.000000e+00> : vector<8xf32>
    %69 = vector.multi_reduction <add>, %68, %cst_33 [1] : vector<8x8xf32> to vector<8xf32>
    %70 = vector.shape_cast %69 : vector<8xf32> to vector<8x1xf32>
    %71 = tpu.reciprocal %70 {approx = true} : vector<8x1xf32> -> vector<8x1xf32>
    %72 = vector.broadcast %71 : vector<8x1xf32> to vector<8x8xf32>
    %73 = arith.mulf %68, %72 : vector<8x8xf32>
    %cst_34 = arith.constant dense<0.000000e+00> : vector<8x8xf32>
    %74 = tpu.matmul %73, %62, %cst_34 {dimension_numbers = #tpu.dot_dimension_numbers<[1], [0], [0], [1], [0, 0, 1, 1], [], []>} : vector<8x8xf32>, vector<8x8xf32>, vector<8x8xf32> -> vector<8x8xf32>
    %c16 = arith.constant 16 : index
    %c0_35 = arith.constant 0 : index
    %75 = vector.load %arg8[%c16, %c0_35] : memref<32x32xf32, #tpu.memory_space<vmem>>, vector<8x32xf32>
    %cst_36 = arith.constant dense<0.000000e+00> : vector<8x32xf32>
    %76 = tpu.matmul %74, %75, %cst_36 {dimension_numbers = #tpu.dot_dimension_numbers<[1], [0], [0], [1], [0, 0, 1, 1], [], []>} : vector<8x8xf32>, vector<8x32xf32>, vector<8x32xf32> -> vector<8x32xf32>
    %77 = arith.addf %59, %76 : vector<8x32xf32>
    %78 = vector.extract_strided_slice %13 {offsets = [0, 24], sizes = [8, 8], strides = [1, 1]} : vector<8x32xf32> to vector<8x8xf32>
    %79 = vector.extract_strided_slice %21 {offsets = [0, 24], sizes = [8, 8], strides = [1, 1]} : vector<8x32xf32> to vector<8x8xf32>
    %80 = vector.extract_strided_slice %22 {offsets = [0, 24], sizes = [8, 8], strides = [1, 1]} : vector<8x32xf32> to vector<8x8xf32>
    %cst_37 = arith.constant dense<0.000000e+00> : vector<8x8xf32>
    %81 = tpu.matmul %78, %79, %cst_37 {dimension_numbers = #tpu.dot_dimension_numbers<[1], [1], [0], [0], [0, 0, 1, 0], [], []>} : vector<8x8xf32>, vector<8x8xf32>, vector<8x8xf32> -> vector<8x8xf32>
    %cst_38 = arith.constant dense<0xFF800000> : vector<8xf32>
    %82 = vector.multi_reduction <maximumf>, %81, %cst_38 [1] : vector<8x8xf32> to vector<8xf32>
    %83 = vector.shape_cast %82 : vector<8xf32> to vector<8x1xf32>
    %84 = vector.broadcast %83 : vector<8x1xf32> to vector<8x8xf32>
    %85 = arith.subf %81, %84 : vector<8x8xf32>
    %86 = math.exp %85 : vector<8x8xf32>
    %cst_39 = arith.constant dense<0.000000e+00> : vector<8xf32>
    %87 = vector.multi_reduction <add>, %86, %cst_39 [1] : vector<8x8xf32> to vector<8xf32>
    %88 = vector.shape_cast %87 : vector<8xf32> to vector<8x1xf32>
    %89 = tpu.reciprocal %88 {approx = true} : vector<8x1xf32> -> vector<8x1xf32>
    %90 = vector.broadcast %89 : vector<8x1xf32> to vector<8x8xf32>
    %91 = arith.mulf %86, %90 : vector<8x8xf32>
    %cst_40 = arith.constant dense<0.000000e+00> : vector<8x8xf32>
    %92 = tpu.matmul %91, %80, %cst_40 {dimension_numbers = #tpu.dot_dimension_numbers<[1], [0], [0], [1], [0, 0, 1, 1], [], []>} : vector<8x8xf32>, vector<8x8xf32>, vector<8x8xf32> -> vector<8x8xf32>
    %c24 = arith.constant 24 : index
    %c0_41 = arith.constant 0 : index
    %93 = vector.load %arg8[%c24, %c0_41] : memref<32x32xf32, #tpu.memory_space<vmem>>, vector<8x32xf32>
    %cst_42 = arith.constant dense<0.000000e+00> : vector<8x32xf32>
    %94 = tpu.matmul %92, %93, %cst_42 {dimension_numbers = #tpu.dot_dimension_numbers<[1], [0], [0], [1], [0, 0, 1, 1], [], []>} : vector<8x8xf32>, vector<8x32xf32>, vector<8x32xf32> -> vector<8x32xf32>
    %95 = arith.addf %77, %94 : vector<8x32xf32>
    %c0_43 = arith.constant 0 : index
    %c0_44 = arith.constant 0 : index
    %96 = vector.load %arg9[%c0_43, %c0_44] : memref<1x32xf32, #tpu.memory_space<vmem>>, vector<1x32xf32>
    %97 = vector.broadcast %96 : vector<1x32xf32> to vector<8x32xf32>
    %98 = arith.addf %95, %97 : vector<8x32xf32>
    %99 = arith.addf %3, %98 : vector<8x32xf32>
    %c0_45 = arith.constant 0 : index
    %c0_46 = arith.constant 0 : index
    %100 = vector.load %arg16[%c0_45, %c0_46] : memref<1x32xf32, #tpu.memory_space<vmem>>, vector<1x32xf32>
    %c0_47 = arith.constant 0 : index
    %c0_48 = arith.constant 0 : index
    %101 = vector.load %arg17[%c0_47, %c0_48] : memref<1x32xf32, #tpu.memory_space<vmem>>, vector<1x32xf32>
    %cst_49 = arith.constant dense<0.000000e+00> : vector<8xf32>
    %102 = vector.multi_reduction <add>, %99, %cst_49 [1] : vector<8x32xf32> to vector<8xf32>
    %103 = vector.shape_cast %102 : vector<8xf32> to vector<8x1xf32>
    %cst_50 = arith.constant 3.200000e+01 : f32
    %104 = vector.broadcast %cst_50 : f32 to vector<8x1xf32>
    %105 = arith.divf %103, %104 : vector<8x1xf32>
    %106 = vector.broadcast %105 : vector<8x1xf32> to vector<8x32xf32>
    %107 = arith.subf %99, %106 : vector<8x32xf32>
    %108 = arith.mulf %107, %107 : vector<8x32xf32>
    %cst_51 = arith.constant dense<0.000000e+00> : vector<8xf32>
    %109 = vector.multi_reduction <add>, %108, %cst_51 [1] : vector<8x32xf32> to vector<8xf32>
    %110 = vector.shape_cast %109 : vector<8xf32> to vector<8x1xf32>
    %cst_52 = arith.constant 3.200000e+01 : f32
    %111 = vector.broadcast %cst_52 : f32 to vector<8x1xf32>
    %112 = arith.divf %110, %111 : vector<8x1xf32>
    %113 = vector.broadcast %105 : vector<8x1xf32> to vector<8x32xf32>
    %114 = arith.subf %99, %113 : vector<8x32xf32>
    %cst_53 = arith.constant 9.99999974E-6 : f32
    %115 = vector.broadcast %cst_53 : f32 to vector<8x1xf32>
    %116 = arith.addf %112, %115 : vector<8x1xf32>
    %117 = math.rsqrt %116 : vector<8x1xf32>
    %118 = vector.broadcast %117 : vector<8x1xf32> to vector<8x32xf32>
    %119 = arith.mulf %114, %118 : vector<8x32xf32>
    %120 = vector.broadcast %100 : vector<1x32xf32> to vector<8x32xf32>
    %121 = arith.mulf %119, %120 : vector<8x32xf32>
    %122 = vector.broadcast %101 : vector<1x32xf32> to vector<8x32xf32>
    %123 = arith.addf %121, %122 : vector<8x32xf32>
    %c0_54 = arith.constant 0 : index
    %c0_55 = arith.constant 0 : index
    %124 = vector.load %arg14[%c0_54, %c0_55] : memref<32x32xf32, #tpu.memory_space<vmem>>, vector<32x32xf32>
    %cst_56 = arith.constant dense<0.000000e+00> : vector<8x32xf32>
    %125 = tpu.matmul %123, %124, %cst_56 {dimension_numbers = #tpu.dot_dimension_numbers<[1], [0], [0], [1], [0, 0, 1, 1], [], []>} : vector<8x32xf32>, vector<32x32xf32>, vector<8x32xf32> -> vector<8x32xf32>
    %c0_57 = arith.constant 0 : index
    %c0_58 = arith.constant 0 : index
    %126 = vector.load %arg15[%c0_57, %c0_58] : memref<1x32xf32, #tpu.memory_space<vmem>>, vector<1x32xf32>
    %127 = vector.broadcast %126 : vector<1x32xf32> to vector<8x32xf32>
    %128 = arith.addf %125, %127 : vector<8x32xf32>
    %129 = arith.negf %128 : vector<8x32xf32>
    %130 = math.exp %129 : vector<8x32xf32>
    %cst_59 = arith.constant 1.000000e+00 : f32
    %131 = vector.broadcast %cst_59 : f32 to vector<8x32xf32>
    %132 = arith.addf %131, %130 : vector<8x32xf32>
    %133 = arith.divf %131, %132 : vector<8x32xf32>
    %c0_60 = arith.constant 0 : index
    %c0_61 = arith.constant 0 : index
    %134 = vector.load %arg10[%c0_60, %c0_61] : memref<32x64xf32, #tpu.memory_space<vmem>>, vector<32x64xf32>
    %cst_62 = arith.constant dense<0.000000e+00> : vector<8x64xf32>
    %135 = tpu.matmul %6, %134, %cst_62 {dimension_numbers = #tpu.dot_dimension_numbers<[1], [0], [0], [1], [0, 0, 1, 1], [], []>} : vector<8x32xf32>, vector<32x64xf32>, vector<8x64xf32> -> vector<8x64xf32>
    %c0_63 = arith.constant 0 : index
    %c0_64 = arith.constant 0 : index
    %136 = vector.load %arg11[%c0_63, %c0_64] : memref<1x64xf32, #tpu.memory_space<vmem>>, vector<1x64xf32>
    %137 = vector.broadcast %136 : vector<1x64xf32> to vector<8x64xf32>
    %138 = arith.addf %135, %137 : vector<8x64xf32>
    %cst_65 = arith.constant 0.000000e+00 : f32
    %139 = vector.broadcast %cst_65 : f32 to vector<8x64xf32>
    %140 = arith.maximumf %138, %139 : vector<8x64xf32>
    %c0_66 = arith.constant 0 : index
    %c0_67 = arith.constant 0 : index
    %141 = vector.load %arg12[%c0_66, %c0_67] : memref<64x32xf32, #tpu.memory_space<vmem>>, vector<64x32xf32>
    %cst_68 = arith.constant dense<0.000000e+00> : vector<8x32xf32>
    %142 = tpu.matmul %140, %141, %cst_68 {dimension_numbers = #tpu.dot_dimension_numbers<[1], [0], [0], [1], [0, 0, 1, 1], [], []>} : vector<8x64xf32>, vector<64x32xf32>, vector<8x32xf32> -> vector<8x32xf32>
    %c0_69 = arith.constant 0 : index
    %c0_70 = arith.constant 0 : index
    %143 = vector.load %arg13[%c0_69, %c0_70] : memref<1x32xf32, #tpu.memory_space<vmem>>, vector<1x32xf32>
    %144 = vector.broadcast %143 : vector<1x32xf32> to vector<8x32xf32>
    %145 = arith.addf %142, %144 : vector<8x32xf32>
    %146 = arith.mulf %145, %133 : vector<8x32xf32>
    %147 = arith.addf %6, %146 : vector<8x32xf32>
    %c0_71 = arith.constant 0 : index
    %c0_72 = arith.constant 0 : index
    %148 = vector.load %arg18[%c0_71, %c0_72] : memref<1x32xf32, #tpu.memory_space<vmem>>, vector<1x32xf32>
    %c0_73 = arith.constant 0 : index
    %c0_74 = arith.constant 0 : index
    %149 = vector.load %arg19[%c0_73, %c0_74] : memref<1x32xf32, #tpu.memory_space<vmem>>, vector<1x32xf32>
    %cst_75 = arith.constant dense<0.000000e+00> : vector<8xf32>
    %150 = vector.multi_reduction <add>, %147, %cst_75 [1] : vector<8x32xf32> to vector<8xf32>
    %151 = vector.shape_cast %150 : vector<8xf32> to vector<8x1xf32>
    %cst_76 = arith.constant 3.200000e+01 : f32
    %152 = vector.broadcast %cst_76 : f32 to vector<8x1xf32>
    %153 = arith.divf %151, %152 : vector<8x1xf32>
    %154 = vector.broadcast %153 : vector<8x1xf32> to vector<8x32xf32>
    %155 = arith.subf %147, %154 : vector<8x32xf32>
    %156 = arith.mulf %155, %155 : vector<8x32xf32>
    %cst_77 = arith.constant dense<0.000000e+00> : vector<8xf32>
    %157 = vector.multi_reduction <add>, %156, %cst_77 [1] : vector<8x32xf32> to vector<8xf32>
    %158 = vector.shape_cast %157 : vector<8xf32> to vector<8x1xf32>
    %cst_78 = arith.constant 3.200000e+01 : f32
    %159 = vector.broadcast %cst_78 : f32 to vector<8x1xf32>
    %160 = arith.divf %158, %159 : vector<8x1xf32>
    %161 = vector.broadcast %153 : vector<8x1xf32> to vector<8x32xf32>
    %162 = arith.subf %147, %161 : vector<8x32xf32>
    %cst_79 = arith.constant 9.99999974E-6 : f32
    %163 = vector.broadcast %cst_79 : f32 to vector<8x1xf32>
    %164 = arith.addf %160, %163 : vector<8x1xf32>
    %165 = math.rsqrt %164 : vector<8x1xf32>
    %166 = vector.broadcast %165 : vector<8x1xf32> to vector<8x32xf32>
    %167 = arith.mulf %162, %166 : vector<8x32xf32>
    %168 = vector.broadcast %148 : vector<1x32xf32> to vector<8x32xf32>
    %169 = arith.mulf %167, %168 : vector<8x32xf32>
    %170 = vector.broadcast %149 : vector<1x32xf32> to vector<8x32xf32>
    %171 = arith.addf %169, %170 : vector<8x32xf32>
    %c0_80 = arith.constant 0 : index
    %c0_81 = arith.constant 0 : index
    %c0_82 = arith.constant 0 : index
    %172 = vector.load %arg20[%c0_80, %c0_81, %c0_82] : memref<1x8x32xf32, #tpu.memory_space<vmem>>, vector<1x8x32xf32>
    %173 = vector.shape_cast %172 : vector<1x8x32xf32> to vector<8x32xf32>
    %174 = vector.shape_cast %123 : vector<8x32xf32> to vector<1x8x32xf32>
    tpu.vector_store %arg20[%c0_80, %c0_81, %c0_82], %174 {strides = array<i32>} : memref<1x8x32xf32, #tpu.memory_space<vmem>>, vector<1x8x32xf32>,
    %c0_83 = arith.constant 0 : index
    %c0_84 = arith.constant 0 : index
    %c0_85 = arith.constant 0 : index
    %175 = vector.load %arg21[%c0_83, %c0_84, %c0_85] : memref<1x8x32xf32, #tpu.memory_space<vmem>>, vector<1x8x32xf32>
    %176 = vector.shape_cast %175 : vector<1x8x32xf32> to vector<8x32xf32>
    %177 = vector.shape_cast %171 : vector<8x32xf32> to vector<1x8x32xf32>
    tpu.vector_store %arg21[%c0_83, %c0_84, %c0_85], %177 {strides = array<i32>} : memref<1x8x32xf32, #tpu.memory_space<vmem>>, vector<1x8x32xf32>,
    return
  }
  func.func @transform_0(%arg0: i32, %arg1: i32) -> (i32, i32, i32) {
    %c0_i32 = arith.constant 0 : i32
    %c0_i32_0 = arith.constant 0 : i32
    return %arg0, %arg1, %c0_i32 : i32, i32, i32
  }
  func.func @transform_1(%arg0: i32, %arg1: i32) -> (i32, i32, i32) {
    %c0_i32 = arith.constant 0 : i32
    %c0_i32_0 = arith.constant 0 : i32
    %c0_i32_1 = arith.constant 0 : i32
    return %arg0, %c0_i32, %c0_i32_0 : i32, i32, i32
  }
  func.func @transform_2(%arg0: i32, %arg1: i32) -> (i32, i32) {
    %c0_i32 = arith.constant 0 : i32
    %c0_i32_0 = arith.constant 0 : i32
    %c0_i32_1 = arith.constant 0 : i32
    return %c0_i32, %c0_i32_0 : i32, i32
  }
  func.func @transform_3(%arg0: i32, %arg1: i32) -> (i32, i32) {
    %c0_i32 = arith.constant 0 : i32
    %c0_i32_0 = arith.constant 0 : i32
    %c0_i32_1 = arith.constant 0 : i32
    return %c0_i32, %c0_i32_0 : i32, i32
  }
  func.func @transform_4(%arg0: i32, %arg1: i32) -> (i32, i32) {
    %c0_i32 = arith.constant 0 : i32
    %c0_i32_0 = arith.constant 0 : i32
    %c0_i32_1 = arith.constant 0 : i32
    return %c0_i32, %c0_i32_0 : i32, i32
  }
  func.func @transform_5(%arg0: i32, %arg1: i32) -> (i32, i32) {
    %c0_i32 = arith.constant 0 : i32
    %c0_i32_0 = arith.constant 0 : i32
    %c0_i32_1 = arith.constant 0 : i32
    return %c0_i32, %c0_i32_0 : i32, i32
  }
  func.func @transform_6(%arg0: i32, %arg1: i32) -> (i32, i32) {
    %c0_i32 = arith.constant 0 : i32
    %c0_i32_0 = arith.constant 0 : i32
    %c0_i32_1 = arith.constant 0 : i32
    return %c0_i32, %c0_i32_0 : i32, i32
  }
  func.func @transform_7(%arg0: i32, %arg1: i32) -> (i32, i32) {
    %c0_i32 = arith.constant 0 : i32
    %c0_i32_0 = arith.constant 0 : i32
    %c0_i32_1 = arith.constant 0 : i32
    return %c0_i32, %c0_i32_0 : i32, i32
  }
  func.func @transform_8(%arg0: i32, %arg1: i32) -> (i32, i32) {
    %c0_i32 = arith.constant 0 : i32
    %c0_i32_0 = arith.constant 0 : i32
    %c0_i32_1 = arith.constant 0 : i32
    return %c0_i32, %c0_i32_0 : i32, i32
  }
  func.func @transform_9(%arg0: i32, %arg1: i32) -> (i32, i32) {
    %c0_i32 = arith.constant 0 : i32
    %c0_i32_0 = arith.constant 0 : i32
    %c0_i32_1 = arith.constant 0 : i32
    return %c0_i32, %c0_i32_0 : i32, i32
  }
  func.func @transform_10(%arg0: i32, %arg1: i32) -> (i32, i32) {
    %c0_i32 = arith.constant 0 : i32
    %c0_i32_0 = arith.constant 0 : i32
    %c0_i32_1 = arith.constant 0 : i32
    return %c0_i32, %c0_i32_0 : i32, i32
  }
  func.func @transform_11(%arg0: i32, %arg1: i32) -> (i32, i32) {
    %c0_i32 = arith.constant 0 : i32
    %c0_i32_0 = arith.constant 0 : i32
    %c0_i32_1 = arith.constant 0 : i32
    return %c0_i32, %c0_i32_0 : i32, i32
  }
  func.func @transform_12(%arg0: i32, %arg1: i32) -> (i32, i32) {
    %c0_i32 = arith.constant 0 : i32
    %c0_i32_0 = arith.constant 0 : i32
    %c0_i32_1 = arith.constant 0 : i32
    return %c0_i32, %c0_i32_0 : i32, i32
  }
  func.func @transform_13(%arg0: i32, %arg1: i32) -> (i32, i32) {
    %c0_i32 = arith.constant 0 : i32
    %c0_i32_0 = arith.constant 0 : i32
    %c0_i32_1 = arith.constant 0 : i32
    return %c0_i32, %c0_i32_0 : i32, i32
  }
  func.func @transform_14(%arg0: i32, %arg1: i32) -> (i32, i32) {
    %c0_i32 = arith.constant 0 : i32
    %c0_i32_0 = arith.constant 0 : i32
    %c0_i32_1 = arith.constant 0 : i32
    return %c0_i32, %c0_i32_0 : i32, i32
  }
  func.func @transform_15(%arg0: i32, %arg1: i32) -> (i32, i32) {
    %c0_i32 = arith.constant 0 : i32
    %c0_i32_0 = arith.constant 0 : i32
    %c0_i32_1 = arith.constant 0 : i32
    return %c0_i32, %c0_i32_0 : i32, i32
  }
  func.func @transform_16(%arg0: i32, %arg1: i32) -> (i32, i32) {
    %c0_i32 = arith.constant 0 : i32
    %c0_i32_0 = arith.constant 0 : i32
    %c0_i32_1 = arith.constant 0 : i32
    return %c0_i32, %c0_i32_0 : i32, i32
  }
  func.func @transform_17(%arg0: i32, %arg1: i32) -> (i32, i32) {
    %c0_i32 = arith.constant 0 : i32
    %c0_i32_0 = arith.constant 0 : i32
    %c0_i32_1 = arith.constant 0 : i32
    return %c0_i32, %c0_i32_0 : i32, i32
  }
  func.func @transform_18(%arg0: i32, %arg1: i32) -> (i32, i32, i32) {
    %c0_i32 = arith.constant 0 : i32
    %c0_i32_0 = arith.constant 0 : i32
    return %arg0, %arg1, %c0_i32 : i32, i32, i32
  }
  func.func @transform_19(%arg0: i32, %arg1: i32) -> (i32, i32, i32) {
    %c0_i32 = arith.constant 0 : i32
    %c0_i32_0 = arith.constant 0 : i32
    return %arg0, %arg1, %c0_i32 : i32, i32, i32
  }
}

</mosaic_0001>

<bundles_post_ra>
// kernel: tpu_custom_call.1
= control target key start
LH: loop header
LB: loop body
LE: loop exit
PB: predicated region body
PF: predicated region fallthrough
CT: control target
= control target key end

     0   :  { %s3661_s0 = inlined_call_operand.hbm [shape: f32[2,8,32], index: 0, kind: input, shape index: {}]   ;;  %s3662_s1 = inlined_call_operand.hbm [shape: f32[2,8,32], index: 1, kind: input, shape index: {}]   ;;  %s3663_s2 = inlined_call_operand.vmem [shape: f32[32,32], index: 2, kind: input, shape index: {}]   ;;  %s3664_s3 = inlined_call_operand.vmem [shape: f32[1,32], index: 3, kind: input, shape index: {}]   ;;  %s3665_s4 = inlined_call_operand.vmem [shape: f32[32,64], index: 4, kind: input, shape index: {}]   ;;  %s3666_s5 = inlined_call_operand.vmem [shape: f32[1,64], index: 5, kind: input, shape index: {}]   ;;  %s3667_s6 = inlined_call_operand.vmem [shape: f32[32,32], index: 6, kind: input, shape index: {}]   ;;  %s3668_s7 = inlined_call_operand.vmem [shape: f32[1,32], index: 7, kind: input, shape index: {}]   ;;  %s3669_s8 = inlined_call_operand.hbm [shape: f32[32,64], index: 8, kind: input, shape index: {}]   ;;  %s3670_s9 = inlined_call_operand.vmem [shape: f32[1,64], index: 9, kind: input, shape index: {}]   ;;  %s3671_s10 = inlined_call_operand.vmem [shape: f32[64,32], index: 10, kind: input, shape index: {}]   ;;  %s3672_s11 = inlined_call_operand.vmem [shape: f32[1,32], index: 11, kind: input, shape index: {}]   ;;  %s3673_s12 = inlined_call_operand.hbm [shape: f32[32,32], index: 12, kind: input, shape index: {}]   ;;  %s3674_s13 = inlined_call_operand.vmem [shape: f32[1,32], index: 13, kind: input, shape index: {}]   ;;  %s3675_s14 = inlined_call_operand.vmem [shape: f32[1,32], index: 14, kind: input, shape index: {}]   ;;  %s3676_s15 = inlined_call_operand.vmem [shape: f32[1,32], index: 15, kind: input, shape index: {}]   ;;  %s3677_s16 = inlined_call_operand.vmem [shape: f32[1,32], index: 16, kind: input, shape index: {}]   ;;  %s3678_s17 = inlined_call_operand.vmem [shape: f32[1,32], index: 17, kind: input, shape index: {}]   ;;  %s3679_s18 = inlined_call_operand.hbm [shape: f32[2,8,32], index: 18, kind: output, shape index: {0}]   ;;  %s3680_s19 = inlined_call_operand.hbm [shape: f32[2,8,32], index: 19, kind: output, shape index: {1}]  }
   0x1   :  { %3698 = sst [smem:[#allocation27_spill]] %s3661_s0 }
   0x2   :  { %3699 = sst [smem:[#allocation28_spill]] %s3662_s1 }
   0x3   :  { %3700 = sst [smem:[#allocation29_spill]] %s3663_s2 }
   0x4   :  { %3701 = sst [smem:[#allocation30_spill]] %s3664_s3 }
   0x5   :  { %3702 = sst [smem:[#allocation31_spill]] %s3669_s8 }
   0x6   :  { %3703 = sst [smem:[#allocation32_spill]] %s3672_s11 }
   0x7   :  { %3704 = sst [smem:[#allocation33_spill]] %s3673_s12 }
   0x8   :  { %3705 = sst [smem:[#allocation34_spill]] %s3674_s13 }
   0x9   :  { %3706 = sst [smem:[#allocation35_spill]] %s3677_s16 }
   0xa   :  { %3707 = sst [smem:[#allocation36_spill]] %s3678_s17 }
   0xb   :  { %3708 = sst [smem:[#allocation37_spill]] %s3679_s18 }
   0xc   :  { %3709 = sst [smem:[#allocation38_spill]] %s3680_s19 }
   0xd   :  { %25 = vsyncpa [#allocation3], 0 }
   0xe   :  { %27 = vsyncpa [#allocation3 + $0x1], 0 }
   0xf   :  { %28 = vsyncpa [#allocation6], 0 }
  0x10   :  { %30 = vsyncpa [#allocation6 + $0x1], 0 }
  0x11   :  { %31 = vsyncpa [#allocation9], 0 }
  0x12   :  { %32 = vsyncpa [#allocation4], 0 }
  0x13   :  { %34 = vsyncpa [#allocation4 + $0x1], 0 }
  0x14   :  { %35 = vsyncpa [#allocation12], 0 }
  0x15   :  { %37 = vsyncpa [#allocation12 + $0x1], 0  ;;  %s3131_s0 = smov 0   ;;  %s3133_s30 = smov 0  }
  0x16   :  { %s3135_s20 = smov 0   ;;  %s3137_s21 = smov 0  }
  0x17   :  { %s3139_s1 = smov 0   ;;  %s3141_s22 = smov 0  }
  0x18 LB: > { %3710 = sst [smem:[#allocation19_spill]] %s2991_s0  ;;  %s3162_s2 = sadd.s32 4294967295, %s3011_s22   ;;  %s3011_s22 = sphi %s3141_s22, %s43_s22   ;;  %s3007_s1 = sphi %s3139_s1, %s3754_s1   ;;  %s3003_s21 = sphi %s3137_s21, %s3753_s21   ;;  %s2999_s20 = sphi %s3135_s20, %s3752_s20   ;;  %s2995_s30 = sphi %s3133_s30, %s3756_s30   ;;  %s2991_s0 = sphi %s3131_s0, %s3755_s0  }
  0x19   : > { %3711 = sst [smem:[#allocation20_spill]] %s2999_s20  ;;  %s2374_s23 = sadd.s32 4294967294, %s3011_s22  }
  0x1a   : > { %3712 = sst [smem:[#allocation21_spill]] %s3003_s21  ;;  %p77_p0 = scmp.ne.s32.totalorder %s2995_s30, %s2991_s0 }
  0x1b   : > { %3713 = sst [smem:[#allocation22_spill]] %s3007_s1  ;;  %p3688_p1 = scmp.eq.s32.totalorder %s3162_s2, 0 }
  0x1c   : > { %p471_p3 = scmp.eq.s32.totalorder %s2374_s23, 1  ;;  %p2375_p5 = scmp.ge.s32.totalorder %s3011_s22, 1 }
  0x1d   : > { %p3171_p4 = por %p3688_p1, %p77_p0  ;;  %p506_p7 = scmp.lt.s32.totalorder %s3011_s22, 3 }
  0x1e   : > { %p3176_p6 = por %p471_p3, %p77_p0  ;;  %s3013_s26 = smov [#allocation7]  }
  0x1f   : > { %s3714_s24 = scalar_select %p3171_p4, 1, 0 }
  0x20   : > { %s3715_s25 = scalar_select %p3176_p6, 1, 0 }
  0x21   : > { %p3181_p8 = pnand %p2375_p5, %p506_p7  ;;  %s536_s27 = sshll.u32 %s3013_s26, 4  ;;  %s3185_s27 = int_to_ptr.vmem [resolvable:$true] %s536_s27 }
  0x22   : > { %3716 = sst [smem:[#allocation23_spill]] %s3715_s25  ;;  %s3014_s29 = smov [#allocation8]  }
  0x23   : > { %s3717_s3 = scalar_select %p3181_p8, 1, 0 }
  0x24   : > { %p2656_p9 = pneg %p3181_p8  ;;  %s558_s23 = sshll.u32 %s3014_s29, 4  ;;  %s3196_s23 = int_to_ptr.vmem [resolvable:$true] %s558_s23 }
  0x25   : > { %s3719_s8 = sld [smem:[#allocation31_spill]] }
  0x26   : > { %p3192_p11 = pnand %p2656_p9, %p3688_p1 }
  0x28   : > { %p2771_p13 = pneg %p3192_p11 }
  0x2b   : > { %s2769_s26 = scalar_lea.hbm %s3719_s8, 512 }
  0x2c   : > { %p2770_p12 = scmp.ne.s32.totalorder %s3719_s8, %s2769_s26  ;;  %p2776_p5 = scmp.lt.u32.totalorder %s2769_s26, %s3719_s8 }
  0x2e   : > { %p2772_p0 = pnand %p2771_p13, %p2770_p12 }
  0x30   : > { %p2773_p3 = pneg %p2772_p0 }
  0x32   : > { %p2778_p7 = pnand %p2776_p5, %p2773_p3 }
  0x34   : > { %2781 = shalt.err (!%p2778_p7)
}
  0x35   : > { %s2782_s0 = scalar_lea.vmem %s3185_s27, 512  ;;  %p2790_p2 = scmp.lt.s32.totalorder %s3185_s27, %s3185_s27 }
  0x36   : > { %p2783_p9 = scmp.ne.s32.totalorder %s3185_s27, %s2782_s0  ;;  %p2791_p12 = scmp.lt.s32.totalorder %s2782_s0, %s2782_s0 }
  0x38   : > { %p2785_p10 = pnand %p2783_p9, %p2771_p13  ;;  %p2792_p0 = por %p2791_p12, %p2790_p2 }
  0x3a   : > { %p2786_p1 = pneg %p2785_p10 }
  0x3c   : > { %p2793_p6 = pnand %p2792_p0, %p2786_p1 }
  0x3e   : > { %2796 = shalt.err (!%p2793_p6)
}
  0x3f   : > { %s3015_s16 = smov 128   ;;  %s3016_s17 = smov 8  }
  0x40   : > { %2659 = dma.hbm_to_vmem [thread:$0]  (!%p3192_p11), %s3719_s8, 512, %s3185_s27, [#allocation6], %s3015_s16, %s3015_s16, %s3016_s17  }
  0x41   : > { %s3720_s12 = sld [smem:[#allocation33_spill]] }
  0x47   : > { %s2797_s26 = scalar_lea.hbm %s3720_s12, 512 }
  0x48   : > { %p2798_p2 = scmp.ne.s32.totalorder %s3720_s12, %s2797_s26  ;;  %p2804_p10 = scmp.lt.u32.totalorder %s2797_s26, %s3720_s12 }
  0x4a   : > { %p2800_p1 = pnand %p2798_p2, %p2771_p13 }
  0x4c   : > { %p2801_p6 = pneg %p2800_p1 }
  0x4e   : > { %p2806_p3 = pnand %p2804_p10, %p2801_p6 }
  0x50   : > { %2809 = shalt.err (!%p2806_p3)
}
  0x51   : > { %s2810_s27 = scalar_lea.vmem %s3196_s23, 512  ;;  %p2818_p12 = scmp.lt.s32.totalorder %s3196_s23, %s3196_s23 }
  0x52   : > { %p2811_p5 = scmp.ne.s32.totalorder %s3196_s23, %s2810_s27  ;;  %p2819_p0 = scmp.lt.s32.totalorder %s2810_s27, %s2810_s27 }
  0x54   : > { %p2813_p7 = pnand %p2811_p5, %p2771_p13  ;;  %p2820_p2 = por %p2819_p0, %p2818_p12 }
  0x56   : > { %p2814_p9 = pneg %p2813_p7 }
  0x58   : > { %p2821_p1 = pnand %p2820_p2, %p2814_p9 }
  0x5a   : > { %2824 = shalt.err (!%p2821_p1)
}
  0x5b   : > { %2662 = dma.hbm_to_vmem [thread:$0]  (!%p3192_p11), %s3720_s12, 512, %s3196_s23, [#allocation9], %s3015_s16, %s3015_s16, %s3016_s17  }
  0x5c   : > { %s55_s21 = sadd.s32 1, %s3007_s1  ;;  %s64_s18 = sadd.s32 1, %s2999_s20 }
  0x5d   : > { %p57_p13 = scmp.ge.s32.totalorder %s55_s21, 2  ;;  %p71_p6 = scmp.ne.s32.totalorder %s2999_s20, %s2995_s30 }
  0x5e   : > { %p72_p10 = scmp.eq.s32.totalorder %s3011_s22, 0  ;;  %p2679_p3 = scmp.lt.s32.totalorder %s3011_s22, 2 }
  0x5f   : > { %s3758_s21 = smov (%p57_p13, %s55_s21), 0  ;;  %p3722_p7 = scmp.eq.s32.totalorder %s3162_s2, 1 }
  0x60   : > { %3721 = sst [smem:[#allocation24_spill]] %s3758_s21  ;;  %p73_p5 = por %p72_p10, %p71_p6 }
  0x61   : > { %p3260_p9 = por %p3722_p7, %p71_p6  ;;  %s59_s19 = ssub.s32 %s3007_s1, %s3758_s21 }
  0x62   : > { %s587_s25 = sand.u32 1, %s2999_s20   ;;  %p62_p12 = scmp.eq.s32.totalorder %s59_s19, 0 }
  0x63   : > { %s3723_s28 = scalar_select %p3260_p9, 1, 0 }
  0x64   : > { %s3267_s23 = sshll.u32 %s587_s25, 3  ;;  %s2380_s16 = sshll.u32 %s3007_s1, 7 }
  0x65   : > { %3724 = sst [smem:[#allocation25_spill]] %s3723_s28  ;;  %s3726_s0 = sld [smem:[#allocation27_spill]] }
  0x66   : > { %s3271_s17 = scalar_select %p62_p12, %s2999_s20, %s64_s18  }
  0x67   : > { %s591_s13 = scalar_lea.vmem [#allocation2], %s3267_s23  ;;  %p3281_p11 = pnand %p2679_p3, %p73_p5 }
  0x68   : > { %3725 = sst [smem:[#allocation26_spill]] %s3271_s17  ;;  %s599_s8 = sshll.u32 %s591_s13, 4  ;;  %s3285_s8 = int_to_ptr.vmem [resolvable:$true] %s599_s8 }
  0x69   : > { %s3729_s29 = sld [smem:[#allocation28_spill]]  ;;  %p2827_p2 = pneg %p3281_p11 }
  0x6b   : > { %s3727_s27 = smov %s3726_s0  ;;  %s3276_s11 = scalar_lea.hbm %s3726_s0, %s2380_s16 }
  0x6c   : > { %s588_s0 = scalar_lea.sflag [#allocation3], %s587_s25  ;;  %s2825_s21 = scalar_lea.hbm %s3276_s11, 128 }
  0x6d   : > { %p2826_p0 = scmp.ne.s32.totalorder %s3276_s11, %s2825_s21  ;;  %s2830_s17 = scalar_lea.hbm %s3727_s27, 256 }
  0x6e   : > { %p2831_p6 = scmp.lt.u32.totalorder %s3276_s11, %s3727_s27  ;;  %p2832_p10 = scmp.lt.u32.totalorder %s2830_s17, %s2825_s21 }
  0x6f   : > { %s3290_s26 = scalar_lea.hbm %s3729_s29, %s2380_s16  ;;  %p2828_p1 = pnand %p2827_p2, %p2826_p0 }
  0x70   : > { %p2833_p3 = por %p2832_p10, %p2831_p6  ;;  %p2834_p5 = scmp.lt.u32.totalorder %s2825_s21, %s3276_s11 }
  0x71   : > { %p2829_p13 = pneg %p2828_p1 }
  0x72   : > { %p2835_p7 = por %p2834_p5, %p2833_p3 }
  0x74   : > { %p2836_p12 = pnand %p2835_p7, %p2829_p13 }
  0x76   : > { %2839 = shalt.err (!%p2836_p12)
}
  0x77   : > { %s2840_s12 = scalar_lea.vmem %s3285_s8, 128  ;;  %s3017_s1 = smov [#allocation2]  }
  0x78   : > { %p2841_p0 = scmp.ne.s32.totalorder %s3285_s8, %s2840_s12  ;;  %s2845_s25 = sshll.u32 %s3017_s1, 4  ;;  %s2846_s25 = int_to_ptr.vmem [resolvable:$false] %s2845_s25 }
  0x79   : > { %s2847_s20 = scalar_lea.vmem %s2846_s25, 256  ;;  %p2848_p4 = scmp.lt.s32.totalorder %s3285_s8, %s2846_s25 }
  0x7a   : > { %p2843_p1 = pnand %p2841_p0, %p2827_p2  ;;  %p2849_p6 = scmp.lt.s32.totalorder %s2847_s20, %s2840_s12 }
  0x7c   : > { %p2844_p9 = pneg %p2843_p1  ;;  %p2850_p10 = por %p2849_p6, %p2848_p4 }
  0x7e   : > { %p2851_p3 = pnand %p2850_p10, %p2844_p9 }
  0x80   : > { %2854 = shalt.err (!%p2851_p3)
}
  0x81   : > { %2666 = dma.hbm_to_vmem [thread:$0]  (!%p3281_p11), %s3276_s11, 128, %s3285_s8, %s588_s0  }
  0x82   : > { %s606_s21 = sand.u32 1, %s3011_s22   ;;  %s610_s28 = scalar_lea.vmem [#allocation5], %s3267_s23 }
  0x83   : > { %s617_s16 = sshll.u32 %s610_s28, 4  ;;  %s607_s17 = scalar_lea.sflag [#allocation6], %s606_s21  ;;  %s618_s16 = int_to_ptr.vmem [resolvable:$true] %s617_s16 }
  0x84   : > { %s2855_s18 = scalar_lea.hbm %s3290_s26, 128  ;;  %s2860_s1 = scalar_lea.hbm %s3729_s29, 256 }
  0x85   : > { %p2856_p4 = scmp.ne.s32.totalorder %s3290_s26, %s2855_s18  ;;  %p2861_p5 = scmp.lt.u32.totalorder %s3290_s26, %s3729_s29 }
  0x86   : > { %p2862_p7 = scmp.lt.u32.totalorder %s2860_s1, %s2855_s18  ;;  %p2864_p0 = scmp.lt.u32.totalorder %s2855_s18, %s3290_s26 }
  0x87   : > { %p2858_p9 = pnand %p2856_p4, %p2827_p2 }
  0x88   : > { %p2863_p12 = por %p2862_p7, %p2861_p5 }
  0x89   : > { %p2859_p13 = pneg %p2858_p9 }
  0x8a   : > { %p2865_p1 = por %p2864_p0, %p2863_p12 }
  0x8c   : > { %p2866_p6 = pnand %p2865_p1, %p2859_p13 }
  0x8e   : > { %2869 = shalt.err (!%p2866_p6)
}
  0x8f   : > { %s2870_s8 = scalar_lea.vmem %s618_s16, 128  ;;  %s3018_s23 = smov [#allocation5]  }
  0x90   : > { %p2871_p10 = scmp.ne.s32.totalorder %s618_s16, %s2870_s8  ;;  %s2875_s11 = sshll.u32 %s3018_s23, 4  ;;  %s2876_s11 = int_to_ptr.vmem [resolvable:$false] %s2875_s11 }
  0x91   : > { %s2877_s0 = scalar_lea.vmem %s2876_s11, 256  ;;  %p2878_p9 = scmp.lt.s32.totalorder %s618_s16, %s2876_s11 }
  0x92   : > { %p2873_p3 = pnand %p2871_p10, %p2827_p2  ;;  %p2879_p8 = scmp.lt.s32.totalorder %s2877_s0, %s2870_s8 }
  0x94   : > { %p2874_p4 = pneg %p2873_p3  ;;  %p2880_p5 = por %p2879_p8, %p2878_p9 }
  0x96   : > { %p2881_p7 = pnand %p2880_p5, %p2874_p4 }
  0x98   : > { %2884 = shalt.err (!%p2881_p7)
}
  0x99   : > { %2669 = dma.hbm_to_vmem [thread:$0]  (!%p3281_p11), %s3290_s26, 128, %s618_s16, %s607_s17  }
  0x9a   : > { %p3730_p13 = scmp.ne.s32.totalorder %s3717_s3, 0 }
  0x9b   : > { %s3341_s21 = sand.u32 (!%p3730_p13), 1, %s2995_s30   ;;  %p3731_p8 = scmp.ne.s32.totalorder (!%p3730_p13), %s3714_s24, 0 }
  0x9c   : > { %626 = sbr.rel (%p3730_p13) target bundleno = 3643 (0xe3b), region = 92  ;;  %s3344_s28 = sshll.u32 (!%p3730_p13), %s3341_s21, 3 }
  0x9d   : > { %s629_s18 = scalar_lea.sflag (!%p3730_p13), [#allocation3], %s3341_s21  ;;  %s632_s13 = scalar_lea.vmem (!%p3730_p13), [#allocation2], %s3344_s28 }
  0xa3   : > { %2966 = dma.done.wait (%p3731_p8), %s629_s18, 128  }
  0xa4   : > { %2968 = vsyncadd (%p3731_p8), %s629_s18, 4294967168  ;;  %s637_s3 = sand.u32 1, %s3162_s2   ;;  %s641_s26 = scalar_lea.vmem [#allocation5], %s3344_s28 }
  0xa5   : > { %s638_s19 = scalar_lea.sflag [#allocation6], %s637_s3 }
  0xa6   : > { %2970 = dma.done.wait (%p3731_p8), %s638_s19, 128  }
  0xa7   : > { %2972 = vsyncadd (%p3731_p8), %s638_s19, 4294967168  ;;  %p3732_p11 = scmp.eq.s32.totalorder %s3162_s2, 0 }
  0xa9   : > { %2974 = dma.done.wait (%p3732_p11), [#allocation6], 512   ;;  %p3733_p2 = pmov %p3732_p11 }
  0xab   : > { %2976 = vsyncadd (%p3733_p2), [#allocation6], 4294966784  ;;  %p3734_p12 = pmov %p3733_p2 }
  0xac   : > { %p3735_p0 = pmov %p3733_p2 }
  0xad   : > { %2978 = dma.done.wait (%p3734_p12), [#allocation9], 512  }
  0xae   : > { %2980 = vsyncadd (%p3735_p0), [#allocation9], 4294966784  ;;  %v3019_v0 = vmov 0.0|0.0   ;;  %vm3020_vm0 = vmmov 0   ;;  %v3021_v1 = vmov 0.0   ;;  %s3736_s17 = sld [smem:[#allocation29_spill]] }
  0xaf   : > { %2604 = vmatprep.subr.bf16.mxu1 %v3019_v0  ;;  %2489 = vmatprep.mubr.msk.f32.mxu1 %vm3020_vm0, %v3021_v1  ;;  %v805_v8 = vld [vmem:[%s3665_s4] sm:$0xff]  ;;  %v806_v9 = vld [vmem:[%s3665_s4 + $0x8] sm:$0xff]  ;;  %vm729_vm1 = vcmask 261120   ;;  %v807_v12 = vld [vmem:[%s3665_s4 + $0x10] sm:$0xff]  ;;  %s3737_s2 = sld [smem:[#allocation30_spill]]  ;;  %vm889_vm2 = vcmask 64512  }
  0xb0   : > { %2503 = vmatprep.subr.mxu0 %v3021_v1  ;;  %2505 = vmatprep.mubr.msk.f32.mxu0 %vm3020_vm0, %v3021_v1  ;;  %v3391_v10 = vld [vmem:[%s632_s13] sm:$0xff]  ;;  %v2611_v11 = vpack.c.bf16 %v806_v9, %v805_v8  ;;  %v808_v13 = vld [vmem:[%s3665_s4 + $0x18] sm:$0xff]  ;;  %s3023_s20 = smov 96   ;;  %s3024_s8 = smov 88   ;;  %vm2075_vm3 = vcmask 523264  }
  0xb1   : > { %v2614_v14 = vpack.c.bf16 %v808_v13, %v807_v12  ;;  %v3407_v15 = vld [vmem:[%s641_s26] sm:$0xff]  ;;  %v2392_v19 = vld [vmem:[%s3666_s5] ss:$0 sm:$0xff]  ;;  %s3022_s26 = smov 120   ;;  %s3025_s23 = smov 112   ;;  %v1219_v47 = vld [vmem:[%s3667_s6 + $0x8] sm:$0xff] }
  0xb2   : > { %v1053_v52 = vld [vmem:[%s3667_s6] sm:$0xff]  ;;  %s3026_s19 = smov 80   ;;  %s3027_s24 = smov 104  }
  0xb3   : > { %s3028_s12 = smov 72   ;;  %s3738_s16 = sld [smem:[#allocation34_spill]] }
  0xb4   : > { %v718_v2 = vld [vmem:[%s3736_s17] sm:$0xff]  ;;  %v719_v3 = vld [vmem:[%s3736_s17 + $0x8] sm:$0xff]  ;;  %v720_v4 = vld [vmem:[%s3736_s17 + $0x10] sm:$0xff]  ;;  %s3739_s13 = sld [smem:[#allocation21_spill]]  ;;  %s3740_s25 = sld [smem:[#allocation32_spill]] }
  0xb5   : > { %v2605_v5 = vpack.c.bf16 %v719_v3, %v718_v2  ;;  %v721_v6 = vld [vmem:[%s3736_s17 + $0x18] sm:$0xff]  ;;  %v2390_v18 = vld [vmem:[%s3737_s2] ss:$0 sm:$0xff]  ;;  %s706_s2 = scalar_lea.vmem [#allocation10], %s3344_s28  ;;  %s3742_s11 = sld [smem:[#allocation37_spill]] }
  0xb6   : > { %v2608_v7 = vpack.c.bf16 %v721_v6, %v720_v4  ;;  %s2202_s18 = sshll.u32 %s706_s2, 4  ;;  %s2183_s3 = scalar_lea.sflag [#allocation4], %s3341_s21  ;;  %s2203_s18 = int_to_ptr.vmem [resolvable:$true] %s2202_s18 }
  0xb7   : > { %2606 = vmatpush3.bf16.msra.mxu1 %v2605_v5 }
  0xb8   : > { %2607 = vmatprep.subr.bf16.mxu1 %v3019_v0 }
  0xbb   : > { %2609 = vmatpush3.bf16.msra.mxu1 %v2608_v7 }
  0xbc   : > { %2610 = vmatprep.subr.bf16.mxu1 %v3019_v0 }
  0xbe   : > { %2490 = vmatmul.mubr.msk.f32.vlgmr.msra.gmra.mrb[0].mxu1 %vm729_vm1, %v3391_v10 }
  0xbf   : > { %2612 = vmatpush3.bf16.msra.mxu1 %v2611_v11  ;;  %2500 = vmatprep.mubr.msk.f32.mxu1 %vm3020_vm0, %v3021_v1 }
  0xc0   : > { %2613 = vmatprep.subr.bf16.mxu1 %v3019_v0 }
  0xc3   : > { %2615 = vmatpush3.bf16.msra.mxu1 %v2614_v14 }
  0xc4   : > { %2508 = vmatprep.subr.mxu1 %v3021_v1 }
  0xc6   : > { %2501 = vmatmul.mubr.msk.f32.vlgmr.msra.gmra.mrb[2].mxu1 %vm729_vm1, %v3407_v15 }
  0xc7   : > { %2510 = vmatprep.mubr.msk.f32.mxu1 %vm3020_vm0, %v3021_v1 }
 0x191   : > { %v799_v16 = vpop.f32.mrb[0].mxu1 }
 0x192   : > { %v2491_v17 = vpop.f32.mrb[1].mxu1  ;;  %v800_v20 = vadd.f32 %v2390_v18, %v799_v16  ;;  %v1531_v18 = vld [vmem:[%s3667_s6 + $0x10] sm:$0xff] }
 0x194   : > { %v3425_v24 = vmul.f32 0.35355338, %v800_v20 }
 0x199   : > { %v885_v21 = vpop.f32.mrb[2].mxu1 }
 0x19a   : > { %v3420_v22 = vadd.f32 %v2392_v19, %v885_v21  ;;  %v2502_v23 = vpop.f32.mrb[3].mxu1 }
 0x19c   : > { %1056 = vrot.lane.b32.xlu0 %v3420_v22, %s3022_s26  ;;  %2504 = vmatpush3.xpose.msk.msra.mxu0 %vm889_vm2, %v3420_v22 }
 0x19d   : > { %2513 = vmatprep.subr.mxu0 %v3021_v1 }
 0x19f   : > { %2506 = vmatmul.mubr.msk.f32.vlgmr.msra.gmra.mrb[0].mxu0 %vm889_vm2, %v3425_v24 }
 0x1a0   : > { %1054 = vrot.lane.b32.xlu0 %v3425_v24, %s3022_s26  ;;  %2515 = vmatprep.mubr.msk.f32.mxu0 %vm3020_vm0, %v3021_v1  ;;  %s3741_s26 = sld [smem:[#allocation25_spill]] }
 0x1a6   : > { %p3743_p6 = scmp.ne.s32.totalorder %s3741_s26, 0 }
 0x20e   : > { %v1057_v25 = vpop.permute.xlu0 %1056 }
 0x20f   : > { %2514 = vmatpush3.xpose.msk.msra.mxu0 %vm889_vm2, %v1057_v25 }
 0x210   : > { %2523 = vmatprep.subr.mxu0 %v3021_v1 }
 0x212   : > { %v1055_v26 = vpop.permute.xlu0 %1054 }
 0x213   : > { %2516 = vmatmul.mubr.msk.f32.vlgmr.msra.gmra.mrb[2].mxu0 %vm889_vm2, %v1055_v26 }
 0x214   : > { %2525 = vmatprep.mubr.msk.f32.mxu0 %vm3020_vm0, %v3021_v1  ;;  %2524 = vmatpush3.msra.mxu0 %v1219_v47 }
 0x215   : > { %2533 = vmatprep.subr.mxu0 %v3021_v1 }
 0x272   : > { %v962_v27 = vpop.f32.mrb[0].mxu0 }
 0x273   : > { %v2507_v28 = vpop.f32.mrb[1].mxu0  ;;  %v966_v29 = vsel %vm889_vm2, %v962_v27, -inf }
 0x274   : > { %967 = vmax.xlane.f32.xlu1 %v966_v29 }
 0x2e6   : > { %v1128_v30 = vpop.f32.mrb[2].mxu0 }
 0x2e7   : > { %v2517_v31 = vpop.f32.mrb[3].mxu0  ;;  %v1132_v32 = vsel %vm889_vm2, %v1128_v30, -inf }
 0x2e8   : > { %1133 = vmax.xlane.f32.xlu1 %v1132_v32 }
 0x2f9   : > { %977 = vrot.lane.b32.xlu1 %v3420_v22, %s3023_s20  ;;  %s2424_s20 = sshll.u32 %s3739_s13, 7 }
 0x2fa   : > { %s3577_s0 = scalar_lea.hbm %s3742_s11, %s2424_s20 }
 0x301   : > { %v968_v33 = vpop.xlane.xlu1 %967 }
 0x302   : > { %v969_v34 = vsub.f32 %v962_v27, %v968_v33 }
 0x304   : > { %v970_v35 = vmul.f32 1.442695, %v969_v34 }
 0x306   : > { %2745 = vpow2.f32 %v970_v35 }
 0x310   : > { %v2746_v36 = vpop.eup %2745 }
 0x311   : > { %v972_v37 = vsel %vm889_vm2, %v2746_v36, 0.0 }
 0x312   : > { %973 = vadd.xlane.f32.xlu0 %v972_v37 }
 0x375   : > { %v1134_v38 = vpop.xlane.xlu1 %1133 }
 0x376   : > { %v1135_v39 = vsub.f32 %v1128_v30, %v1134_v38  ;;  %v1771_v30 = vld [vmem:[%s3667_s6 + $0x18] sm:$0xff] }
 0x378   : > { %v1136_v40 = vmul.f32 1.442695, %v1135_v39  ;;  %v1975_v39 = vld [vmem:[#allocation7] sm:$0xff] }
 0x379   : > { %v978_v41 = vpop.permute.xlu1 %977 }
 0x37a   : > { %2747 = vpow2.f32 %v1136_v40  ;;  %2509 = vmatpush3.msra.mxu1 %v978_v41  ;;  %v1976_v40 = vld [vmem:[#allocation7 + $0x8] sm:$0xff]  ;;  %v1977_v41 = vld [vmem:[#allocation7 + $0x10] sm:$0xff] }
 0x37b   : > { %2518 = vmatprep.subr.mxu1 %v3021_v1 }
 0x384   : > { %v2748_v42 = vpop.eup %2747 }
 0x385   : > { %v1138_v43 = vsel %vm889_vm2, %v2748_v42, 0.0 }
 0x386   : > { %1139 = vadd.xlane.f32.xlu1 %v1138_v43  ;;  %v1978_v43 = vld [vmem:[#allocation7 + $0x18] sm:$0xff] }
 0x397   : > { %1143 = vrot.lane.b32.xlu1 %v3420_v22, %s3024_s8 }
 0x39b   : > { %1368 = vrot.lane.b32.xlu1 %v3420_v22, %s3025_s23 }
 0x39f   : > { %v974_v44 = vpop.xlane.xlu0 %973  ;;  %1366 = vrot.lane.b32.xlu1 %v3425_v24, %s3025_s23 }
 0x3a0   : > { %2749 = vrcp.f32 %v974_v44  ;;  %v2626_v44 = vpack.c.bf16 %v1978_v43, %v1977_v41 }
 0x3aa   : > { %v2750_v45 = vpop.eup %2749 }
 0x3ab   : > { %v976_v46 = vmul.f32 %v2750_v45, %v2746_v36 }
 0x3ad   : > { %2511 = vmatmul.mubr.msk.f32.vlgmr.msra.gmra.mrb[4].mxu1 %vm889_vm2, %v976_v46  ;;  %v2410_v46 = vld [vmem:[%s3668_s7] ss:$0 sm:$0xff] }
 0x3ae   : > { %2520 = vmatprep.mubr.msk.f32.mxu1 %vm3020_vm0, %v3021_v1 }
 0x413   : > { %v1140_v48 = vpop.xlane.xlu1 %1139 }
 0x414   : > { %2751 = vrcp.f32 %v1140_v48 }
 0x417   : > { %v1144_v49 = vpop.permute.xlu1 %1143 }
 0x418   : > { %2519 = vmatpush3.msra.mxu1 %v1144_v49 }
 0x419   : > { %2528 = vmatprep.subr.mxu1 %v3021_v1 }
 0x41b   : > { %v1369_v55 = vpop.permute.xlu1 %1368 }
 0x41e   : > { %v2752_v50 = vpop.eup %2751 }
 0x41f   : > { %v1142_v51 = vmul.f32 %v2752_v50, %v2748_v42  ;;  %v1367_v58 = vpop.permute.xlu1 %1366  ;;  %v2623_v42 = vpack.c.bf16 %v1976_v40, %v1975_v39 }
 0x421   : > { %2521 = vmatmul.mubr.msk.f32.vlgmr.msra.gmra.mrb[6].mxu1 %vm889_vm2, %v1142_v51 }
 0x422   : > { %2529 = vmatpush3.msra.mxu1 %v1053_v52  ;;  %2530 = vmatprep.mubr.msk.f32.mxu1 %vm3020_vm0, %v3021_v1 }
 0x423   : > { %2538 = vmatprep.subr.mxu1 %v3021_v1 }
 0x480   : > { %v1049_v53 = vpop.f32.mrb[4].mxu1 }
 0x481   : > { %v2512_v54 = vpop.f32.mrb[5].mxu1  ;;  %2531 = vmatmul.mubr.msk.f32.vlgmr.msra.gmra.mrb[8].mxu1 %vm889_vm2, %v1049_v53 }
 0x482   : > { %2540 = vmatprep.mubr.msk.f32.mxu1 %vm3020_vm0, %v3021_v1 }
 0x4f4   : > { %v1215_v56 = vpop.f32.mrb[6].mxu1 }
 0x4f5   : > { %v2522_v57 = vpop.f32.mrb[7].mxu1  ;;  %2526 = vmatmul.mubr.msk.f32.vlgmr.msra.gmra.mrb[4].mxu0 %vm889_vm2, %v1215_v56 }
 0x4f6   : > { %2534 = vmatpush3.xpose.msk.msra.mxu0 %vm889_vm2, %v1369_v55  ;;  %2535 = vmatprep.mubr.msk.f32.mxu0 %vm3020_vm0, %v3021_v1  ;;  %v1885_v57 = vld [vmem:[#allocation8] sm:$0xff] }
 0x4f7   : > { %2543 = vmatprep.subr.mxu0 %v3021_v1 }
 0x4f9   : > { %2536 = vmatmul.mubr.msk.f32.vlgmr.msra.gmra.mrb[6].mxu0 %vm889_vm2, %v1367_v58  ;;  %v1886_v58 = vld [vmem:[#allocation8 + $0x8] sm:$0xff] }
 0x4fa   : > { %2545 = vmatprep.mubr.msk.f32.mxu0 %vm3020_vm0, %v3021_v1  ;;  %2544 = vmatpush3.msra.mxu0 %v1531_v18 }
 0x4fb   : > { %2553 = vmatprep.subr.mxu0 %v3021_v1 }
 0x554   : > { %v1362_v59 = vpop.f32.mrb[8].mxu1 }
 0x555   : > { %v2532_v60 = vpop.f32.mrb[9].mxu1 }
 0x556   : > { %v1887_v60 = vld [vmem:[#allocation8 + $0x10] sm:$0xff] }
 0x5c8   : > { %v1289_v61 = vpop.f32.mrb[4].mxu0 }
 0x5c9   : > { %v1363_v62 = vadd.f32 %v1362_v59, %v1289_v61  ;;  %v2527_v63 = vpop.f32.mrb[5].mxu0  ;;  %v2617_v59 = vpack.c.bf16 %v1886_v58, %v1885_v57  ;;  %v1888_v61 = vld [vmem:[#allocation8 + $0x18] sm:$0xff] }
 0x5cc   : > { %v1440_v2 = vpop.f32.mrb[6].mxu0 }
 0x5cd   : > { %v2537_v3 = vpop.f32.mrb[7].mxu0  ;;  %v1444_v4 = vsel %vm889_vm2, %v1440_v2, -inf }
 0x5ce   : > { %1445 = vmax.xlane.f32.xlu0 %v1444_v4 }
 0x5e4   : > { %1455 = vrot.lane.b32.xlu0 %v3420_v22, %s3026_s19  ;;  %s2885_s19 = scalar_lea.vmem %s2203_s18, 128 }
 0x5e5   : > { %p2886_p1 = scmp.ne.s32.totalorder %s2203_s18, %s2885_s19 }
 0x5e7   : > { %p2887_p10 = pnand %p2886_p1, %p3743_p6 }
 0x5e8   : > { %1608 = vrot.lane.b32.xlu0 %v3420_v22, %s3027_s24 }
 0x5e9   : > { %p2888_p3 = pneg %p2887_p10 }
 0x5ec   : > { %1606 = vrot.lane.b32.xlu0 %v3425_v24, %s3027_s24  ;;  %s3029_s24 = smov [#allocation10]  }
 0x65b   : > { %v1446_v5 = vpop.xlane.xlu0 %1445 }
 0x65c   : > { %v1447_v6 = vsub.f32 %v1440_v2, %v1446_v5 }
 0x65e   : > { %v1448_v7 = vmul.f32 1.442695, %v1447_v6  ;;  %v2411_v6 = vld [vmem:[%s3675_s14] ss:$0 sm:$0xff] }
 0x65f   : > { %v1456_v8 = vpop.permute.xlu0 %1455 }
 0x660   : > { %2753 = vpow2.f32 %v1448_v7  ;;  %2539 = vmatpush3.msra.mxu1 %v1456_v8  ;;  %v2060_v8 = vld [vmem:[%s3671_s10] sm:$0xff] }
 0x661   : > { %2548 = vmatprep.subr.mxu1 %v3021_v1 }
 0x663   : > { %v1609_v14 = vpop.permute.xlu0 %1608 }
 0x667   : > { %v1607_v17 = vpop.permute.xlu0 %1606 }
 0x66a   : > { %v2754_v9 = vpop.eup %2753 }
 0x66b   : > { %v1450_v11 = vsel %vm889_vm2, %v2754_v9, 0.0 }
 0x66c   : > { %1451 = vadd.xlane.f32.xlu1 %v1450_v11  ;;  %v2412_v11 = vld [vmem:[%s3676_s15] ss:$0 sm:$0xff] }
 0x6f9   : > { %v1452_v12 = vpop.xlane.xlu1 %1451 }
 0x6fa   : > { %2755 = vrcp.f32 %v1452_v12 }
 0x704   : > { %v2756_v13 = vpop.eup %2755 }
 0x705   : > { %v1454_v16 = vmul.f32 %v2756_v13, %v2754_v9  ;;  %v2061_v9 = vld [vmem:[%s3671_s10 + $0x8] sm:$0xff] }
 0x706   : > { %v2629_v13 = vpack.c.bf16 %v2061_v9, %v2060_v8 }
 0x707   : > { %2541 = vmatmul.mubr.msk.f32.vlgmr.msra.gmra.mrb[10].mxu1 %vm889_vm2, %v1454_v16  ;;  %v2062_v16 = vld [vmem:[%s3671_s10 + $0x10] sm:$0xff] }
 0x708   : > { %2549 = vmatpush3.xpose.msk.msra.mxu1 %vm889_vm2, %v1609_v14  ;;  %2550 = vmatprep.mubr.msk.f32.mxu1 %vm3020_vm0, %v3021_v1 }
 0x709   : > { %2558 = vmatprep.subr.mxu1 %v3021_v1 }
 0x70b   : > { %2551 = vmatmul.mubr.msk.f32.vlgmr.msra.gmra.mrb[12].mxu1 %vm889_vm2, %v1607_v17  ;;  %v2063_v17 = vld [vmem:[%s3671_s10 + $0x18] sm:$0xff] }
 0x70c   : > { %2560 = vmatprep.mubr.msk.f32.mxu1 %vm3020_vm0, %v3021_v1  ;;  %2559 = vmatpush3.msra.mxu1 %v1771_v30  ;;  %v2632_v18 = vpack.c.bf16 %v2063_v17, %v2062_v16 }
 0x70d   : > { %2622 = vmatprep.subr.bf16.mxu1 %v3019_v0 }
 0x7da   : > { %v1527_v19 = vpop.f32.mrb[10].mxu1 }
 0x7db   : > { %v2542_v20 = vpop.f32.mrb[11].mxu1  ;;  %2546 = vmatmul.mubr.msk.f32.vlgmr.msra.gmra.mrb[8].mxu0 %vm889_vm2, %v1527_v19  ;;  %v2064_v19 = vld [vmem:[%s3671_s10 + $0x20] sm:$0xff] }
 0x7dc   : > { %2555 = vmatprep.mubr.msk.f32.mxu0 %vm3020_vm0, %v3021_v1  ;;  %v2065_v20 = vld [vmem:[%s3671_s10 + $0x28] sm:$0xff] }
 0x7de   : > { %v1680_v21 = vpop.f32.mrb[12].mxu1 }
 0x7df   : > { %v2552_v23 = vpop.f32.mrb[13].mxu1  ;;  %v1684_v24 = vsel %vm889_vm2, %v1680_v21, -inf }
 0x7e0   : > { %1685 = vmax.xlane.f32.xlu0 %v1684_v24  ;;  %v2416_v23 = vld [vmem:[%s3670_s9] ss:$0 sm:$0xff]  ;;  %v2067_v24 = vld [vmem:[%s3671_s10 + $0x38] sm:$0xff] }
 0x86d   : > { %v1686_v25 = vpop.xlane.xlu0 %1685 }
 0x86e   : > { %v1687_v26 = vsub.f32 %v1680_v21, %v1686_v25  ;;  %v2635_v21 = vpack.c.bf16 %v2065_v20, %v2064_v19 }
 0x870   : > { %v1688_v27 = vmul.f32 1.442695, %v1687_v26 }
 0x872   : > { %2757 = vpow2.f32 %v1688_v27 }
 0x87c   : > { %v2758_v28 = vpop.eup %2757 }
 0x87d   : > { %v1690_v29 = vsel %vm889_vm2, %v2758_v28, 0.0 }
 0x87e   : > { %1691 = vadd.xlane.f32.xlu1 %v1690_v29 }
 0x88f   : > { %1695 = vrot.lane.b32.xlu1 %v3420_v22, %s3028_s12 }
 0x8ae   : > { %v1601_v31 = vpop.f32.mrb[8].mxu0 }
 0x8af   : > { %v1605_v32 = vadd.f32 %v1601_v31, %v1363_v62  ;;  %v2547_v33 = vpop.f32.mrb[9].mxu0  ;;  %v2620_v62 = vpack.c.bf16 %v1888_v61, %v1887_v60 }
 0x90b   : > { %v1692_v34 = vpop.xlane.xlu1 %1691 }
 0x90c   : > { %2759 = vrcp.f32 %v1692_v34 }
 0x90f   : > { %v1696_v35 = vpop.permute.xlu1 %1695 }
 0x910   : > { %2554 = vmatpush3.msra.mxu0 %v1696_v35 }
 0x911   : > { %2616 = vmatprep.subr.bf16.mxu0 %v3019_v0 }
 0x916   : > { %v2760_v36 = vpop.eup %2759 }
 0x917   : > { %v1694_v37 = vmul.f32 %v2760_v36, %v2758_v28  ;;  %v2413_v28 = vld [vmem:[%s3738_s16] ss:$0 sm:$0xff]  ;;  %s2889_s16 = sshll.u32 %s3029_s24, 4  ;;  %s2890_s16 = int_to_ptr.vmem [resolvable:$false] %s2889_s16 }
 0x918   : > { %s2891_s12 = scalar_lea.vmem %s2890_s16, 256  ;;  %p2892_p4 = scmp.lt.s32.totalorder %s2203_s18, %s2890_s16 }
 0x919   : > { %2556 = vmatmul.mubr.msk.f32.vlgmr.msra.gmra.mrb[10].mxu0 %vm889_vm2, %v1694_v37  ;;  %p2893_p9 = scmp.lt.s32.totalorder %s2891_s12, %s2885_s19 }
 0x91a   : > { %2571 = vmatprep.mubr.msk.f32.mxu0 %vm3020_vm0, %v3021_v1  ;;  %2618 = vmatpush3.bf16.msra.mxu0 %v2617_v59 }
 0x91b   : > { %2619 = vmatprep.subr.bf16.mxu0 %v3019_v0  ;;  %p2894_p5 = por %p2893_p9, %p2892_p4 }
 0x91d   : > { %p2895_p7 = pnand %p2894_p5, %p2888_p3 }
 0x91e   : > { %2621 = vmatpush3.bf16.msra.mxu0 %v2620_v62 }
 0x91f   : > { %2628 = vmatprep.subr.bf16.mxu0 %v3019_v0 }
 0x9ec   : > { %v1767_v22 = vpop.f32.mrb[10].mxu0 }
 0x9ed   : > { %v2557_v38 = vpop.f32.mrb[11].mxu0  ;;  %2561 = vmatmul.mubr.msk.f32.vlgmr.msra.gmra.mrb[14].mxu1 %vm889_vm2, %v1767_v22 }
 0x9ee   : > { %2582 = vmatprep.mubr.msk.f32.mxu1 %vm3020_vm0, %v3021_v1  ;;  %2624 = vmatpush3.bf16.msra.mxu1 %v2623_v42 }
 0x9ef   : > { %2625 = vmatprep.subr.bf16.mxu1 %v3019_v0 }
 0x9f2   : > { %2627 = vmatpush3.bf16.msra.mxu1 %v2626_v44 }
 0x9f5   : > { %2583 = vmatmul.mubr.msk.f32.vlgmr.msra.gmra.mrb[16].mxu1 %vm729_vm1, %v3407_v15 }
 0xac0   : > { %v1841_v45 = vpop.f32.mrb[14].mxu1 }
 0xac1   : > { %v1845_v47 = vadd.f32 %v1841_v45, %v1605_v32  ;;  %v2562_v48 = vpop.f32.mrb[15].mxu1 }
 0xac3   : > { %v1853_v49 = vadd.f32 %v2410_v46, %v1845_v47 }
 0xac5   : > { %v1854_v50 = vadd.f32 %v1853_v49, %v3391_v10 }
 0xac7   : > { %v1857_v51 = vsel %vm729_vm1, %v1854_v50, 0.0 }
 0xac8   : > { %1858 = vadd.xlane.f32.xlu1 %v1857_v51  ;;  %v2055_v10 = vpop.f32.mrb[16].mxu1 }
 0xac9   : > { %v2584_v63 = vpop.f32.mrb[17].mxu1  ;;  %v2056_v25 = vadd.f32 %v2416_v23, %v2055_v10 }
 0xacb   : > { %v2059_v27 = vmax.f32 %v2056_v25, 0.0 }
 0xb55   : > { %v1859_v52 = vpop.xlane.xlu1 %1858 }
 0xb56   : > { %v1861_v53 = vmul.f32 0.03125, %v1859_v52 }
 0xb58   : > { %v1862_v54 = vsub.f32 %v1854_v50, %v1861_v53 }
 0xb5a   : > { %v1863_v55 = vmul.f32 %v1862_v54, %v1862_v54 }
 0xb5c   : > { %v1864_v56 = vsel %vm729_vm1, %v1863_v55, 0.0 }
 0xb5d   : > { %1865 = vadd.xlane.f32.xlu0 %v1864_v56 }
 0xbea   : > { %v1866_v2 = vpop.xlane.xlu0 %1865 }
 0xbeb   : > { %v1867_v3 = vmul.f32 0.03125, %v1866_v2 }
 0xbed   : > { %v1868_v4 = vadd.f32 1e-05, %v1867_v3 }
 0xbef   : > { %2761 = vrsqrt.f32 %v1868_v4 }
 0xbf9   : > { %v2762_v5 = vpop.eup %2761 }
 0xbfa   : > { %v1870_v7 = vmul.f32 %v2762_v5, %v1862_v54 }
 0xbfc   : > { %v1877_v12 = vmul.f32 %v2411_v6, %v1870_v7 }
 0xbfe   : > { %v1884_v14 = vadd.f32 %v2412_v11, %v1877_v12 }
 0xc00   : > { %2572 = vmatmul.mubr.msk.f32.vlgmr.msra.gmra.mrb[12].mxu0 %vm729_vm1, %v1884_v14  ;;  %2180 = vst.msk [vmem:[%s706_s2] sm:$0xff] %vm729_vm1, %v1884_v14 }
 0xc01   : > { %2630 = vmatpush3.bf16.msra.mxu0 %v2629_v13  ;;  %2601 = vmatprep.mubr.msk.f32.mxu0 %vm3020_vm0, %v3021_v1  ;;  %v2066_v1 = vld [vmem:[%s3671_s10 + $0x30] sm:$0xff] }
 0xc02   : > { %2631 = vmatprep.subr.bf16.mxu0 %v3019_v0  ;;  %v2638_v26 = vpack.c.bf16 %v2067_v24, %v2066_v1 }
 0xc05   : > { %2633 = vmatpush3.bf16.msra.mxu0 %v2632_v18 }
 0xc06   : > { %2634 = vmatprep.subr.bf16.mxu0 %v3019_v0 }
 0xc09   : > { %2636 = vmatpush3.bf16.msra.mxu0 %v2635_v21 }
 0xc0a   : > { %2637 = vmatprep.subr.bf16.mxu0 %v3019_v0  ;;  %v2418_v0 = vld [vmem:[%s3740_s25] ss:$0 sm:$0xff] }
 0xc0d   : > { %2639 = vmatpush3.bf16.msra.mxu0 %v2638_v26 }
 0xc10   : > { %2602 = vmatmul.mubr.msk.f32.vlgmr.msra.gmra.mrb[14].mxu0 %vm2075_vm3, %v2059_v27 }
 0xcd3   : > { %v1965_v29 = vpop.f32.mrb[12].mxu0 }
 0xcd4   : > { %v1966_v30 = vadd.f32 %v2413_v28, %v1965_v29  ;;  %v2573_v31 = vpop.f32.mrb[13].mxu0 }
 0xcd6   : > { %v2415_v32 = vmul.f32 -1.442695, %v1966_v30 }
 0xcd8   : > { %2763 = vpow2.f32 %v2415_v32 }
 0xce2   : > { %v2764_v33 = vpop.eup %2763 }
 0xce3   : > { %v1972_v34 = vadd.f32 1.0, %v2764_v33  ;;  %v2145_v35 = vpop.f32.mrb[14].mxu0 }
 0xce4   : > { %v2603_v36 = vpop.f32.mrb[15].mxu0  ;;  %v2146_v37 = vadd.f32 %v2418_v0, %v2145_v35 }
 0xce5   : > { %2765 = vrcp.f32 %v1972_v34 }
 0xcef   : > { %v2766_v22 = vpop.eup %2765 }
 0xcf0   : > { %v2149_v38 = vmul.f32 %v2766_v22, %v2146_v37 }
 0xcf2   : > { %v2150_v39 = vadd.f32 %v2149_v38, %v3407_v15 }
 0xcf4   : > { %v2153_v40 = vsel %vm729_vm1, %v2150_v39, 0.0 }
 0xcf5   : > { %2154 = vadd.xlane.f32.xlu0 %v2153_v40 }
 0xd82   : > { %v2155_v41 = vpop.xlane.xlu0 %2154 }
 0xd83   : > { %v2156_v42 = vmul.f32 0.03125, %v2155_v41 }
 0xd85   : > { %v2157_v43 = vsub.f32 %v2150_v39, %v2156_v42 }
 0xd87   : > { %v2158_v44 = vmul.f32 %v2157_v43, %v2157_v43 }
 0xd89   : > { %v2159_v45 = vsel %vm729_vm1, %v2158_v44, 0.0 }
 0xd8a   : > { %2160 = vadd.xlane.f32.xlu0 %v2159_v45 }
 0xd8b   : > { %2898 = shalt.err (!%p2895_p7)
}
 0xd8c   : > { %s2899_s2 = scalar_lea.hbm %s3577_s0, 128  ;;  %s2903_s8 = scalar_lea.hbm %s3742_s11, 256 }
 0xd8d   : > { %p2900_p13 = scmp.ne.s32.totalorder %s3577_s0, %s2899_s2  ;;  %p2904_p2 = scmp.lt.u32.totalorder %s3577_s0, %s3742_s11 }
 0xd8e   : > { %p2905_p12 = scmp.lt.u32.totalorder %s2903_s8, %s2899_s2  ;;  %p2907_p1 = scmp.lt.u32.totalorder %s2899_s2, %s3577_s0 }
 0xd8f   : > { %p2901_p8 = pnand %p2900_p13, %p3743_p6 }
 0xd90   : > { %p2906_p0 = por %p2905_p12, %p2904_p2 }
 0xd91   : > { %p2902_p11 = pneg %p2901_p8 }
 0xd92   : > { %p2908_p10 = por %p2907_p1, %p2906_p0 }
 0xd94   : > { %p2909_p3 = pnand %p2908_p10, %p2902_p11 }
 0xd96   : > { %2912 = shalt.err (!%p2909_p3)
}
 0xd97   : > { %2652 = dma.vmem_to_hbm [thread:$0]  (%p3743_p6), %s2203_s18, 128, %s3577_s0, %s2183_s3  }
 0xd98   : > { %s3744_s12 = sld [smem:[#allocation35_spill]]  ;;  %s3745_s25 = sld [smem:[#allocation36_spill]] }
 0xd99   : > { %s713_s8 = scalar_lea.vmem [#allocation11], %s3344_s28  ;;  %s3746_s3 = sld [smem:[#allocation38_spill]] }
 0xd9a   : > { %s2216_s23 = sshll.u32 %s713_s8, 4  ;;  %s2188_s19 = scalar_lea.sflag [#allocation12], %s3341_s21  ;;  %s3613_s23 = int_to_ptr.vmem [resolvable:$true] %s2216_s23 }
 0xd9b   : > { %s2913_s16 = scalar_lea.vmem %s3613_s23, 128  ;;  %s3030_s28 = smov [#allocation11]  }
 0xd9c   : > { %p2914_p4 = scmp.ne.s32.totalorder %s3613_s23, %s2913_s16  ;;  %s2917_s13 = sshll.u32 %s3030_s28, 4  ;;  %s2918_s13 = int_to_ptr.vmem [resolvable:$false] %s2917_s13 }
 0xd9d   : > { %p2920_p7 = scmp.lt.s32.totalorder %s3613_s23, %s2918_s13 }
 0xd9e   : > { %v2420_v49 = vld [vmem:[%s3744_s12] ss:$0 sm:$0xff]  ;;  %p2915_p9 = pnand %p2914_p4, %p3743_p6  ;;  %s2919_s12 = scalar_lea.vmem %s2918_s13, 256 }
 0xd9f   : > { %v2421_v51 = vld [vmem:[%s3745_s25] ss:$0 sm:$0xff]  ;;  %s3611_s24 = scalar_lea.hbm %s3746_s3, %s2424_s20  ;;  %p2921_p13 = scmp.lt.s32.totalorder %s2919_s12, %s2913_s16 }
 0xda0   : > { %p2916_p5 = pneg %p2915_p9 }
 0xda1   : > { %p2922_p8 = por %p2921_p13, %p2920_p7 }
 0xda3   : > { %p2923_p11 = pnand %p2922_p8, %p2916_p5 }
 0xe17   : > { %v2161_v15 = vpop.xlane.xlu0 %2160 }
 0xe18   : > { %v2162_v46 = vmul.f32 0.03125, %v2161_v15 }
 0xe1a   : > { %v2163_v47 = vadd.f32 1e-05, %v2162_v46 }
 0xe1c   : > { %2767 = vrsqrt.f32 %v2163_v47 }
 0xe26   : > { %v2768_v48 = vpop.eup %2767 }
 0xe27   : > { %v2165_v50 = vmul.f32 %v2768_v48, %v2157_v43 }
 0xe29   : > { %v2172_v52 = vmul.f32 %v2420_v49, %v2165_v50 }
 0xe2b   : > { %v2179_v53 = vadd.f32 %v2421_v51, %v2172_v52 }
 0xe2d   : > { %2181 = vst.msk [vmem:[%s713_s8] sm:$0xff] %vm729_vm1, %v2179_v53 }
 0xe2e   : > { %2926 = shalt.err (!%p2923_p11)
}
 0xe2f   : > { %s2927_s21 = scalar_lea.hbm %s3611_s24, 128  ;;  %s2931_s1 = scalar_lea.hbm %s3746_s3, 256 }
 0xe30   : > { %p2928_p2 = scmp.ne.s32.totalorder %s3611_s24, %s2927_s21  ;;  %p2932_p1 = scmp.lt.u32.totalorder %s3611_s24, %s3746_s3 }
 0xe31   : > { %p2933_p10 = scmp.lt.u32.totalorder %s2931_s1, %s2927_s21  ;;  %p2935_p4 = scmp.lt.u32.totalorder %s2927_s21, %s3611_s24 }
 0xe32   : > { %p2929_p12 = pnand %p2928_p2, %p3743_p6 }
 0xe33   : > { %p2934_p3 = por %p2933_p10, %p2932_p1 }
 0xe34   : > { %p2930_p0 = pneg %p2929_p12 }
 0xe35   : > { %p2936_p9 = por %p2935_p4, %p2934_p3 }
 0xe37   : > { %p2937_p5 = pnand %p2936_p9, %p2930_p0 }
 0xe39   : > { %2940 = shalt.err (!%p2937_p5)
}
 0xe3a   : > { %2653 = dma.vmem_to_hbm [thread:$0]  (%p3743_p6), %s3613_s23, 128, %s3611_s24, %s2188_s19  }
 0xe3b PF: > { %s3747_s0 = sld [smem:[#allocation19_spill]]  ;;  %s3748_s18 = sld [smem:[#allocation23_spill]] }
 0xe3c   : > { %p3750_p13 = scmp.ge.s32.totalorder %s3011_s22, 2 }
 0xe41   : > { %s2228_s16 = sand.u32 1, %s3747_s0   ;;  %p3749_p7 = scmp.ne.s32.totalorder %s3748_s18, 0 }
 0xe42   : > { %s2229_s28 = scalar_lea.sflag [#allocation4], %s2228_s16 }
 0xe43   : > { %p2671_p8 = pnand %p3750_p13, %p3749_p7 }
 0xe45   : > { %2982 = dma.done.wait (!%p2671_p8), %s2229_s28, 128  }
 0xe46   : > { %2984 = vsyncadd (!%p2671_p8), %s2229_s28, 4294967168  ;;  %s2238_s13 = scalar_lea.sflag [#allocation12], %s2228_s16 }
 0xe47   : > { %2986 = dma.done.wait (!%p2671_p8), %s2238_s13, 128  }
 0xe48   : > { %2988 = vsyncadd (!%p2671_p8), %s2238_s13, 4294967168  ;;  %s43_s22 = sadd.s32 1, %s3011_s22   ;;  %s3751_s26 = sld [smem:[#allocation20_spill]] }
 0xe49   : > { %p40_p11 = scmp.ge.s32.totalorder %s43_s22, 4   ;;  %s3752_s20 = sld [smem:[#allocation26_spill]] }
 0xe4a   : > { %s3753_s21 = sld [smem:[#allocation22_spill]]  ;;  %s3754_s1 = sld [smem:[#allocation24_spill]] }
 0xe4b   : > { %s3755_s0 = smov %s2995_s30  ;;  %42 = sbr.rel (!%p40_p11) target bundleno = 24 (0x18), region = 176 }
 0xe4e   : > { %s3756_s30 = smov %s3751_s26 }
 0xe52   :  { %2243 = vsyncpa [#allocation3], 1 }
 0xe53   :  { %2245 = vsyncpa [#allocation3 + $0x1], 1 }
 0xe54   :  { %2246 = vsyncpa [#allocation6], 1 }
 0xe55   :  { %2248 = vsyncpa [#allocation6 + $0x1], 1 }
 0xe56   :  { %2249 = vsyncpa [#allocation9], 1 }
 0xe57   :  { %2250 = vsyncpa [#allocation4], 1 }
 0xe58   :  { %2252 = vsyncpa [#allocation4 + $0x1], 1 }
 0xe59   :  { %2253 = vsyncpa [#allocation12], 1 }
 0xe5a   :  { %2255 = vsyncpa [#allocation12 + $0x1], 1 }

// kernel: tpu_custom_call.1
= control target key start
LH: loop header
LB: loop body
LE: loop exit
PB: predicated region body
PF: predicated region fallthrough
CT: control target
= control target key end

     0   :  { %s3661_s0 = inlined_call_operand.hbm [shape: f32[2,8,32], index: 0, kind: input, shape index: {}]   ;;  %s3662_s1 = inlined_call_operand.hbm [shape: f32[2,8,32], index: 1, kind: input, shape index: {}]   ;;  %s3663_s2 = inlined_call_operand.vmem [shape: f32[32,32], index: 2, kind: input, shape index: {}]   ;;  %s3664_s3 = inlined_call_operand.vmem [shape: f32[1,32], index: 3, kind: input, shape index: {}]   ;;  %s3665_s4 = inlined_call_operand.vmem [shape: f32[32,64], index: 4, kind: input, shape index: {}]   ;;  %s3666_s5 = inlined_call_operand.vmem [shape: f32[1,64], index: 5, kind: input, shape index: {}]   ;;  %s3667_s6 = inlined_call_operand.vmem [shape: f32[32,32], index: 6, kind: input, shape index: {}]   ;;  %s3668_s7 = inlined_call_operand.vmem [shape: f32[1,32], index: 7, kind: input, shape index: {}]   ;;  %s3669_s8 = inlined_call_operand.hbm [shape: f32[32,64], index: 8, kind: input, shape index: {}]   ;;  %s3670_s9 = inlined_call_operand.vmem [shape: f32[1,64], index: 9, kind: input, shape index: {}]   ;;  %s3671_s10 = inlined_call_operand.vmem [shape: f32[64,32], index: 10, kind: input, shape index: {}]   ;;  %s3672_s11 = inlined_call_operand.vmem [shape: f32[1,32], index: 11, kind: input, shape index: {}]   ;;  %s3673_s12 = inlined_call_operand.hbm [shape: f32[32,32], index: 12, kind: input, shape index: {}]   ;;  %s3674_s13 = inlined_call_operand.vmem [shape: f32[1,32], index: 13, kind: input, shape index: {}]   ;;  %s3675_s14 = inlined_call_operand.vmem [shape: f32[1,32], index: 14, kind: input, shape index: {}]   ;;  %s3676_s15 = inlined_call_operand.vmem [shape: f32[1,32], index: 15, kind: input, shape index: {}]   ;;  %s3677_s16 = inlined_call_operand.vmem [shape: f32[1,32], index: 16, kind: input, shape index: {}]   ;;  %s3678_s17 = inlined_call_operand.vmem [shape: f32[1,32], index: 17, kind: input, shape index: {}]   ;;  %s3679_s18 = inlined_call_operand.hbm [shape: f32[2,8,32], index: 18, kind: output, shape index: {0}]   ;;  %s3680_s19 = inlined_call_operand.hbm [shape: f32[2,8,32], index: 19, kind: output, shape index: {1}]  }
   0x1   :  { %3698 = sst [smem:[#allocation27_spill]] %s3661_s0 }
   0x2   :  { %3699 = sst [smem:[#allocation28_spill]] %s3662_s1 }
   0x3   :  { %3700 = sst [smem:[#allocation29_spill]] %s3663_s2 }
   0x4   :  { %3701 = sst [smem:[#allocation30_spill]] %s3664_s3 }
   0x5   :  { %3702 = sst [smem:[#allocation31_spill]] %s3669_s8 }
   0x6   :  { %3703 = sst [smem:[#allocation32_spill]] %s3672_s11 }
   0x7   :  { %3704 = sst [smem:[#allocation33_spill]] %s3673_s12 }
   0x8   :  { %3705 = sst [smem:[#allocation34_spill]] %s3674_s13 }
   0x9   :  { %3706 = sst [smem:[#allocation35_spill]] %s3677_s16 }
   0xa   :  { %3707 = sst [smem:[#allocation36_spill]] %s3678_s17 }
   0xb   :  { %3708 = sst [smem:[#allocation37_spill]] %s3679_s18 }
   0xc   :  { %3709 = sst [smem:[#allocation38_spill]] %s3680_s19 }
   0xd   :  { %25 = vsyncpa [#allocation3], 0 }
   0xe   :  { %27 = vsyncpa [#allocation3 + $0x1], 0 }
   0xf   :  { %28 = vsyncpa [#allocation6], 0 }
  0x10   :  { %30 = vsyncpa [#allocation6 + $0x1], 0 }
  0x11   :  { %31 = vsyncpa [#allocation9], 0 }
  0x12   :  { %32 = vsyncpa [#allocation4], 0 }
  0x13   :  { %34 = vsyncpa [#allocation4 + $0x1], 0 }
  0x14   :  { %35 = vsyncpa [#allocation12], 0 }
  0x15   :  { %37 = vsyncpa [#allocation12 + $0x1], 0  ;;  %s3131_s0 = smov 0   ;;  %s3133_s30 = smov 0  }
  0x16   :  { %s3135_s20 = smov 0   ;;  %s3137_s21 = smov 0  }
  0x17   :  { %s3139_s1 = smov 0   ;;  %s3141_s22 = smov 0  }
  0x18 LB: > { %3710 = sst [smem:[#allocation19_spill]] %s2991_s0  ;;  %s3162_s2 = sadd.s32 4294967295, %s3011_s22   ;;  %s3011_s22 = sphi %s3141_s22, %s43_s22   ;;  %s3007_s1 = sphi %s3139_s1, %s3754_s1   ;;  %s3003_s21 = sphi %s3137_s21, %s3753_s21   ;;  %s2999_s20 = sphi %s3135_s20, %s3752_s20   ;;  %s2995_s30 = sphi %s3133_s30, %s3756_s30   ;;  %s2991_s0 = sphi %s3131_s0, %s3755_s0  }
  0x19   : > { %3711 = sst [smem:[#allocation20_spill]] %s2999_s20  ;;  %s2374_s23 = sadd.s32 4294967294, %s3011_s22  }
  0x1a   : > { %3712 = sst [smem:[#allocation21_spill]] %s3003_s21  ;;  %p77_p0 = scmp.ne.s32.totalorder %s2995_s30, %s2991_s0 }
  0x1b   : > { %3713 = sst [smem:[#allocation22_spill]] %s3007_s1  ;;  %p3688_p1 = scmp.eq.s32.totalorder %s3162_s2, 0 }
  0x1c   : > { %p471_p3 = scmp.eq.s32.totalorder %s2374_s23, 1  ;;  %p2375_p5 = scmp.ge.s32.totalorder %s3011_s22, 1 }
  0x1d   : > { %p3171_p4 = por %p3688_p1, %p77_p0  ;;  %p506_p7 = scmp.lt.s32.totalorder %s3011_s22, 3 }
  0x1e   : > { %p3176_p6 = por %p471_p3, %p77_p0  ;;  %s3013_s26 = smov [#allocation7]  }
  0x1f   : > { %s3714_s24 = scalar_select %p3171_p4, 1, 0 }
  0x20   : > { %s3715_s25 = scalar_select %p3176_p6, 1, 0 }
  0x21   : > { %p3181_p8 = pnand %p2375_p5, %p506_p7  ;;  %s536_s27 = sshll.u32 %s3013_s26, 4  ;;  %s3185_s27 = int_to_ptr.vmem [resolvable:$true] %s536_s27 }
  0x22   : > { %3716 = sst [smem:[#allocation23_spill]] %s3715_s25  ;;  %s3014_s29 = smov [#allocation8]  }
  0x23   : > { %s3717_s3 = scalar_select %p3181_p8, 1, 0 }
  0x24   : > { %p2656_p9 = pneg %p3181_p8  ;;  %s558_s23 = sshll.u32 %s3014_s29, 4  ;;  %s3196_s23 = int_to_ptr.vmem [resolvable:$true] %s558_s23 }
  0x25   : > { %s3719_s8 = sld [smem:[#allocation31_spill]] }
  0x26   : > { %p3192_p11 = pnand %p2656_p9, %p3688_p1 }
  0x28   : > { %p2771_p13 = pneg %p3192_p11 }
  0x2b   : > { %s2769_s26 = scalar_lea.hbm %s3719_s8, 512 }
  0x2c   : > { %p2770_p12 = scmp.ne.s32.totalorder %s3719_s8, %s2769_s26  ;;  %p2776_p5 = scmp.lt.u32.totalorder %s2769_s26, %s3719_s8 }
  0x2e   : > { %p2772_p0 = pnand %p2771_p13, %p2770_p12 }
  0x30   : > { %p2773_p3 = pneg %p2772_p0 }
  0x32   : > { %p2778_p7 = pnand %p2776_p5, %p2773_p3 }
  0x34   : > { %2781 = shalt.err (!%p2778_p7)
}
  0x35   : > { %s2782_s0 = scalar_lea.vmem %s3185_s27, 512  ;;  %p2790_p2 = scmp.lt.s32.totalorder %s3185_s27, %s3185_s27 }
  0x36   : > { %p2783_p9 = scmp.ne.s32.totalorder %s3185_s27, %s2782_s0  ;;  %p2791_p12 = scmp.lt.s32.totalorder %s2782_s0, %s2782_s0 }
  0x38   : > { %p2785_p10 = pnand %p2783_p9, %p2771_p13  ;;  %p2792_p0 = por %p2791_p12, %p2790_p2 }
  0x3a   : > { %p2786_p1 = pneg %p2785_p10 }
  0x3c   : > { %p2793_p6 = pnand %p2792_p0, %p2786_p1 }
  0x3e   : > { %2796 = shalt.err (!%p2793_p6)
}
  0x3f   : > { %s3015_s16 = smov 128   ;;  %s3016_s17 = smov 8  }
  0x40   : > { %2659 = dma.hbm_to_vmem [thread:$0]  (!%p3192_p11), %s3719_s8, 512, %s3185_s27, [#allocation6], %s3015_s16, %s3015_s16, %s3016_s17  }
  0x41   : > { %s3720_s12 = sld [smem:[#allocation33_spill]] }
  0x47   : > { %s2797_s26 = scalar_lea.hbm %s3720_s12, 512 }
  0x48   : > { %p2798_p2 = scmp.ne.s32.totalorder %s3720_s12, %s2797_s26  ;;  %p2804_p10 = scmp.lt.u32.totalorder %s2797_s26, %s3720_s12 }
  0x4a   : > { %p2800_p1 = pnand %p2798_p2, %p2771_p13 }
  0x4c   : > { %p2801_p6 = pneg %p2800_p1 }
  0x4e   : > { %p2806_p3 = pnand %p2804_p10, %p2801_p6 }
  0x50   : > { %2809 = shalt.err (!%p2806_p3)
}
  0x51   : > { %s2810_s27 = scalar_lea.vmem %s3196_s23, 512  ;;  %p2818_p12 = scmp.lt.s32.totalorder %s3196_s23, %s3196_s23 }
  0x52   : > { %p2811_p5 = scmp.ne.s32.totalorder %s3196_s23, %s2810_s27  ;;  %p2819_p0 = scmp.lt.s32.totalorder %s2810_s27, %s2810_s27 }
  0x54   : > { %p2813_p7 = pnand %p2811_p5, %p2771_p13  ;;  %p2820_p2 = por %p2819_p0, %p2818_p12 }
  0x56   : > { %p2814_p9 = pneg %p2813_p7 }
  0x58   : > { %p2821_p1 = pnand %p2820_p2, %p2814_p9 }
  0x5a   : > { %2824 = shalt.err (!%p2821_p1)
}
  0x5b   : > { %2662 = dma.hbm_to_vmem [thread:$0]  (!%p3192_p11), %s3720_s12, 512, %s3196_s23, [#allocation9], %s3015_s16, %s3015_s16, %s3016_s17  }
  0x5c   : > { %s55_s21 = sadd.s32 1, %s3007_s1  ;;  %s64_s18 = sadd.s32 1, %s2999_s20 }
  0x5d   : > { %p57_p13 = scmp.ge.s32.totalorder %s55_s21, 2  ;;  %p71_p6 = scmp.ne.s32.totalorder %s2999_s20, %s2995_s30 }
  0x5e   : > { %p72_p10 = scmp.eq.s32.totalorder %s3011_s22, 0  ;;  %p2679_p3 = scmp.lt.s32.totalorder %s3011_s22, 2 }
  0x5f   : > { %s3758_s21 = smov (%p57_p13, %s55_s21), 0  ;;  %p3722_p7 = scmp.eq.s32.totalorder %s3162_s2, 1 }
  0x60   : > { %3721 = sst [smem:[#allocation24_spill]] %s3758_s21  ;;  %p73_p5 = por %p72_p10, %p71_p6 }
  0x61   : > { %p3260_p9 = por %p3722_p7, %p71_p6  ;;  %s59_s19 = ssub.s32 %s3007_s1, %s3758_s21 }
  0x62   : > { %s587_s25 = sand.u32 1, %s2999_s20   ;;  %p62_p12 = scmp.eq.s32.totalorder %s59_s19, 0 }
  0x63   : > { %s3723_s28 = scalar_select %p3260_p9, 1, 0 }
  0x64   : > { %s3267_s23 = sshll.u32 %s587_s25, 3  ;;  %s2380_s16 = sshll.u32 %s3007_s1, 7 }
  0x65   : > { %3724 = sst [smem:[#allocation25_spill]] %s3723_s28  ;;  %s3726_s0 = sld [smem:[#allocation27_spill]] }
  0x66   : > { %s3271_s17 = scalar_select %p62_p12, %s2999_s20, %s64_s18  }
  0x67   : > { %s591_s13 = scalar_lea.vmem [#allocation2], %s3267_s23  ;;  %p3281_p11 = pnand %p2679_p3, %p73_p5 }
  0x68   : > { %3725 = sst [smem:[#allocation26_spill]] %s3271_s17  ;;  %s599_s8 = sshll.u32 %s591_s13, 4  ;;  %s3285_s8 = int_to_ptr.vmem [resolvable:$true] %s599_s8 }
  0x69   : > { %s3729_s29 = sld [smem:[#allocation28_spill]]  ;;  %p2827_p2 = pneg %p3281_p11 }
  0x6b   : > { %s3727_s27 = smov %s3726_s0  ;;  %s3276_s11 = scalar_lea.hbm %s3726_s0, %s2380_s16 }
  0x6c   : > { %s588_s0 = scalar_lea.sflag [#allocation3], %s587_s25  ;;  %s2825_s21 = scalar_lea.hbm %s3276_s11, 128 }
  0x6d   : > { %p2826_p0 = scmp.ne.s32.totalorder %s3276_s11, %s2825_s21  ;;  %s2830_s17 = scalar_lea.hbm %s3727_s27, 256 }
  0x6e   : > { %p2831_p6 = scmp.lt.u32.totalorder %s3276_s11, %s3727_s27  ;;  %p2832_p10 = scmp.lt.u32.totalorder %s2830_s17, %s2825_s21 }
  0x6f   : > { %s3290_s26 = scalar_lea.hbm %s3729_s29, %s2380_s16  ;;  %p2828_p1 = pnand %p2827_p2, %p2826_p0 }
  0x70   : > { %p2833_p3 = por %p2832_p10, %p2831_p6  ;;  %p2834_p5 = scmp.lt.u32.totalorder %s2825_s21, %s3276_s11 }
  0x71   : > { %p2829_p13 = pneg %p2828_p1 }
  0x72   : > { %p2835_p7 = por %p2834_p5, %p2833_p3 }
  0x74   : > { %p2836_p12 = pnand %p2835_p7, %p2829_p13 }
  0x76   : > { %2839 = shalt.err (!%p2836_p12)
}
  0x77   : > { %s2840_s12 = scalar_lea.vmem %s3285_s8, 128  ;;  %s3017_s1 = smov [#allocation2]  }
  0x78   : > { %p2841_p0 = scmp.ne.s32.totalorder %s3285_s8, %s2840_s12  ;;  %s2845_s25 = sshll.u32 %s3017_s1, 4  ;;  %s2846_s25 = int_to_ptr.vmem [resolvable:$false] %s2845_s25 }
  0x79   : > { %s2847_s20 = scalar_lea.vmem %s2846_s25, 256  ;;  %p2848_p4 = scmp.lt.s32.totalorder %s3285_s8, %s2846_s25 }
  0x7a   : > { %p2843_p1 = pnand %p2841_p0, %p2827_p2  ;;  %p2849_p6 = scmp.lt.s32.totalorder %s2847_s20, %s2840_s12 }
  0x7c   : > { %p2844_p9 = pneg %p2843_p1  ;;  %p2850_p10 = por %p2849_p6, %p2848_p4 }
  0x7e   : > { %p2851_p3 = pnand %p2850_p10, %p2844_p9 }
  0x80   : > { %2854 = shalt.err (!%p2851_p3)
}
  0x81   : > { %2666 = dma.hbm_to_vmem [thread:$0]  (!%p3281_p11), %s3276_s11, 128, %s3285_s8, %s588_s0  }
  0x82   : > { %s606_s21 = sand.u32 1, %s3011_s22   ;;  %s610_s28 = scalar_lea.vmem [#allocation5], %s3267_s23 }
  0x83   : > { %s617_s16 = sshll.u32 %s610_s28, 4  ;;  %s607_s17 = scalar_lea.sflag [#allocation6], %s606_s21  ;;  %s618_s16 = int_to_ptr.vmem [resolvable:$true] %s617_s16 }
  0x84   : > { %s2855_s18 = scalar_lea.hbm %s3290_s26, 128  ;;  %s2860_s1 = scalar_lea.hbm %s3729_s29, 256 }
  0x85   : > { %p2856_p4 = scmp.ne.s32.totalorder %s3290_s26, %s2855_s18  ;;  %p2861_p5 = scmp.lt.u32.totalorder %s3290_s26, %s3729_s29 }
  0x86   : > { %p2862_p7 = scmp.lt.u32.totalorder %s2860_s1, %s2855_s18  ;;  %p2864_p0 = scmp.lt.u32.totalorder %s2855_s18, %s3290_s26 }
  0x87   : > { %p2858_p9 = pnand %p2856_p4, %p2827_p2 }
  0x88   : > { %p2863_p12 = por %p2862_p7, %p2861_p5 }
  0x89   : > { %p2859_p13 = pneg %p2858_p9 }
  0x8a   : > { %p2865_p1 = por %p2864_p0, %p2863_p12 }
  0x8c   : > { %p2866_p6 = pnand %p2865_p1, %p2859_p13 }
  0x8e   : > { %2869 = shalt.err (!%p2866_p6)
}
  0x8f   : > { %s2870_s8 = scalar_lea.vmem %s618_s16, 128  ;;  %s3018_s23 = smov [#allocation5]  }
  0x90   : > { %p2871_p10 = scmp.ne.s32.totalorder %s618_s16, %s2870_s8  ;;  %s2875_s11 = sshll.u32 %s3018_s23, 4  ;;  %s2876_s11 = int_to_ptr.vmem [resolvable:$false] %s2875_s11 }
  0x91   : > { %s2877_s0 = scalar_lea.vmem %s2876_s11, 256  ;;  %p2878_p9 = scmp.lt.s32.totalorder %s618_s16, %s2876_s11 }
  0x92   : > { %p2873_p3 = pnand %p2871_p10, %p2827_p2  ;;  %p2879_p8 = scmp.lt.s32.totalorder %s2877_s0, %s2870_s8 }
  0x94   : > { %p2874_p4 = pneg %p2873_p3  ;;  %p2880_p5 = por %p2879_p8, %p2878_p9 }
  0x96   : > { %p2881_p7 = pnand %p2880_p5, %p2874_p4 }
  0x98   : > { %2884 = shalt.err (!%p2881_p7)
}
  0x99   : > { %2669 = dma.hbm_to_vmem [thread:$0]  (!%p3281_p11), %s3290_s26, 128, %s618_s16, %s607_s17  }
  0x9a   : > { %p3730_p13 = scmp.ne.s32.totalorder %s3717_s3, 0 }
  0x9b   : > { %s3341_s21 = sand.u32 (!%p3730_p13), 1, %s2995_s30   ;;  %p3731_p8 = scmp.ne.s32.totalorder (!%p3730_p13), %s3714_s24, 0 }
  0x9c   : > { %626 = sbr.rel (%p3730_p13) target bundleno = 3643 (0xe3b), region = 92  ;;  %s3344_s28 = sshll.u32 (!%p3730_p13), %s3341_s21, 3 }
  0x9d   : > { %s629_s18 = scalar_lea.sflag (!%p3730_p13), [#allocation3], %s3341_s21  ;;  %s632_s13 = scalar_lea.vmem (!%p3730_p13), [#allocation2], %s3344_s28 }
  0xa3   : > { %2966 = dma.done.wait (%p3731_p8), %s629_s18, 128  }
  0xa4   : > { %2968 = vsyncadd (%p3731_p8), %s629_s18, 4294967168  ;;  %s637_s3 = sand.u32 1, %s3162_s2   ;;  %s641_s26 = scalar_lea.vmem [#allocation5], %s3344_s28 }
  0xa5   : > { %s638_s19 = scalar_lea.sflag [#allocation6], %s637_s3 }
  0xa6   : > { %2970 = dma.done.wait (%p3731_p8), %s638_s19, 128  }
  0xa7   : > { %2972 = vsyncadd (%p3731_p8), %s638_s19, 4294967168  ;;  %p3732_p11 = scmp.eq.s32.totalorder %s3162_s2, 0 }
  0xa9   : > { %2974 = dma.done.wait (%p3732_p11), [#allocation6], 512   ;;  %p3733_p2 = pmov %p3732_p11 }
  0xab   : > { %2976 = vsyncadd (%p3733_p2), [#allocation6], 4294966784  ;;  %p3734_p12 = pmov %p3733_p2 }
  0xac   : > { %p3735_p0 = pmov %p3733_p2 }
  0xad   : > { %2978 = dma.done.wait (%p3734_p12), [#allocation9], 512  }
  0xae   : > { %2980 = vsyncadd (%p3735_p0), [#allocation9], 4294966784  ;;  %v3019_v0 = vmov 0.0|0.0   ;;  %vm3020_vm0 = vmmov 0   ;;  %v3021_v1 = vmov 0.0   ;;  %s3736_s17 = sld [smem:[#allocation29_spill]] }
  0xaf   : > { %2604 = vmatprep.subr.bf16.mxu1 %v3019_v0  ;;  %2489 = vmatprep.mubr.msk.f32.mxu1 %vm3020_vm0, %v3021_v1  ;;  %v805_v8 = vld [vmem:[%s3665_s4] sm:$0xff]  ;;  %v806_v9 = vld [vmem:[%s3665_s4 + $0x8] sm:$0xff]  ;;  %vm729_vm1 = vcmask 261120   ;;  %v807_v12 = vld [vmem:[%s3665_s4 + $0x10] sm:$0xff]  ;;  %s3737_s2 = sld [smem:[#allocation30_spill]]  ;;  %vm889_vm2 = vcmask 64512  }
  0xb0   : > { %2503 = vmatprep.subr.mxu0 %v3021_v1  ;;  %2505 = vmatprep.mubr.msk.f32.mxu0 %vm3020_vm0, %v3021_v1  ;;  %v3391_v10 = vld [vmem:[%s632_s13] sm:$0xff]  ;;  %v2611_v11 = vpack.c.bf16 %v806_v9, %v805_v8  ;;  %v808_v13 = vld [vmem:[%s3665_s4 + $0x18] sm:$0xff]  ;;  %s3023_s20 = smov 96   ;;  %s3024_s8 = smov 88   ;;  %vm2075_vm3 = vcmask 523264  }
  0xb1   : > { %v2614_v14 = vpack.c.bf16 %v808_v13, %v807_v12  ;;  %v3407_v15 = vld [vmem:[%s641_s26] sm:$0xff]  ;;  %v2392_v19 = vld [vmem:[%s3666_s5] ss:$0 sm:$0xff]  ;;  %s3022_s26 = smov 120   ;;  %s3025_s23 = smov 112   ;;  %v1219_v47 = vld [vmem:[%s3667_s6 + $0x8] sm:$0xff] }
  0xb2   : > { %v1053_v52 = vld [vmem:[%s3667_s6] sm:$0xff]  ;;  %s3026_s19 = smov 80   ;;  %s3027_s24 = smov 104  }
  0xb3   : > { %s3028_s12 = smov 72   ;;  %s3738_s16 = sld [smem:[#allocation34_spill]] }
  0xb4   : > { %v718_v2 = vld [vmem:[%s3736_s17] sm:$0xff]  ;;  %v719_v3 = vld [vmem:[%s3736_s17 + $0x8] sm:$0xff]  ;;  %v720_v4 = vld [vmem:[%s3736_s17 + $0x10] sm:$0xff]  ;;  %s3739_s13 = sld [smem:[#allocation21_spill]]  ;;  %s3740_s25 = sld [smem:[#allocation32_spill]] }
  0xb5   : > { %v2605_v5 = vpack.c.bf16 %v719_v3, %v718_v2  ;;  %v721_v6 = vld [vmem:[%s3736_s17 + $0x18] sm:$0xff]  ;;  %v2390_v18 = vld [vmem:[%s3737_s2] ss:$0 sm:$0xff]  ;;  %s706_s2 = scalar_lea.vmem [#allocation10], %s3344_s28  ;;  %s3742_s11 = sld [smem:[#allocation37_spill]] }
  0xb6   : > { %v2608_v7 = vpack.c.bf16 %v721_v6, %v720_v4  ;;  %s2202_s18 = sshll.u32 %s706_s2, 4  ;;  %s2183_s3 = scalar_lea.sflag [#allocation4], %s3341_s21  ;;  %s2203_s18 = int_to_ptr.vmem [resolvable:$true] %s2202_s18 }
  0xb7   : > { %2606 = vmatpush3.bf16.msra.mxu1 %v2605_v5 }
  0xb8   : > { %2607 = vmatprep.subr.bf16.mxu1 %v3019_v0 }
  0xbb   : > { %2609 = vmatpush3.bf16.msra.mxu1 %v2608_v7 }
  0xbc   : > { %2610 = vmatprep.subr.bf16.mxu1 %v3019_v0 }
  0xbe   : > { %2490 = vmatmul.mubr.msk.f32.vlgmr.msra.gmra.mrb[0].mxu1 %vm729_vm1, %v3391_v10 }
  0xbf   : > { %2612 = vmatpush3.bf16.msra.mxu1 %v2611_v11  ;;  %2500 = vmatprep.mubr.msk.f32.mxu1 %vm3020_vm0, %v3021_v1 }
  0xc0   : > { %2613 = vmatprep.subr.bf16.mxu1 %v3019_v0 }
  0xc3   : > { %2615 = vmatpush3.bf16.msra.mxu1 %v2614_v14 }
  0xc4   : > { %2508 = vmatprep.subr.mxu1 %v3021_v1 }
  0xc6   : > { %2501 = vmatmul.mubr.msk.f32.vlgmr.msra.gmra.mrb[2].mxu1 %vm729_vm1, %v3407_v15 }
  0xc7   : > { %2510 = vmatprep.mubr.msk.f32.mxu1 %vm3020_vm0, %v3021_v1 }
 0x191   : > { %v799_v16 = vpop.f32.mrb[0].mxu1 }
 0x192   : > { %v2491_v17 = vpop.f32.mrb[1].mxu1  ;;  %v800_v20 = vadd.f32 %v2390_v18, %v799_v16  ;;  %v1531_v18 = vld [vmem:[%s3667_s6 + $0x10] sm:$0xff] }
 0x194   : > { %v3425_v24 = vmul.f32 0.35355338, %v800_v20 }
 0x199   : > { %v885_v21 = vpop.f32.mrb[2].mxu1 }
 0x19a   : > { %v3420_v22 = vadd.f32 %v2392_v19, %v885_v21  ;;  %v2502_v23 = vpop.f32.mrb[3].mxu1 }
 0x19c   : > { %1056 = vrot.lane.b32.xlu0 %v3420_v22, %s3022_s26  ;;  %2504 = vmatpush3.xpose.msk.msra.mxu0 %vm889_vm2, %v3420_v22 }
 0x19d   : > { %2513 = vmatprep.subr.mxu0 %v3021_v1 }
 0x19f   : > { %2506 = vmatmul.mubr.msk.f32.vlgmr.msra.gmra.mrb[0].mxu0 %vm889_vm2, %v3425_v24 }
 0x1a0   : > { %1054 = vrot.lane.b32.xlu0 %v3425_v24, %s3022_s26  ;;  %2515 = vmatprep.mubr.msk.f32.mxu0 %vm3020_vm0, %v3021_v1  ;;  %s3741_s26 = sld [smem:[#allocation25_spill]] }
 0x1a6   : > { %p3743_p6 = scmp.ne.s32.totalorder %s3741_s26, 0 }
 0x20e   : > { %v1057_v25 = vpop.permute.xlu0 %1056 }
 0x20f   : > { %2514 = vmatpush3.xpose.msk.msra.mxu0 %vm889_vm2, %v1057_v25 }
 0x210   : > { %2523 = vmatprep.subr.mxu0 %v3021_v1 }
 0x212   : > { %v1055_v26 = vpop.permute.xlu0 %1054 }
 0x213   : > { %2516 = vmatmul.mubr.msk.f32.vlgmr.msra.gmra.mrb[2].mxu0 %vm889_vm2, %v1055_v26 }
 0x214   : > { %2525 = vmatprep.mubr.msk.f32.mxu0 %vm3020_vm0, %v3021_v1  ;;  %2524 = vmatpush3.msra.mxu0 %v1219_v47 }
 0x215   : > { %2533 = vmatprep.subr.mxu0 %v3021_v1 }
 0x272   : > { %v962_v27 = vpop.f32.mrb[0].mxu0 }
 0x273   : > { %v2507_v28 = vpop.f32.mrb[1].mxu0  ;;  %v966_v29 = vsel %vm889_vm2, %v962_v27, -inf }
 0x274   : > { %967 = vmax.xlane.f32.xlu1 %v966_v29 }
 0x2e6   : > { %v1128_v30 = vpop.f32.mrb[2].mxu0 }
 0x2e7   : > { %v2517_v31 = vpop.f32.mrb[3].mxu0  ;;  %v1132_v32 = vsel %vm889_vm2, %v1128_v30, -inf }
 0x2e8   : > { %1133 = vmax.xlane.f32.xlu1 %v1132_v32 }
 0x2f9   : > { %977 = vrot.lane.b32.xlu1 %v3420_v22, %s3023_s20  ;;  %s2424_s20 = sshll.u32 %s3739_s13, 7 }
 0x2fa   : > { %s3577_s0 = scalar_lea.hbm %s3742_s11, %s2424_s20 }
 0x301   : > { %v968_v33 = vpop.xlane.xlu1 %967 }
 0x302   : > { %v969_v34 = vsub.f32 %v962_v27, %v968_v33 }
 0x304   : > { %v970_v35 = vmul.f32 1.442695, %v969_v34 }
 0x306   : > { %2745 = vpow2.f32 %v970_v35 }
 0x310   : > { %v2746_v36 = vpop.eup %2745 }
 0x311   : > { %v972_v37 = vsel %vm889_vm2, %v2746_v36, 0.0 }
 0x312   : > { %973 = vadd.xlane.f32.xlu0 %v972_v37 }
 0x375   : > { %v1134_v38 = vpop.xlane.xlu1 %1133 }
 0x376   : > { %v1135_v39 = vsub.f32 %v1128_v30, %v1134_v38  ;;  %v1771_v30 = vld [vmem:[%s3667_s6 + $0x18] sm:$0xff] }
 0x378   : > { %v1136_v40 = vmul.f32 1.442695, %v1135_v39  ;;  %v1975_v39 = vld [vmem:[#allocation7] sm:$0xff] }
 0x379   : > { %v978_v41 = vpop.permute.xlu1 %977 }
 0x37a   : > { %2747 = vpow2.f32 %v1136_v40  ;;  %2509 = vmatpush3.msra.mxu1 %v978_v41  ;;  %v1976_v40 = vld [vmem:[#allocation7 + $0x8] sm:$0xff]  ;;  %v1977_v41 = vld [vmem:[#allocation7 + $0x10] sm:$0xff] }
 0x37b   : > { %2518 = vmatprep.subr.mxu1 %v3021_v1 }
 0x384   : > { %v2748_v42 = vpop.eup %2747 }
 0x385   : > { %v1138_v43 = vsel %vm889_vm2, %v2748_v42, 0.0 }
 0x386   : > { %1139 = vadd.xlane.f32.xlu1 %v1138_v43  ;;  %v1978_v43 = vld [vmem:[#allocation7 + $0x18] sm:$0xff] }
 0x397   : > { %1143 = vrot.lane.b32.xlu1 %v3420_v22, %s3024_s8 }
 0x39b   : > { %1368 = vrot.lane.b32.xlu1 %v3420_v22, %s3025_s23 }
 0x39f   : > { %v974_v44 = vpop.xlane.xlu0 %973  ;;  %1366 = vrot.lane.b32.xlu1 %v3425_v24, %s3025_s23 }
 0x3a0   : > { %2749 = vrcp.f32 %v974_v44  ;;  %v2626_v44 = vpack.c.bf16 %v1978_v43, %v1977_v41 }
 0x3aa   : > { %v2750_v45 = vpop.eup %2749 }
 0x3ab   : > { %v976_v46 = vmul.f32 %v2750_v45, %v2746_v36 }
 0x3ad   : > { %2511 = vmatmul.mubr.msk.f32.vlgmr.msra.gmra.mrb[4].mxu1 %vm889_vm2, %v976_v46  ;;  %v2410_v46 = vld [vmem:[%s3668_s7] ss:$0 sm:$0xff] }
 0x3ae   : > { %2520 = vmatprep.mubr.msk.f32.mxu1 %vm3020_vm0, %v3021_v1 }
 0x413   : > { %v1140_v48 = vpop.xlane.xlu1 %1139 }
 0x414   : > { %2751 = vrcp.f32 %v1140_v48 }
 0x417   : > { %v1144_v49 = vpop.permute.xlu1 %1143 }
 0x418   : > { %2519 = vmatpush3.msra.mxu1 %v1144_v49 }
 0x419   : > { %2528 = vmatprep.subr.mxu1 %v3021_v1 }
 0x41b   : > { %v1369_v55 = vpop.permute.xlu1 %1368 }
 0x41e   : > { %v2752_v50 = vpop.eup %2751 }
 0x41f   : > { %v1142_v51 = vmul.f32 %v2752_v50, %v2748_v42  ;;  %v1367_v58 = vpop.permute.xlu1 %1366  ;;  %v2623_v42 = vpack.c.bf16 %v1976_v40, %v1975_v39 }
 0x421   : > { %2521 = vmatmul.mubr.msk.f32.vlgmr.msra.gmra.mrb[6].mxu1 %vm889_vm2, %v1142_v51 }
 0x422   : > { %2529 = vmatpush3.msra.mxu1 %v1053_v52  ;;  %2530 = vmatprep.mubr.msk.f32.mxu1 %vm3020_vm0, %v3021_v1 }
 0x423   : > { %2538 = vmatprep.subr.mxu1 %v3021_v1 }
 0x480   : > { %v1049_v53 = vpop.f32.mrb[4].mxu1 }
 0x481   : > { %v2512_v54 = vpop.f32.mrb[5].mxu1  ;;  %2531 = vmatmul.mubr.msk.f32.vlgmr.msra.gmra.mrb[8].mxu1 %vm889_vm2, %v1049_v53 }
 0x482   : > { %2540 = vmatprep.mubr.msk.f32.mxu1 %vm3020_vm0, %v3021_v1 }
 0x4f4   : > { %v1215_v56 = vpop.f32.mrb[6].mxu1 }
 0x4f5   : > { %v2522_v57 = vpop.f32.mrb[7].mxu1  ;;  %2526 = vmatmul.mubr.msk.f32.vlgmr.msra.gmra.mrb[4].mxu0 %vm889_vm2, %v1215_v56 }
 0x4f6   : > { %2534 = vmatpush3.xpose.msk.msra.mxu0 %vm889_vm2, %v1369_v55  ;;  %2535 = vmatprep.mubr.msk.f32.mxu0 %vm3020_vm0, %v3021_v1  ;;  %v1885_v57 = vld [vmem:[#allocation8] sm:$0xff] }
 0x4f7   : > { %2543 = vmatprep.subr.mxu0 %v3021_v1 }
 0x4f9   : > { %2536 = vmatmul.mubr.msk.f32.vlgmr.msra.gmra.mrb[6].mxu0 %vm889_vm2, %v1367_v58  ;;  %v1886_v58 = vld [vmem:[#allocation8 + $0x8] sm:$0xff] }
 0x4fa   : > { %2545 = vmatprep.mubr.msk.f32.mxu0 %vm3020_vm0, %v3021_v1  ;;  %2544 = vmatpush3.msra.mxu0 %v1531_v18 }
 0x4fb   : > { %2553 = vmatprep.subr.mxu0 %v3021_v1 }
 0x554   : > { %v1362_v59 = vpop.f32.mrb[8].mxu1 }
 0x555   : > { %v2532_v60 = vpop.f32.mrb[9].mxu1 }
 0x556   : > { %v1887_v60 = vld [vmem:[#allocation8 + $0x10] sm:$0xff] }
 0x5c8   : > { %v1289_v61 = vpop.f32.mrb[4].mxu0 }
 0x5c9   : > { %v1363_v62 = vadd.f32 %v1362_v59, %v1289_v61  ;;  %v2527_v63 = vpop.f32.mrb[5].mxu0  ;;  %v2617_v59 = vpack.c.bf16 %v1886_v58, %v1885_v57  ;;  %v1888_v61 = vld [vmem:[#allocation8 + $0x18] sm:$0xff] }
 0x5cc   : > { %v1440_v2 = vpop.f32.mrb[6].mxu0 }
 0x5cd   : > { %v2537_v3 = vpop.f32.mrb[7].mxu0  ;;  %v1444_v4 = vsel %vm889_vm2, %v1440_v2, -inf }
 0x5ce   : > { %1445 = vmax.xlane.f32.xlu0 %v1444_v4 }
 0x5e4   : > { %1455 = vrot.lane.b32.xlu0 %v3420_v22, %s3026_s19  ;;  %s2885_s19 = scalar_lea.vmem %s2203_s18, 128 }
 0x5e5   : > { %p2886_p1 = scmp.ne.s32.totalorder %s2203_s18, %s2885_s19 }
 0x5e7   : > { %p2887_p10 = pnand %p2886_p1, %p3743_p6 }
 0x5e8   : > { %1608 = vrot.lane.b32.xlu0 %v3420_v22, %s3027_s24 }
 0x5e9   : > { %p2888_p3 = pneg %p2887_p10 }
 0x5ec   : > { %1606 = vrot.lane.b32.xlu0 %v3425_v24, %s3027_s24  ;;  %s3029_s24 = smov [#allocation10]  }
 0x65b   : > { %v1446_v5 = vpop.xlane.xlu0 %1445 }
 0x65c   : > { %v1447_v6 = vsub.f32 %v1440_v2, %v1446_v5 }
 0x65e   : > { %v1448_v7 = vmul.f32 1.442695, %v1447_v6  ;;  %v2411_v6 = vld [vmem:[%s3675_s14] ss:$0 sm:$0xff] }
 0x65f   : > { %v1456_v8 = vpop.permute.xlu0 %1455 }
 0x660   : > { %2753 = vpow2.f32 %v1448_v7  ;;  %2539 = vmatpush3.msra.mxu1 %v1456_v8  ;;  %v2060_v8 = vld [vmem:[%s3671_s10] sm:$0xff] }
 0x661   : > { %2548 = vmatprep.subr.mxu1 %v3021_v1 }
 0x663   : > { %v1609_v14 = vpop.permute.xlu0 %1608 }
 0x667   : > { %v1607_v17 = vpop.permute.xlu0 %1606 }
 0x66a   : > { %v2754_v9 = vpop.eup %2753 }
 0x66b   : > { %v1450_v11 = vsel %vm889_vm2, %v2754_v9, 0.0 }
 0x66c   : > { %1451 = vadd.xlane.f32.xlu1 %v1450_v11  ;;  %v2412_v11 = vld [vmem:[%s3676_s15] ss:$0 sm:$0xff] }
 0x6f9   : > { %v1452_v12 = vpop.xlane.xlu1 %1451 }
 0x6fa   : > { %2755 = vrcp.f32 %v1452_v12 }
 0x704   : > { %v2756_v13 = vpop.eup %2755 }
 0x705   : > { %v1454_v16 = vmul.f32 %v2756_v13, %v2754_v9  ;;  %v2061_v9 = vld [vmem:[%s3671_s10 + $0x8] sm:$0xff] }
 0x706   : > { %v2629_v13 = vpack.c.bf16 %v2061_v9, %v2060_v8 }
 0x707   : > { %2541 = vmatmul.mubr.msk.f32.vlgmr.msra.gmra.mrb[10].mxu1 %vm889_vm2, %v1454_v16  ;;  %v2062_v16 = vld [vmem:[%s3671_s10 + $0x10] sm:$0xff] }
 0x708   : > { %2549 = vmatpush3.xpose.msk.msra.mxu1 %vm889_vm2, %v1609_v14  ;;  %2550 = vmatprep.mubr.msk.f32.mxu1 %vm3020_vm0, %v3021_v1 }
 0x709   : > { %2558 = vmatprep.subr.mxu1 %v3021_v1 }
 0x70b   : > { %2551 = vmatmul.mubr.msk.f32.vlgmr.msra.gmra.mrb[12].mxu1 %vm889_vm2, %v1607_v17  ;;  %v2063_v17 = vld [vmem:[%s3671_s10 + $0x18] sm:$0xff] }
 0x70c   : > { %2560 = vmatprep.mubr.msk.f32.mxu1 %vm3020_vm0, %v3021_v1  ;;  %2559 = vmatpush3.msra.mxu1 %v1771_v30  ;;  %v2632_v18 = vpack.c.bf16 %v2063_v17, %v2062_v16 }
 0x70d   : > { %2622 = vmatprep.subr.bf16.mxu1 %v3019_v0 }
 0x7da   : > { %v1527_v19 = vpop.f32.mrb[10].mxu1 }
 0x7db   : > { %v2542_v20 = vpop.f32.mrb[11].mxu1  ;;  %2546 = vmatmul.mubr.msk.f32.vlgmr.msra.gmra.mrb[8].mxu0 %vm889_vm2, %v1527_v19  ;;  %v2064_v19 = vld [vmem:[%s3671_s10 + $0x20] sm:$0xff] }
 0x7dc   : > { %2555 = vmatprep.mubr.msk.f32.mxu0 %vm3020_vm0, %v3021_v1  ;;  %v2065_v20 = vld [vmem:[%s3671_s10 + $0x28] sm:$0xff] }
 0x7de   : > { %v1680_v21 = vpop.f32.mrb[12].mxu1 }
 0x7df   : > { %v2552_v23 = vpop.f32.mrb[13].mxu1  ;;  %v1684_v24 = vsel %vm889_vm2, %v1680_v21, -inf }
 0x7e0   : > { %1685 = vmax.xlane.f32.xlu0 %v1684_v24  ;;  %v2416_v23 = vld [vmem:[%s3670_s9] ss:$0 sm:$0xff]  ;;  %v2067_v24 = vld [vmem:[%s3671_s10 + $0x38] sm:$0xff] }
 0x86d   : > { %v1686_v25 = vpop.xlane.xlu0 %1685 }
 0x86e   : > { %v1687_v26 = vsub.f32 %v1680_v21, %v1686_v25  ;;  %v2635_v21 = vpack.c.bf16 %v2065_v20, %v2064_v19 }
 0x870   : > { %v1688_v27 = vmul.f32 1.442695, %v1687_v26 }
 0x872   : > { %2757 = vpow2.f32 %v1688_v27 }
 0x87c   : > { %v2758_v28 = vpop.eup %2757 }
 0x87d   : > { %v1690_v29 = vsel %vm889_vm2, %v2758_v28, 0.0 }
 0x87e   : > { %1691 = vadd.xlane.f32.xlu1 %v1690_v29 }
 0x88f   : > { %1695 = vrot.lane.b32.xlu1 %v3420_v22, %s3028_s12 }
 0x8ae   : > { %v1601_v31 = vpop.f32.mrb[8].mxu0 }
 0x8af   : > { %v1605_v32 = vadd.f32 %v1601_v31, %v1363_v62  ;;  %v2547_v33 = vpop.f32.mrb[9].mxu0  ;;  %v2620_v62 = vpack.c.bf16 %v1888_v61, %v1887_v60 }
 0x90b   : > { %v1692_v34 = vpop.xlane.xlu1 %1691 }
 0x90c   : > { %2759 = vrcp.f32 %v1692_v34 }
 0x90f   : > { %v1696_v35 = vpop.permute.xlu1 %1695 }
 0x910   : > { %2554 = vmatpush3.msra.mxu0 %v1696_v35 }
 0x911   : > { %2616 = vmatprep.subr.bf16.mxu0 %v3019_v0 }
 0x916   : > { %v2760_v36 = vpop.eup %2759 }
 0x917   : > { %v1694_v37 = vmul.f32 %v2760_v36, %v2758_v28  ;;  %v2413_v28 = vld [vmem:[%s3738_s16] ss:$0 sm:$0xff]  ;;  %s2889_s16 = sshll.u32 %s3029_s24, 4  ;;  %s2890_s16 = int_to_ptr.vmem [resolvable:$false] %s2889_s16 }
 0x918   : > { %s2891_s12 = scalar_lea.vmem %s2890_s16, 256  ;;  %p2892_p4 = scmp.lt.s32.totalorder %s2203_s18, %s2890_s16 }
 0x919   : > { %2556 = vmatmul.mubr.msk.f32.vlgmr.msra.gmra.mrb[10].mxu0 %vm889_vm2, %v1694_v37  ;;  %p2893_p9 = scmp.lt.s32.totalorder %s2891_s12, %s2885_s19 }
 0x91a   : > { %2571 = vmatprep.mubr.msk.f32.mxu0 %vm3020_vm0, %v3021_v1  ;;  %2618 = vmatpush3.bf16.msra.mxu0 %v2617_v59 }
 0x91b   : > { %2619 = vmatprep.subr.bf16.mxu0 %v3019_v0  ;;  %p2894_p5 = por %p2893_p9, %p2892_p4 }
 0x91d   : > { %p2895_p7 = pnand %p2894_p5, %p2888_p3 }
 0x91e   : > { %2621 = vmatpush3.bf16.msra.mxu0 %v2620_v62 }
 0x91f   : > { %2628 = vmatprep.subr.bf16.mxu0 %v3019_v0 }
 0x9ec   : > { %v1767_v22 = vpop.f32.mrb[10].mxu0 }
 0x9ed   : > { %v2557_v38 = vpop.f32.mrb[11].mxu0  ;;  %2561 = vmatmul.mubr.msk.f32.vlgmr.msra.gmra.mrb[14].mxu1 %vm889_vm2, %v1767_v22 }
 0x9ee   : > { %2582 = vmatprep.mubr.msk.f32.mxu1 %vm3020_vm0, %v3021_v1  ;;  %2624 = vmatpush3.bf16.msra.mxu1 %v2623_v42 }
 0x9ef   : > { %2625 = vmatprep.subr.bf16.mxu1 %v3019_v0 }
 0x9f2   : > { %2627 = vmatpush3.bf16.msra.mxu1 %v2626_v44 }
 0x9f5   : > { %2583 = vmatmul.mubr.msk.f32.vlgmr.msra.gmra.mrb[16].mxu1 %vm729_vm1, %v3407_v15 }
 0xac0   : > { %v1841_v45 = vpop.f32.mrb[14].mxu1 }
 0xac1   : > { %v1845_v47 = vadd.f32 %v1841_v45, %v1605_v32  ;;  %v2562_v48 = vpop.f32.mrb[15].mxu1 }
 0xac3   : > { %v1853_v49 = vadd.f32 %v2410_v46, %v1845_v47 }
 0xac5   : > { %v1854_v50 = vadd.f32 %v1853_v49, %v3391_v10 }
 0xac7   : > { %v1857_v51 = vsel %vm729_vm1, %v1854_v50, 0.0 }
 0xac8   : > { %1858 = vadd.xlane.f32.xlu1 %v1857_v51  ;;  %v2055_v10 = vpop.f32.mrb[16].mxu1 }
 0xac9   : > { %v2584_v63 = vpop.f32.mrb[17].mxu1  ;;  %v2056_v25 = vadd.f32 %v2416_v23, %v2055_v10 }
 0xacb   : > { %v2059_v27 = vmax.f32 %v2056_v25, 0.0 }
 0xb55   : > { %v1859_v52 = vpop.xlane.xlu1 %1858 }
 0xb56   : > { %v1861_v53 = vmul.f32 0.03125, %v1859_v52 }
 0xb58   : > { %v1862_v54 = vsub.f32 %v1854_v50, %v1861_v53 }
 0xb5a   : > { %v1863_v55 = vmul.f32 %v1862_v54, %v1862_v54 }
 0xb5c   : > { %v1864_v56 = vsel %vm729_vm1, %v1863_v55, 0.0 }
 0xb5d   : > { %1865 = vadd.xlane.f32.xlu0 %v1864_v56 }
 0xbea   : > { %v1866_v2 = vpop.xlane.xlu0 %1865 }
 0xbeb   : > { %v1867_v3 = vmul.f32 0.03125, %v1866_v2 }
 0xbed   : > { %v1868_v4 = vadd.f32 1e-05, %v1867_v3 }
 0xbef   : > { %2761 = vrsqrt.f32 %v1868_v4 }
 0xbf9   : > { %v2762_v5 = vpop.eup %2761 }
 0xbfa   : > { %v1870_v7 = vmul.f32 %v2762_v5, %v1862_v54 }
 0xbfc   : > { %v1877_v12 = vmul.f32 %v2411_v6, %v1870_v7 }
 0xbfe   : > { %v1884_v14 = vadd.f32 %v2412_v11, %v1877_v12 }
 0xc00   : > { %2572 = vmatmul.mubr.msk.f32.vlgmr.msra.gmra.mrb[12].mxu0 %vm729_vm1, %v1884_v14  ;;  %2180 = vst.msk [vmem:[%s706_s2] sm:$0xff] %vm729_vm1, %v1884_v14 }
 0xc01   : > { %2630 = vmatpush3.bf16.msra.mxu0 %v2629_v13  ;;  %2601 = vmatprep.mubr.msk.f32.mxu0 %vm3020_vm0, %v3021_v1  ;;  %v2066_v1 = vld [vmem:[%s3671_s10 + $0x30] sm:$0xff] }
 0xc02   : > { %2631 = vmatprep.subr.bf16.mxu0 %v3019_v0  ;;  %v2638_v26 = vpack.c.bf16 %v2067_v24, %v2066_v1 }
 0xc05   : > { %2633 = vmatpush3.bf16.msra.mxu0 %v2632_v18 }
 0xc06   : > { %2634 = vmatprep.subr.bf16.mxu0 %v3019_v0 }
 0xc09   : > { %2636 = vmatpush3.bf16.msra.mxu0 %v2635_v21 }
 0xc0a   : > { %2637 = vmatprep.subr.bf16.mxu0 %v3019_v0  ;;  %v2418_v0 = vld [vmem:[%s3740_s25] ss:$0 sm:$0xff] }
 0xc0d   : > { %2639 = vmatpush3.bf16.msra.mxu0 %v2638_v26 }
 0xc10   : > { %2602 = vmatmul.mubr.msk.f32.vlgmr.msra.gmra.mrb[14].mxu0 %vm2075_vm3, %v2059_v27 }
 0xcd3   : > { %v1965_v29 = vpop.f32.mrb[12].mxu0 }
 0xcd4   : > { %v1966_v30 = vadd.f32 %v2413_v28, %v1965_v29  ;;  %v2573_v31 = vpop.f32.mrb[13].mxu0 }
 0xcd6   : > { %v2415_v32 = vmul.f32 -1.442695, %v1966_v30 }
 0xcd8   : > { %2763 = vpow2.f32 %v2415_v32 }
 0xce2   : > { %v2764_v33 = vpop.eup %2763 }
 0xce3   : > { %v1972_v34 = vadd.f32 1.0, %v2764_v33  ;;  %v2145_v35 = vpop.f32.mrb[14].mxu0 }
 0xce4   : > { %v2603_v36 = vpop.f32.mrb[15].mxu0  ;;  %v2146_v37 = vadd.f32 %v2418_v0, %v2145_v35 }
 0xce5   : > { %2765 = vrcp.f32 %v1972_v34 }
 0xcef   : > { %v2766_v22 = vpop.eup %2765 }
 0xcf0   : > { %v2149_v38 = vmul.f32 %v2766_v22, %v2146_v37 }
 0xcf2   : > { %v2150_v39 = vadd.f32 %v2149_v38, %v3407_v15 }
 0xcf4   : > { %v2153_v40 = vsel %vm729_vm1, %v2150_v39, 0.0 }
 0xcf5   : > { %2154 = vadd.xlane.f32.xlu0 %v2153_v40 }
 0xd82   : > { %v2155_v41 = vpop.xlane.xlu0 %2154 }
 0xd83   : > { %v2156_v42 = vmul.f32 0.03125, %v2155_v41 }
 0xd85   : > { %v2157_v43 = vsub.f32 %v2150_v39, %v2156_v42 }
 0xd87   : > { %v2158_v44 = vmul.f32 %v2157_v43, %v2157_v43 }
 0xd89   : > { %v2159_v45 = vsel %vm729_vm1, %v2158_v44, 0.0 }
 0xd8a   : > { %2160 = vadd.xlane.f32.xlu0 %v2159_v45 }
 0xd8b   : > { %2898 = shalt.err (!%p2895_p7)
}
 0xd8c   : > { %s2899_s2 = scalar_lea.hbm %s3577_s0, 128  ;;  %s2903_s8 = scalar_lea.hbm %s3742_s11, 256 }
 0xd8d   : > { %p2900_p13 = scmp.ne.s32.totalorder %s3577_s0, %s2899_s2  ;;  %p2904_p2 = scmp.lt.u32.totalorder %s3577_s0, %s3742_s11 }
 0xd8e   : > { %p2905_p12 = scmp.lt.u32.totalorder %s2903_s8, %s2899_s2  ;;  %p2907_p1 = scmp.lt.u32.totalorder %s2899_s2, %s3577_s0 }
 0xd8f   : > { %p2901_p8 = pnand %p2900_p13, %p3743_p6 }
 0xd90   : > { %p2906_p0 = por %p2905_p12, %p2904_p2 }
 0xd91   : > { %p2902_p11 = pneg %p2901_p8 }
 0xd92   : > { %p2908_p10 = por %p2907_p1, %p2906_p0 }
 0xd94   : > { %p2909_p3 = pnand %p2908_p10, %p2902_p11 }
 0xd96   : > { %2912 = shalt.err (!%p2909_p3)
}
 0xd97   : > { %2652 = dma.vmem_to_hbm [thread:$0]  (%p3743_p6), %s2203_s18, 128, %s3577_s0, %s2183_s3  }
 0xd98   : > { %s3744_s12 = sld [smem:[#allocation35_spill]]  ;;  %s3745_s25 = sld [smem:[#allocation36_spill]] }
 0xd99   : > { %s713_s8 = scalar_lea.vmem [#allocation11], %s3344_s28  ;;  %s3746_s3 = sld [smem:[#allocation38_spill]] }
 0xd9a   : > { %s2216_s23 = sshll.u32 %s713_s8, 4  ;;  %s2188_s19 = scalar_lea.sflag [#allocation12], %s3341_s21  ;;  %s3613_s23 = int_to_ptr.vmem [resolvable:$true] %s2216_s23 }
 0xd9b   : > { %s2913_s16 = scalar_lea.vmem %s3613_s23, 128  ;;  %s3030_s28 = smov [#allocation11]  }
 0xd9c   : > { %p2914_p4 = scmp.ne.s32.totalorder %s3613_s23, %s2913_s16  ;;  %s2917_s13 = sshll.u32 %s3030_s28, 4  ;;  %s2918_s13 = int_to_ptr.vmem [resolvable:$false] %s2917_s13 }
 0xd9d   : > { %p2920_p7 = scmp.lt.s32.totalorder %s3613_s23, %s2918_s13 }
 0xd9e   : > { %v2420_v49 = vld [vmem:[%s3744_s12] ss:$0 sm:$0xff]  ;;  %p2915_p9 = pnand %p2914_p4, %p3743_p6  ;;  %s2919_s12 = scalar_lea.vmem %s2918_s13, 256 }
 0xd9f   : > { %v2421_v51 = vld [vmem:[%s3745_s25] ss:$0 sm:$0xff]  ;;  %s3611_s24 = scalar_lea.hbm %s3746_s3, %s2424_s20  ;;  %p2921_p13 = scmp.lt.s32.totalorder %s2919_s12, %s2913_s16 }
 0xda0   : > { %p2916_p5 = pneg %p2915_p9 }
 0xda1   : > { %p2922_p8 = por %p2921_p13, %p2920_p7 }
 0xda3   : > { %p2923_p11 = pnand %p2922_p8, %p2916_p5 }
 0xe17   : > { %v2161_v15 = vpop.xlane.xlu0 %2160 }
 0xe18   : > { %v2162_v46 = vmul.f32 0.03125, %v2161_v15 }
 0xe1a   : > { %v2163_v47 = vadd.f32 1e-05, %v2162_v46 }
 0xe1c   : > { %2767 = vrsqrt.f32 %v2163_v47 }
 0xe26   : > { %v2768_v48 = vpop.eup %2767 }
 0xe27   : > { %v2165_v50 = vmul.f32 %v2768_v48, %v2157_v43 }
 0xe29   : > { %v2172_v52 = vmul.f32 %v2420_v49, %v2165_v50 }
 0xe2b   : > { %v2179_v53 = vadd.f32 %v2421_v51, %v2172_v52 }
 0xe2d   : > { %2181 = vst.msk [vmem:[%s713_s8] sm:$0xff] %vm729_vm1, %v2179_v53 }
 0xe2e   : > { %2926 = shalt.err (!%p2923_p11)
}
 0xe2f   : > { %s2927_s21 = scalar_lea.hbm %s3611_s24, 128  ;;  %s2931_s1 = scalar_lea.hbm %s3746_s3, 256 }
 0xe30   : > { %p2928_p2 = scmp.ne.s32.totalorder %s3611_s24, %s2927_s21  ;;  %p2932_p1 = scmp.lt.u32.totalorder %s3611_s24, %s3746_s3 }
 0xe31   : > { %p2933_p10 = scmp.lt.u32.totalorder %s2931_s1, %s2927_s21  ;;  %p2935_p4 = scmp.lt.u32.totalorder %s2927_s21, %s3611_s24 }
 0xe32   : > { %p2929_p12 = pnand %p2928_p2, %p3743_p6 }
 0xe33   : > { %p2934_p3 = por %p2933_p10, %p2932_p1 }
 0xe34   : > { %p2930_p0 = pneg %p2929_p12 }
 0xe35   : > { %p2936_p9 = por %p2935_p4, %p2934_p3 }
 0xe37   : > { %p2937_p5 = pnand %p2936_p9, %p2930_p0 }
 0xe39   : > { %2940 = shalt.err (!%p2937_p5)
}
 0xe3a   : > { %2653 = dma.vmem_to_hbm [thread:$0]  (%p3743_p6), %s3613_s23, 128, %s3611_s24, %s2188_s19  }
 0xe3b PF: > { %s3747_s0 = sld [smem:[#allocation19_spill]]  ;;  %s3748_s18 = sld [smem:[#allocation23_spill]] }
 0xe3c   : > { %p3750_p13 = scmp.ge.s32.totalorder %s3011_s22, 2 }
 0xe41   : > { %s2228_s16 = sand.u32 1, %s3747_s0   ;;  %p3749_p7 = scmp.ne.s32.totalorder %s3748_s18, 0 }
 0xe42   : > { %s2229_s28 = scalar_lea.sflag [#allocation4], %s2228_s16 }
 0xe43   : > { %p2671_p8 = pnand %p3750_p13, %p3749_p7 }
 0xe45   : > { %2982 = dma.done.wait (!%p2671_p8), %s2229_s28, 128  }
 0xe46   : > { %2984 = vsyncadd (!%p2671_p8), %s2229_s28, 4294967168  ;;  %s2238_s13 = scalar_lea.sflag [#allocation12], %s2228_s16 }
 0xe47   : > { %2986 = dma.done.wait (!%p2671_p8), %s2238_s13, 128  }
 0xe48   : > { %2988 = vsyncadd (!%p2671_p8), %s2238_s13, 4294967168  ;;  %s43_s22 = sadd.s32 1, %s3011_s22   ;;  %s3751_s26 = sld [smem:[#allocation20_spill]] }
 0xe49   : > { %p40_p11 = scmp.ge.s32.totalorder %s43_s22, 4   ;;  %s3752_s20 = sld [smem:[#allocation26_spill]] }
 0xe4a   : > { %s3753_s21 = sld [smem:[#allocation22_spill]]  ;;  %s3754_s1 = sld [smem:[#allocation24_spill]] }
 0xe4b   : > { %s3755_s0 = smov %s2995_s30  ;;  %42 = sbr.rel (!%p40_p11) target bundleno = 24 (0x18), region = 176 }
 0xe4e   : > { %s3756_s30 = smov %s3751_s26 }
 0xe52   :  { %2243 = vsyncpa [#allocation3], 1 }
 0xe53   :  { %2245 = vsyncpa [#allocation3 + $0x1], 1 }
 0xe54   :  { %2246 = vsyncpa [#allocation6], 1 }
 0xe55   :  { %2248 = vsyncpa [#allocation6 + $0x1], 1 }
 0xe56   :  { %2249 = vsyncpa [#allocation9], 1 }
 0xe57   :  { %2250 = vsyncpa [#allocation4], 1 }
 0xe58   :  { %2252 = vsyncpa [#allocation4 + $0x1], 1 }
 0xe59   :  { %2253 = vsyncpa [#allocation12], 1 }
 0xe5a   :  { %2255 = vsyncpa [#allocation12 + $0x1], 1 }

</bundles_post_ra>
